<compile_context>
chip_gen: v7x
topology: tpu7x:2x2x1
jax: 0.10.0
libtpu: 0.0.40
codegen_flags: <defaults>
</compile_context>

<pallas_src>
import numpy as np
import jax
import jax.numpy as jnp
from jax.experimental import pallas as pl
from jax.experimental.pallas import tpu as pltpu

# ----------------------------- configuration -------------------------------
D_NUMERICAL = 2
CATEGORIES = (3, 4)                       # len(categories) = 2
D_TOKEN = 8
N_FEATURES = (D_NUMERICAL + len(CATEGORIES)) * D_TOKEN   # d_bias * d_token = 32
HIDDEN = 64                               # MADE hidden width
N_LAYERS = 4                              # number of (perm + MAF) blocks (even!)
EPS = 1e-3


# ------------------------------ Pallas kernel ------------------------------
def nflow_kernel(xt_ref, w1t_ref, b1t_ref, w2t_ref, b2t_ref, zt_ref):
    """Transposed (batch-in-lanes) MAF stack.

    xt_ref: (F, TB) f32      state, batch along lanes
    w1t   : (L, H, F)        W1^T per layer (mask + perm folded)
    b1t   : (L, H, 1)
    w2t   : (L, 2F, H)       fused [scale | shift] W2^T per layer
    b2t   : (L, 2F, 1)
    """
    F = N_FEATURES
    x = xt_ref[...].astype(jnp.float32)                      # (F, TB)
    for l in range(N_LAYERS):                                # fully unrolled
        # h^T = W1^T @ x^T + b1^T   -> (H, TB)
        h = jnp.dot(w1t_ref[l], x, preferred_element_type=jnp.float32) + b1t_ref[l]
        h = jnp.maximum(h, 0.0)                              # ReLU (VPU, lane-dense)
        # out^T = W2^T @ h^T + b2^T -> (2F, TB), one fused MXU push per layer
        out = jnp.dot(w2t_ref[l], h, preferred_element_type=jnp.float32) + b2t_ref[l]
        u = out[:F, :]                                       # sublane slice @ 32: free
        s = out[F:, :]
        # nflows MaskedAffineAutoregressiveTransform elementwise forward (f32)
        scale = jax.nn.sigmoid(u + 2.0) + EPS
        x = scale * x + s
    zt_ref[...] = x.astype(zt_ref.dtype)


def _round_up(n, m):
    return ((n + m - 1) // m) * m


def encoder_nflow_forward(x, w1t, b1t, w2t, b2t, *, tb=2048):
    """x: (B, F) f32 -> z: (B, F).  Weights already folded/transposed (f32)."""
    B, F = x.shape
    assert F == N_FEATURES

    # Wrapper-side layout plumbing: batch goes to lanes.
    xt = x.T                                                  # (F, B)

    # Lane-dense batch tile: multiple of 128, no padding (ragged last block is
    # handled by Pallas).  Cap so grid >= 2 when the batch allows it, so
    # dimension_semantics=("parallel",) can shard steps across both v7x TCs.
    tb = max(128, _round_up(min(tb, B), 128))
    if B >= 256:
        tb = min(tb, _round_up(pl.cdiv(B, 2), 128))
    grid = pl.cdiv(B, tb)

    # VMEM guard rail: at tb=2048 the (F,tb)/(2F,tb) f32 buffers plus weights
    # total well under 2 MiB, far below the 32 MiB default scoped limit on all
    # of v5e/v6e/v7x, so no vmem_limit_bytes override is needed.
    zt = pl.pallas_call(
        nflow_kernel,
        out_shape=jax.ShapeDtypeStruct((F, B), x.dtype),
        grid_spec=pltpu.PrefetchScalarGridSpec(
            num_scalar_prefetch=0,
            grid=(grid,),
            in_specs=[
                pl.BlockSpec((F, tb), lambda i: (0, i)),                     # x^T tile
                pl.BlockSpec((N_LAYERS, HIDDEN, F), lambda i: (0, 0, 0)),    # W1^T
                pl.BlockSpec((N_LAYERS, HIDDEN, 1), lambda i: (0, 0, 0)),    # b1^T
                pl.BlockSpec((N_LAYERS, 2 * F, HIDDEN), lambda i: (0, 0, 0)),# W2^T fused
                pl.BlockSpec((N_LAYERS, 2 * F, 1), lambda i: (0, 0, 0)),     # b2^T fused
            ],
            out_specs=pl.BlockSpec((F, tb), lambda i: (0, i)),
        ),
        compiler_params=pltpu.CompilerParams(dimension_semantics=("parallel",)),
    )(xt, w1t, b1t, w2t, b2t)
    return zt.T                                               # back to (B, F)


# --------------------------- parameter construction ------------------------
def build_params():
    """Synthetic MAF parameters (MADE masks folded into dense weights)."""
    F, H, L = N_FEATURES, HIDDEN, N_LAYERS

    # MADE autoregressive masks (degree-based, nflows/MADE convention)
    deg_in = np.arange(1, F + 1)                          # input degrees 1..F
    deg_hidden = (np.arange(H) % (F - 1)) + 1             # hidden degrees in [1, F-1]
    m1 = (deg_hidden[None, :] >= deg_in[:, None]).astype(np.float32)   # (F, H)
    deg_out = np.tile(deg_in, 2)                          # [scale | shift] share degrees
    m2 = (deg_out[None, :] > deg_hidden[:, None]).astype(np.float32)   # (H, 2F)

    key = jax.random.PRNGKey(0)
    k1, k2, k3, k4 = jax.random.split(key, 4)
    w1 = jax.random.normal(k1, (L, F, H), jnp.float32) * (1.0 / np.sqrt(F))
    b1 = jax.random.normal(k2, (L, 1, H), jnp.float32) * 0.01
    w2 = jax.random.normal(k3, (L, H, 2 * F), jnp.float32) * (1.0 / np.sqrt(H))
    b2 = jax.random.normal(k4, (L, 1, 2 * F), jnp.float32) * 0.01

    # fold masks into weights (glue, outside the kernel)
    w1m = w1 * jnp.asarray(m1)[None, :, :]
    w2m = w2 * jnp.asarray(m2)[None, :, :]

    # ReversePermutation as an explicit permutation matrix (for the reference only)
    perm = jnp.asarray(np.eye(F, dtype=np.float32)[:, ::-1])
    return perm, w1m, b1, w2m, b2


def fold_and_transpose_params(w1m, b1, w2m, b2):
    """Fold the ReversePermutation into even layers and build kernel-layout weights.

    Frames alternate because P is an involution and N_LAYERS is even:
      even layers: W1' = P @ W1, W2_half' = W2_half @ P, b2_half' = b2_half @ P
      odd layers:  unchanged
    The kernel state then always lives in the identity frame and no final
    permutation is needed.  All arrays are then transposed into the
    batch-in-lanes layout: W1^T (H,F), b1^T (H,1), fused W2^T (2F,H), b2^T (2F,1).
    """
    F = N_FEATURES
    assert N_LAYERS % 2 == 0, "permutation folding requires an even layer count"
    rev = np.arange(F)[::-1]
    P = np.eye(F)[:, rev]
    assert np.array_equal(P @ P, np.eye(F)), "ReversePermutation must be an involution"

    w1m = np.asarray(w1m); b1 = np.asarray(b1)
    w2m = np.asarray(w2m); b2 = np.asarray(b2)

    w1t, b1t, w2t, b2t = [], [], [], []
    for l in range(N_LAYERS):
        w1_l, b1_l = w1m[l], b1[l]            # (F, H), (1, H)
        w2_l, b2_l = w2m[l], b2[l]            # (H, 2F), (1, 2F)
        if l % 2 == 0:                        # even layer: fold the reverse permutation
            w1_l = w1_l[rev, :]                                       # P @ W1
            w2_l = np.concatenate([w2_l[:, :F][:, rev],               # scale half @ P
                                   w2_l[:, F:][:, rev]], axis=1)      # shift half @ P
            b2_l = np.concatenate([b2_l[:, :F][:, rev],
                                   b2_l[:, F:][:, rev]], axis=1)
        w1t.append(w1_l.T)                    # (H, F)
        b1t.append(b1_l.T)                    # (H, 1)
        w2t.append(w2_l.T)                    # (2F, H) fused [scale | shift]
        b2t.append(b2_l.T)                    # (2F, 1)

    to_f32 = lambda xs: jnp.asarray(np.stack(xs), dtype=jnp.float32)
    return to_f32(w1t), to_f32(b1t), to_f32(w2t), to_f32(b2t)


# ------------------------------ pure-JAX reference --------------------------
def reference_forward(x, perm, w1m, b1, w2m, b2):
    """Original (unfolded, f32) layer semantics, mirroring the PyTorch flow."""
    z = x.astype(jnp.float32)
    for l in range(N_LAYERS):
        z = z @ perm                                   # ReversePermutation
        h = jax.nn.relu(z @ w1m[l] + b1[l])
        out = h @ w2m[l] + b2[l]
        u_scale, shift = out[:, :N_FEATURES], out[:, N_FEATURES:]
        scale = jax.nn.sigmoid(u_scale + 2.0) + EPS
        z = scale * z + shift
    return z


# ----------------------------------- main -----------------------------------
if __name__ == "__main__":
    B = 1024                      # wrapper picks tb=512 -> grid=2 (both v7x TCs busy)
    key = jax.random.PRNGKey(0)
    inputs = jax.random.normal(key, (B, N_FEATURES), jnp.float32)

    perm, w1m, b1, w2m, b2 = build_params()
    w1t, b1t, w2t, b2t = fold_and_transpose_params(w1m, b1, w2m, b2)

    z = encoder_nflow_forward(inputs, w1t, b1t, w2t, b2t)
    z = jax.block_until_ready(z)

    z_ref = reference_forward(inputs, perm, w1m, b1, w2m, b2)
    # f32 operands throughout (default-precision MXU dots on both sides) ->
    # tolerance tightened vs. the previous bf16-operand version.
    np.testing.assert_allclose(np.asarray(z), np.asarray(z_ref), rtol=1e-2, atol=1e-2)

    print("KERNEL_OK")
</pallas_src>

<mosaic_0001>
module attributes {stable_mosaic.version = 11 : i64} {
  func.func @nflow_kernel(%arg0: i32, %arg1: memref<32x512xf32, #tpu.memory_space<vmem>>, %arg2: memref<4x64x32xf32, #tpu.memory_space<vmem>>, %arg3: memref<4x64x1xf32, #tpu.memory_space<vmem>>, %arg4: memref<4x64x64xf32, #tpu.memory_space<vmem>>, %arg5: memref<4x64x1xf32, #tpu.memory_space<vmem>>, %arg6: memref<32x512xf32, #tpu.memory_space<vmem>>) attributes {dimension_semantics = [#tpu.dimension_semantics<parallel>], iteration_bounds = array<i64: 2>, scalar_prefetch = 0 : i64, scratch_operands = 0 : i64, tpu.core_type = #tpu.core_type<tc>, window_params = [{transform_indices = @transform_0, window_bounds = array<i64: 32, 512>}, {pipeline_mode = #tpu.pipeline_mode<synchronous>, transform_indices = @transform_1, window_bounds = array<i64: 4, 64, 32>}, {pipeline_mode = #tpu.pipeline_mode<synchronous>, transform_indices = @transform_2, window_bounds = array<i64: 4, 64, 1>}, {pipeline_mode = #tpu.pipeline_mode<synchronous>, transform_indices = @transform_3, window_bounds = array<i64: 4, 64, 64>}, {pipeline_mode = #tpu.pipeline_mode<synchronous>, transform_indices = @transform_4, window_bounds = array<i64: 4, 64, 1>}, {transform_indices = @transform_5, window_bounds = array<i64: 32, 512>}]} {
    %c0 = arith.constant 0 : index
    %c0_0 = arith.constant 0 : index
    %0 = vector.load %arg1[%c0, %c0_0] : memref<32x512xf32, #tpu.memory_space<vmem>>, vector<32x512xf32>
    %c0_1 = arith.constant 0 : index
    %c0_2 = arith.constant 0 : index
    %c0_3 = arith.constant 0 : index
    %1 = vector.load %arg2[%c0_1, %c0_2, %c0_3] : memref<4x64x32xf32, #tpu.memory_space<vmem>>, vector<1x64x32xf32>
    %2 = vector.shape_cast %1 : vector<1x64x32xf32> to vector<64x32xf32>
    %cst = arith.constant dense<0.000000e+00> : vector<64x512xf32>
    %3 = tpu.matmul %2, %0, %cst {dimension_numbers = #tpu.dot_dimension_numbers<[1], [0], [0], [1], [0, 0, 1, 1], [], []>} : vector<64x32xf32>, vector<32x512xf32>, vector<64x512xf32> -> vector<64x512xf32>
    %c0_4 = arith.constant 0 : index
    %c0_5 = arith.constant 0 : index
    %c0_6 = arith.constant 0 : index
    %4 = vector.load %arg3[%c0_4, %c0_5, %c0_6] : memref<4x64x1xf32, #tpu.memory_space<vmem>>, vector<1x64x1xf32>
    %5 = vector.shape_cast %4 : vector<1x64x1xf32> to vector<64x1xf32>
    %6 = vector.broadcast %5 : vector<64x1xf32> to vector<64x512xf32>
    %7 = arith.addf %3, %6 : vector<64x512xf32>
    %cst_7 = arith.constant 0.000000e+00 : f32
    %8 = vector.broadcast %cst_7 : f32 to vector<64x512xf32>
    %9 = arith.maximumf %7, %8 : vector<64x512xf32>
    %c0_8 = arith.constant 0 : index
    %c0_9 = arith.constant 0 : index
    %c0_10 = arith.constant 0 : index
    %10 = vector.load %arg4[%c0_8, %c0_9, %c0_10] : memref<4x64x64xf32, #tpu.memory_space<vmem>>, vector<1x64x64xf32>
    %11 = vector.shape_cast %10 : vector<1x64x64xf32> to vector<64x64xf32>
    %cst_11 = arith.constant dense<0.000000e+00> : vector<64x512xf32>
    %12 = tpu.matmul %11, %9, %cst_11 {dimension_numbers = #tpu.dot_dimension_numbers<[1], [0], [0], [1], [0, 0, 1, 1], [], []>} : vector<64x64xf32>, vector<64x512xf32>, vector<64x512xf32> -> vector<64x512xf32>
    %c0_12 = arith.constant 0 : index
    %c0_13 = arith.constant 0 : index
    %c0_14 = arith.constant 0 : index
    %13 = vector.load %arg5[%c0_12, %c0_13, %c0_14] : memref<4x64x1xf32, #tpu.memory_space<vmem>>, vector<1x64x1xf32>
    %14 = vector.shape_cast %13 : vector<1x64x1xf32> to vector<64x1xf32>
    %15 = vector.broadcast %14 : vector<64x1xf32> to vector<64x512xf32>
    %16 = arith.addf %12, %15 : vector<64x512xf32>
    %17 = vector.extract_strided_slice %16 {offsets = [0, 0], sizes = [32, 512], strides = [1, 1]} : vector<64x512xf32> to vector<32x512xf32>
    %18 = vector.extract_strided_slice %16 {offsets = [32, 0], sizes = [32, 512], strides = [1, 1]} : vector<64x512xf32> to vector<32x512xf32>
    %cst_15 = arith.constant 2.000000e+00 : f32
    %19 = vector.broadcast %cst_15 : f32 to vector<32x512xf32>
    %20 = arith.addf %17, %19 : vector<32x512xf32>
    %21 = arith.negf %20 : vector<32x512xf32>
    %22 = math.exp %21 : vector<32x512xf32>
    %cst_16 = arith.constant 1.000000e+00 : f32
    %23 = vector.broadcast %cst_16 : f32 to vector<32x512xf32>
    %24 = arith.addf %23, %22 : vector<32x512xf32>
    %25 = arith.divf %23, %24 : vector<32x512xf32>
    %cst_17 = arith.constant 1.000000e-03 : f32
    %26 = vector.broadcast %cst_17 : f32 to vector<32x512xf32>
    %27 = arith.addf %25, %26 : vector<32x512xf32>
    %28 = arith.mulf %27, %0 : vector<32x512xf32>
    %29 = arith.addf %28, %18 : vector<32x512xf32>
    %c1 = arith.constant 1 : index
    %c0_18 = arith.constant 0 : index
    %c0_19 = arith.constant 0 : index
    %30 = vector.load %arg2[%c1, %c0_18, %c0_19] : memref<4x64x32xf32, #tpu.memory_space<vmem>>, vector<1x64x32xf32>
    %31 = vector.shape_cast %30 : vector<1x64x32xf32> to vector<64x32xf32>
    %cst_20 = arith.constant dense<0.000000e+00> : vector<64x512xf32>
    %32 = tpu.matmul %31, %29, %cst_20 {dimension_numbers = #tpu.dot_dimension_numbers<[1], [0], [0], [1], [0, 0, 1, 1], [], []>} : vector<64x32xf32>, vector<32x512xf32>, vector<64x512xf32> -> vector<64x512xf32>
    %c1_21 = arith.constant 1 : index
    %c0_22 = arith.constant 0 : index
    %c0_23 = arith.constant 0 : index
    %33 = vector.load %arg3[%c1_21, %c0_22, %c0_23] : memref<4x64x1xf32, #tpu.memory_space<vmem>>, vector<1x64x1xf32>
    %34 = vector.shape_cast %33 : vector<1x64x1xf32> to vector<64x1xf32>
    %35 = vector.broadcast %34 : vector<64x1xf32> to vector<64x512xf32>
    %36 = arith.addf %32, %35 : vector<64x512xf32>
    %cst_24 = arith.constant 0.000000e+00 : f32
    %37 = vector.broadcast %cst_24 : f32 to vector<64x512xf32>
    %38 = arith.maximumf %36, %37 : vector<64x512xf32>
    %c1_25 = arith.constant 1 : index
    %c0_26 = arith.constant 0 : index
    %c0_27 = arith.constant 0 : index
    %39 = vector.load %arg4[%c1_25, %c0_26, %c0_27] : memref<4x64x64xf32, #tpu.memory_space<vmem>>, vector<1x64x64xf32>
    %40 = vector.shape_cast %39 : vector<1x64x64xf32> to vector<64x64xf32>
    %cst_28 = arith.constant dense<0.000000e+00> : vector<64x512xf32>
    %41 = tpu.matmul %40, %38, %cst_28 {dimension_numbers = #tpu.dot_dimension_numbers<[1], [0], [0], [1], [0, 0, 1, 1], [], []>} : vector<64x64xf32>, vector<64x512xf32>, vector<64x512xf32> -> vector<64x512xf32>
    %c1_29 = arith.constant 1 : index
    %c0_30 = arith.constant 0 : index
    %c0_31 = arith.constant 0 : index
    %42 = vector.load %arg5[%c1_29, %c0_30, %c0_31] : memref<4x64x1xf32, #tpu.memory_space<vmem>>, vector<1x64x1xf32>
    %43 = vector.shape_cast %42 : vector<1x64x1xf32> to vector<64x1xf32>
    %44 = vector.broadcast %43 : vector<64x1xf32> to vector<64x512xf32>
    %45 = arith.addf %41, %44 : vector<64x512xf32>
    %46 = vector.extract_strided_slice %45 {offsets = [0, 0], sizes = [32, 512], strides = [1, 1]} : vector<64x512xf32> to vector<32x512xf32>
    %47 = vector.extract_strided_slice %45 {offsets = [32, 0], sizes = [32, 512], strides = [1, 1]} : vector<64x512xf32> to vector<32x512xf32>
    %cst_32 = arith.constant 2.000000e+00 : f32
    %48 = vector.broadcast %cst_32 : f32 to vector<32x512xf32>
    %49 = arith.addf %46, %48 : vector<32x512xf32>
    %50 = arith.negf %49 : vector<32x512xf32>
    %51 = math.exp %50 : vector<32x512xf32>
    %cst_33 = arith.constant 1.000000e+00 : f32
    %52 = vector.broadcast %cst_33 : f32 to vector<32x512xf32>
    %53 = arith.addf %52, %51 : vector<32x512xf32>
    %54 = arith.divf %52, %53 : vector<32x512xf32>
    %cst_34 = arith.constant 1.000000e-03 : f32
    %55 = vector.broadcast %cst_34 : f32 to vector<32x512xf32>
    %56 = arith.addf %54, %55 : vector<32x512xf32>
    %57 = arith.mulf %56, %29 : vector<32x512xf32>
    %58 = arith.addf %57, %47 : vector<32x512xf32>
    %c2 = arith.constant 2 : index
    %c0_35 = arith.constant 0 : index
    %c0_36 = arith.constant 0 : index
    %59 = vector.load %arg2[%c2, %c0_35, %c0_36] : memref<4x64x32xf32, #tpu.memory_space<vmem>>, vector<1x64x32xf32>
    %60 = vector.shape_cast %59 : vector<1x64x32xf32> to vector<64x32xf32>
    %cst_37 = arith.constant dense<0.000000e+00> : vector<64x512xf32>
    %61 = tpu.matmul %60, %58, %cst_37 {dimension_numbers = #tpu.dot_dimension_numbers<[1], [0], [0], [1], [0, 0, 1, 1], [], []>} : vector<64x32xf32>, vector<32x512xf32>, vector<64x512xf32> -> vector<64x512xf32>
    %c2_38 = arith.constant 2 : index
    %c0_39 = arith.constant 0 : index
    %c0_40 = arith.constant 0 : index
    %62 = vector.load %arg3[%c2_38, %c0_39, %c0_40] : memref<4x64x1xf32, #tpu.memory_space<vmem>>, vector<1x64x1xf32>
    %63 = vector.shape_cast %62 : vector<1x64x1xf32> to vector<64x1xf32>
    %64 = vector.broadcast %63 : vector<64x1xf32> to vector<64x512xf32>
    %65 = arith.addf %61, %64 : vector<64x512xf32>
    %cst_41 = arith.constant 0.000000e+00 : f32
    %66 = vector.broadcast %cst_41 : f32 to vector<64x512xf32>
    %67 = arith.maximumf %65, %66 : vector<64x512xf32>
    %c2_42 = arith.constant 2 : index
    %c0_43 = arith.constant 0 : index
    %c0_44 = arith.constant 0 : index
    %68 = vector.load %arg4[%c2_42, %c0_43, %c0_44] : memref<4x64x64xf32, #tpu.memory_space<vmem>>, vector<1x64x64xf32>
    %69 = vector.shape_cast %68 : vector<1x64x64xf32> to vector<64x64xf32>
    %cst_45 = arith.constant dense<0.000000e+00> : vector<64x512xf32>
    %70 = tpu.matmul %69, %67, %cst_45 {dimension_numbers = #tpu.dot_dimension_numbers<[1], [0], [0], [1], [0, 0, 1, 1], [], []>} : vector<64x64xf32>, vector<64x512xf32>, vector<64x512xf32> -> vector<64x512xf32>
    %c2_46 = arith.constant 2 : index
    %c0_47 = arith.constant 0 : index
    %c0_48 = arith.constant 0 : index
    %71 = vector.load %arg5[%c2_46, %c0_47, %c0_48] : memref<4x64x1xf32, #tpu.memory_space<vmem>>, vector<1x64x1xf32>
    %72 = vector.shape_cast %71 : vector<1x64x1xf32> to vector<64x1xf32>
    %73 = vector.broadcast %72 : vector<64x1xf32> to vector<64x512xf32>
    %74 = arith.addf %70, %73 : vector<64x512xf32>
    %75 = vector.extract_strided_slice %74 {offsets = [0, 0], sizes = [32, 512], strides = [1, 1]} : vector<64x512xf32> to vector<32x512xf32>
    %76 = vector.extract_strided_slice %74 {offsets = [32, 0], sizes = [32, 512], strides = [1, 1]} : vector<64x512xf32> to vector<32x512xf32>
    %cst_49 = arith.constant 2.000000e+00 : f32
    %77 = vector.broadcast %cst_49 : f32 to vector<32x512xf32>
    %78 = arith.addf %75, %77 : vector<32x512xf32>
    %79 = arith.negf %78 : vector<32x512xf32>
    %80 = math.exp %79 : vector<32x512xf32>
    %cst_50 = arith.constant 1.000000e+00 : f32
    %81 = vector.broadcast %cst_50 : f32 to vector<32x512xf32>
    %82 = arith.addf %81, %80 : vector<32x512xf32>
    %83 = arith.divf %81, %82 : vector<32x512xf32>
    %cst_51 = arith.constant 1.000000e-03 : f32
    %84 = vector.broadcast %cst_51 : f32 to vector<32x512xf32>
    %85 = arith.addf %83, %84 : vector<32x512xf32>
    %86 = arith.mulf %85, %58 : vector<32x512xf32>
    %87 = arith.addf %86, %76 : vector<32x512xf32>
    %c3 = arith.constant 3 : index
    %c0_52 = arith.constant 0 : index
    %c0_53 = arith.constant 0 : index
    %88 = vector.load %arg2[%c3, %c0_52, %c0_53] : memref<4x64x32xf32, #tpu.memory_space<vmem>>, vector<1x64x32xf32>
    %89 = vector.shape_cast %88 : vector<1x64x32xf32> to vector<64x32xf32>
    %cst_54 = arith.constant dense<0.000000e+00> : vector<64x512xf32>
    %90 = tpu.matmul %89, %87, %cst_54 {dimension_numbers = #tpu.dot_dimension_numbers<[1], [0], [0], [1], [0, 0, 1, 1], [], []>} : vector<64x32xf32>, vector<32x512xf32>, vector<64x512xf32> -> vector<64x512xf32>
    %c3_55 = arith.constant 3 : index
    %c0_56 = arith.constant 0 : index
    %c0_57 = arith.constant 0 : index
    %91 = vector.load %arg3[%c3_55, %c0_56, %c0_57] : memref<4x64x1xf32, #tpu.memory_space<vmem>>, vector<1x64x1xf32>
    %92 = vector.shape_cast %91 : vector<1x64x1xf32> to vector<64x1xf32>
    %93 = vector.broadcast %92 : vector<64x1xf32> to vector<64x512xf32>
    %94 = arith.addf %90, %93 : vector<64x512xf32>
    %cst_58 = arith.constant 0.000000e+00 : f32
    %95 = vector.broadcast %cst_58 : f32 to vector<64x512xf32>
    %96 = arith.maximumf %94, %95 : vector<64x512xf32>
    %c3_59 = arith.constant 3 : index
    %c0_60 = arith.constant 0 : index
    %c0_61 = arith.constant 0 : index
    %97 = vector.load %arg4[%c3_59, %c0_60, %c0_61] : memref<4x64x64xf32, #tpu.memory_space<vmem>>, vector<1x64x64xf32>
    %98 = vector.shape_cast %97 : vector<1x64x64xf32> to vector<64x64xf32>
    %cst_62 = arith.constant dense<0.000000e+00> : vector<64x512xf32>
    %99 = tpu.matmul %98, %96, %cst_62 {dimension_numbers = #tpu.dot_dimension_numbers<[1], [0], [0], [1], [0, 0, 1, 1], [], []>} : vector<64x64xf32>, vector<64x512xf32>, vector<64x512xf32> -> vector<64x512xf32>
    %c3_63 = arith.constant 3 : index
    %c0_64 = arith.constant 0 : index
    %c0_65 = arith.constant 0 : index
    %100 = vector.load %arg5[%c3_63, %c0_64, %c0_65] : memref<4x64x1xf32, #tpu.memory_space<vmem>>, vector<1x64x1xf32>
    %101 = vector.shape_cast %100 : vector<1x64x1xf32> to vector<64x1xf32>
    %102 = vector.broadcast %101 : vector<64x1xf32> to vector<64x512xf32>
    %103 = arith.addf %99, %102 : vector<64x512xf32>
    %104 = vector.extract_strided_slice %103 {offsets = [0, 0], sizes = [32, 512], strides = [1, 1]} : vector<64x512xf32> to vector<32x512xf32>
    %105 = vector.extract_strided_slice %103 {offsets = [32, 0], sizes = [32, 512], strides = [1, 1]} : vector<64x512xf32> to vector<32x512xf32>
    %cst_66 = arith.constant 2.000000e+00 : f32
    %106 = vector.broadcast %cst_66 : f32 to vector<32x512xf32>
    %107 = arith.addf %104, %106 : vector<32x512xf32>
    %108 = arith.negf %107 : vector<32x512xf32>
    %109 = math.exp %108 : vector<32x512xf32>
    %cst_67 = arith.constant 1.000000e+00 : f32
    %110 = vector.broadcast %cst_67 : f32 to vector<32x512xf32>
    %111 = arith.addf %110, %109 : vector<32x512xf32>
    %112 = arith.divf %110, %111 : vector<32x512xf32>
    %cst_68 = arith.constant 1.000000e-03 : f32
    %113 = vector.broadcast %cst_68 : f32 to vector<32x512xf32>
    %114 = arith.addf %112, %113 : vector<32x512xf32>
    %115 = arith.mulf %114, %87 : vector<32x512xf32>
    %116 = arith.addf %115, %105 : vector<32x512xf32>
    %c0_69 = arith.constant 0 : index
    %c0_70 = arith.constant 0 : index
    %117 = vector.load %arg6[%c0_69, %c0_70] : memref<32x512xf32, #tpu.memory_space<vmem>>, vector<32x512xf32>
    tpu.vector_store %arg6[%c0_69, %c0_70], %116 {strides = array<i32>} : memref<32x512xf32, #tpu.memory_space<vmem>>, vector<32x512xf32>,
    return
  }
  func.func @transform_0(%arg0: i32) -> (i32, i32) {
    %c0_i32 = arith.constant 0 : i32
    %c0_i32_0 = arith.constant 0 : i32
    return %c0_i32, %arg0 : i32, i32
  }
  func.func @transform_1(%arg0: i32) -> (i32, i32, i32) {
    %c0_i32 = arith.constant 0 : i32
    %c0_i32_0 = arith.constant 0 : i32
    %c0_i32_1 = arith.constant 0 : i32
    %c0_i32_2 = arith.constant 0 : i32
    return %c0_i32, %c0_i32_0, %c0_i32_1 : i32, i32, i32
  }
  func.func @transform_2(%arg0: i32) -> (i32, i32, i32) {
    %c0_i32 = arith.constant 0 : i32
    %c0_i32_0 = arith.constant 0 : i32
    %c0_i32_1 = arith.constant 0 : i32
    %c0_i32_2 = arith.constant 0 : i32
    return %c0_i32, %c0_i32_0, %c0_i32_1 : i32, i32, i32
  }
  func.func @transform_3(%arg0: i32) -> (i32, i32, i32) {
    %c0_i32 = arith.constant 0 : i32
    %c0_i32_0 = arith.constant 0 : i32
    %c0_i32_1 = arith.constant 0 : i32
    %c0_i32_2 = arith.constant 0 : i32
    return %c0_i32, %c0_i32_0, %c0_i32_1 : i32, i32, i32
  }
  func.func @transform_4(%arg0: i32) -> (i32, i32, i32) {
    %c0_i32 = arith.constant 0 : i32
    %c0_i32_0 = arith.constant 0 : i32
    %c0_i32_1 = arith.constant 0 : i32
    %c0_i32_2 = arith.constant 0 : i32
    return %c0_i32, %c0_i32_0, %c0_i32_1 : i32, i32, i32
  }
  func.func @transform_5(%arg0: i32) -> (i32, i32) {
    %c0_i32 = arith.constant 0 : i32
    %c0_i32_0 = arith.constant 0 : i32
    return %c0_i32, %arg0 : i32, i32
  }
}

</mosaic_0001>

<bundles_post_ra>
// kernel: tpu_custom_call.1
= control target key start
LH: loop header
LB: loop body
LE: loop exit
PB: predicated region body
PF: predicated region fallthrough
CT: control target
= control target key end

     0   :  { %10 = vsyncpa [#allocation4], 0  ;;  %s5738_s0 = inlined_call_operand.vmem [shape: f32[32,1024], index: 0, kind: input, shape index: {}]   ;;  %s5739_s1 = inlined_call_operand.vmem [shape: f32[4,64,32], index: 1, kind: input, shape index: {}]   ;;  %s5740_s2 = inlined_call_operand.vmem [shape: f32[4,64,1], index: 2, kind: input, shape index: {}]   ;;  %s5741_s3 = inlined_call_operand.vmem [shape: f32[4,64,64], index: 3, kind: input, shape index: {}]   ;;  %s5742_s4 = inlined_call_operand.vmem [shape: f32[4,64,1], index: 4, kind: input, shape index: {}]   ;;  %s5743_s5 = inlined_call_operand.hbm [shape: f32[32,1024], index: 5, kind: output, shape index: {}]  }
   0x1   :  { %12 = vsyncpa [#allocation4 + $0x1], 0  ;;  %s4533_s18 = smov 0   ;;  %s4535_s19 = smov 0  }
   0x2   :  { %s4537_s20 = smov 0   ;;  %s4539_s21 = smov 0  }
   0x3 LB: > { %s3618_s22 = sadd.s32 4294967295, %s4495_s21   ;;  %s3619_s23 = sadd.s32 4294967294, %s4495_s21   ;;  %s4495_s21 = sphi %s4539_s21, %s5749_s21   ;;  %s4491_s20 = sphi %s4537_s20, %s5748_s20   ;;  %s4487_s19 = sphi %s4535_s19, %s5747_s19   ;;  %s4483_s18 = sphi %s4533_s18, %s5746_s18  }
   0x4   : > { %s4556_s24 = sadd.s32 1, %s4495_s21   ;;  %s25_s25 = sadd.s32 1, %s4491_s20 }
   0x5   : > { %s22_s26 = ssub.s32 %s4495_s21, %s4556_s24  ;;  %p32_p0 = scmp.ne.s32.totalorder %s4491_s20, %s4487_s19 }
   0x6   : > { %p23_p1 = scmp.eq.s32.totalorder %s22_s26, 0  ;;  %p33_p2 = scmp.eq.s32.totalorder %s4495_s21, 0 }
   0x7   : > { %p146_p3 = scmp.eq.s32.totalorder %s3618_s22, 1  ;;  %p151_p4 = scmp.ne.s32.totalorder %s4487_s19, %s4483_s18 }
   0x8   : > { %s4569_s27 = scalar_select %p23_p1, %s4491_s20, %s25_s25  }
   0x9   : > { %p34_p5 = por %p33_p2, %p32_p0  ;;  %p4571_p6 = por %p146_p3, %p32_p0 }
   0xa   : > { %p152_p7 = scmp.eq.s32.totalorder %s3619_s23, 1  ;;  %p3621_p9 = scmp.ge.s32.totalorder %s4495_s21, 2 }
   0xc   : > { %p4575_p8 = por %p152_p7, %p151_p4  ;;  %180 = sbr.rel (%p3621_p9) target bundleno = 31 (0x1f), region = 32 }
  0x13   : > { %183 = sbr.rel (!%p34_p5) target bundleno = 31 (0x1f), region = 36  ;;  %s185_s30 = sand.u32 (%p34_p5), 1, %s4491_s20  }
  0x14   : > { %s3921_s6 = sshll.u32 (%p34_p5), %s4495_s21, 5  ;;  %s3622_s7 = sshll.u32 (%p34_p5), %s185_s30, 7 }
  0x15   : > { %s4587_s10 = scalar_lea.vmem (%p34_p5), %s5738_s0, %s3921_s6  ;;  %s187_s11 = scalar_lea.vmem (%p34_p5), [#allocation2], %s3622_s7 }
  0x16   : > { %v203_v0 = vld [vmem:[%s4587_s10] sm:$0xff] (%p34_p5)  ;;  %v205_v1 = vld [vmem:[%s4587_s10 + $0x8] sm:$0xff] (%p34_p5)  ;;  %v207_v2 = vld [vmem:[%s4587_s10 + $0x10] sm:$0xff] (%p34_p5) }
  0x17   : > { %204 = vst [vmem:[%s187_s11] sm:$0xff] (%p34_p5), %v203_v0  ;;  %206 = vst [vmem:[%s187_s11 + $0x8] sm:$0xff] (%p34_p5), %v205_v1  ;;  %v209_v3 = vld [vmem:[%s4587_s10 + $0x18] sm:$0xff] (%p34_p5)  ;;  %v211_v4 = vld [vmem:[%s4587_s10 + $0x40] sm:$0xff] (%p34_p5) }
  0x18   : > { %208 = vst [vmem:[%s187_s11 + $0x10] sm:$0xff] (%p34_p5), %v207_v2  ;;  %v213_v5 = vld [vmem:[%s4587_s10 + $0x48] sm:$0xff] (%p34_p5)  ;;  %210 = vst [vmem:[%s187_s11 + $0x18] sm:$0xff] (%p34_p5), %v209_v3  ;;  %v215_v6 = vld [vmem:[%s4587_s10 + $0x50] sm:$0xff] (%p34_p5) }
  0x19   : > { %212 = vst [vmem:[%s187_s11 + $0x20] sm:$0xff] (%p34_p5), %v211_v4  ;;  %214 = vst [vmem:[%s187_s11 + $0x28] sm:$0xff] (%p34_p5), %v213_v5  ;;  %v217_v7 = vld [vmem:[%s4587_s10 + $0x58] sm:$0xff] (%p34_p5)  ;;  %v219_v8 = vld [vmem:[%s4587_s10 + $0x80] sm:$0xff] (%p34_p5) }
  0x1a   : > { %216 = vst [vmem:[%s187_s11 + $0x30] sm:$0xff] %v215_v6  ;;  %218 = vst [vmem:[%s187_s11 + $0x38] sm:$0xff] %v217_v7  ;;  %v221_v9 = vld [vmem:[%s4587_s10 + $0x88] sm:$0xff]  ;;  %v223_v10 = vld [vmem:[%s4587_s10 + $0x90] sm:$0xff] }
  0x1b   : > { %220 = vst [vmem:[%s187_s11 + $0x40] sm:$0xff] %v219_v8  ;;  %v225_v11 = vld [vmem:[%s4587_s10 + $0x98] sm:$0xff]  ;;  %222 = vst [vmem:[%s187_s11 + $0x48] sm:$0xff] %v221_v9  ;;  %v227_v12 = vld [vmem:[%s4587_s10 + $0xc0] sm:$0xff] }
  0x1c   : > { %224 = vst [vmem:[%s187_s11 + $0x50] sm:$0xff] %v223_v10  ;;  %226 = vst [vmem:[%s187_s11 + $0x58] sm:$0xff] %v225_v11  ;;  %v229_v13 = vld [vmem:[%s4587_s10 + $0xc8] sm:$0xff]  ;;  %v231_v14 = vld [vmem:[%s4587_s10 + $0xd0] sm:$0xff] }
  0x1d   : > { %228 = vst [vmem:[%s187_s11 + $0x60] sm:$0xff] %v227_v12  ;;  %230 = vst [vmem:[%s187_s11 + $0x68] sm:$0xff] %v229_v13  ;;  %v233_v15 = vld [vmem:[%s4587_s10 + $0xd8] sm:$0xff] }
  0x1e   : > { %232 = vst [vmem:[%s187_s11 + $0x70] sm:$0xff] %v231_v14  ;;  %234 = vst [vmem:[%s187_s11 + $0x78] sm:$0xff] %v233_v15 }
  0x1f PF: > { %p3625_p10 = scmp.ge.s32.totalorder %s4495_s21, 1  ;;  %p239_p11 = scmp.lt.s32.totalorder %s4495_s21, 3 }
  0x21   : > { %p240_p12 = pnand %p3625_p10, %p239_p11 }
  0x22   : > { %v301_v16 = vld [vmem:[%s5740_s2 + $0x10] sm:$0xff] (!%p240_p12)  ;;  %v299_v17 = vld [vmem:[%s5740_s2] sm:$0xff] (!%p240_p12)  ;;  %s246_s16 = sand.u32 (!%p240_p12), 1, %s4487_s19   ;;  %v4497_v18 = vmov (!%p240_p12), 0   ;;  %v302_v19 = vld [vmem:[%s5740_s2 + $0x18] sm:$0xff] (!%p240_p12)  ;;  %v4498_v24 = vmov (!%p240_p12), 0.0  }
  0x23   : > { %243 = sbr.rel (%p240_p12) target bundleno = 2189 (0x88d), region = 59  ;;  %4160 = vset.pattern.permute.xlu1 (!%p240_p12), %v4497_v18  ;;  %4159 = vset.pattern.permute.xlu0 (!%p240_p12), %v4497_v18  ;;  %s4616_s17 = sshll.u32 (!%p240_p12), %s246_s16, 7  ;;  %v300_v20 = vld [vmem:[%s5740_s2 + $0x8] sm:$0xff] (!%p240_p12)  ;;  %v303_v34 = vld [vmem:[%s5740_s2 + $0x20] sm:$0xff] (!%p240_p12)  ;;  %v306_v48 = vld [vmem:[%s5740_s2 + $0x38] sm:$0xff] (!%p240_p12)  ;;  %vm347_vm0 = vcmask (!%p240_p12), 261120  }
  0x24   : > { %319 = vperm.xlu1 (!%p240_p12), %4160, %v301_v16   ;;  %309 = vperm.xlu0 (!%p240_p12), %4159, %v299_v17   ;;  %s4625_s6 = scalar_lea.vmem (!%p240_p12), [#allocation2], %s4616_s17  ;;  %v304_v33 = vld [vmem:[%s5740_s2 + $0x28] sm:$0xff] (!%p240_p12)  ;;  %v305_v49 = vld [vmem:[%s5740_s2 + $0x30] sm:$0xff] (!%p240_p12)  ;;  %v291_v50 = vld [vmem:[%s5739_s1] sm:$0xff] (!%p240_p12)  ;;  %vm686_vm1 = vcmask (!%p240_p12), 523264   ;;  %s5642_s14 = scalar_lea.vmem (!%p240_p12), [#allocation3], %s4616_s17 }
  0x25   : > { %v276_v21 = vld [vmem:[%s4625_s6 + $0x8] sm:$0xff] (!%p240_p12)  ;;  %v278_v23 = vld [vmem:[%s4625_s6 + $0x18] sm:$0xff] (!%p240_p12)  ;;  %436 = vmatprep.mubr.f32.mxu0 (!%p240_p12), %v4498_v24  ;;  %549 = vmatprep.mubr.f32.mxu1 (!%p240_p12), %v4498_v24  ;;  %v275_v27 = vld [vmem:[%s4625_s6] sm:$0xff] (!%p240_p12)  ;;  %s3922_s17 = sshll.u32 (!%p240_p12), %s3618_s22, 9  ;;  %s3551_s15 = sshll.u32 (!%p240_p12), %s5642_s14, 4  ;;  %s5689_s15 = int_to_ptr.vmem [resolvable:$true] %s3551_s15 }
  0x26   : > { %v280_v22 = vld [vmem:[%s4625_s6 + $0x28] sm:$0xff] (!%p240_p12)  ;;  %v282_v26 = vld [vmem:[%s4625_s6 + $0x38] sm:$0xff] (!%p240_p12)  ;;  %v279_v28 = vld [vmem:[%s4625_s6 + $0x20] sm:$0xff] (!%p240_p12)  ;;  %s5687_s23 = scalar_lea.hbm (!%p240_p12), %s5743_s5, %s3922_s17  ;;  %s5696_s25 = scalar_lea.sflag (!%p240_p12), [#allocation4], %s246_s16 }
  0x27   : > { %v3923_v25 = vpack.c.bf16 (!%p240_p12), %v280_v22, %v276_v21  ;;  %v3931_v29 = vpack.c.bf16 (!%p240_p12), %v282_v26, %v278_v23  ;;  %v3925_v30 = vpack.c.bf16 (!%p240_p12), %v279_v28, %v275_v27  ;;  %v277_v31 = vld [vmem:[%s4625_s6 + $0x10] sm:$0xff] (!%p240_p12)  ;;  %v284_v35 = vld [vmem:[%s4625_s6 + $0x48] sm:$0xff] (!%p240_p12)  ;;  %v286_v38 = vld [vmem:[%s4625_s6 + $0x58] sm:$0xff] (!%p240_p12)  ;;  %s4433_s26 = scalar_lea.vmem (!%p240_p12), %s5689_s15, 2048  ;;  %s4499_s30 = smov (!%p240_p12), [#allocation3]  }
  0x28   : > { %v281_v32 = vld [vmem:[%s4625_s6 + $0x30] sm:$0xff] (!%p240_p12)  ;;  %324 = vperm.xlu1 (!%p240_p12), %4160, %v302_v19   ;;  %314 = vperm.xlu0 (!%p240_p12), %4159, %v300_v20   ;;  %v288_v37 = vld [vmem:[%s4625_s6 + $0x68] sm:$0xff] (!%p240_p12)  ;;  %v290_v39 = vld [vmem:[%s4625_s6 + $0x78] sm:$0xff] (!%p240_p12)  ;;  %p4434_p13 = scmp.ne.s32.totalorder (!%p240_p12), %s5689_s15, %s4433_s26  ;;  %s4437_s7 = sshll.u32 (!%p240_p12), %s4499_s30, 4  ;;  %s4438_s7 = int_to_ptr.vmem [resolvable:$false] %s4437_s7 }
  0x29   : > { %v3933_v36 = vpack.c.bf16 (!%p240_p12), %v281_v32, %v277_v31  ;;  %3924 = vmatprep.subr.bf16.mxu0 (!%p240_p12), %v3923_v25  ;;  %3932 = vmatprep.subr.bf16.mxu1 (!%p240_p12), %v3931_v29  ;;  %v3927_v40 = vpack.c.bf16 (!%p240_p12), %v288_v37, %v284_v35  ;;  %v3935_v41 = vpack.c.bf16 (!%p240_p12), %v290_v39, %v286_v38  ;;  %v283_v42 = vld [vmem:[%s4625_s6 + $0x40] sm:$0xff] (!%p240_p12)  ;;  %v285_v44 = vld [vmem:[%s4625_s6 + $0x50] sm:$0xff] (!%p240_p12)  ;;  %v639_v51 = vld [vmem:[%s5742_s4 + $0x8] sm:$0xff] (!%p240_p12)  ;;  %s4439_s8 = scalar_lea.vmem (!%p240_p12), %s4438_s7, 4096  ;;  %p4440_p2 = scmp.lt.s32.totalorder (!%p240_p12), %s5689_s15, %s4438_s7 }
  0x2a   : > { %v287_v43 = vld [vmem:[%s4625_s6 + $0x60] sm:$0xff]  ;;  %3926 = vmatpush1.bf16.msra.mxu0 %v3925_v30  ;;  %v289_v46 = vld [vmem:[%s4625_s6 + $0x70] sm:$0xff]  ;;  %v292_v53 = vld [vmem:[%s5739_s1 + $0x8] sm:$0xff]  ;;  %p4435_p0 = pnand %p4434_p13, %p4571_p6  ;;  %p4441_p3 = scmp.lt.s32.totalorder %s4439_s8, %s4433_s26 }
  0x2b   : > { %3934 = vmatpush1.bf16.msra.mxu1 %v3933_v36  ;;  %v3929_v45 = vpack.c.bf16 %v287_v43, %v283_v42  ;;  %3928 = vmatprep.subr.bf16.mxu0 %v3927_v40  ;;  %v3937_v47 = vpack.c.bf16 %v289_v46, %v285_v44  ;;  %v638_v52 = vld [vmem:[%s5742_s4] sm:$0xff]  ;;  %v641_v54 = vld [vmem:[%s5742_s4 + $0x18] sm:$0xff]  ;;  %v640_v55 = vld [vmem:[%s5742_s4 + $0x10] sm:$0xff] }
  0x2c   : > { %3936 = vmatprep.subr.bf16.mxu1 %v3935_v41  ;;  %334 = vperm.xlu1 %4160, %v304_v33   ;;  %v293_v56 = vld [vmem:[%s5739_s1 + $0x10] sm:$0xff]  ;;  %v643_v57 = vld [vmem:[%s5742_s4 + $0x28] sm:$0xff]  ;;  %v642_v58 = vld [vmem:[%s5742_s4 + $0x20] sm:$0xff]  ;;  %p4436_p1 = pneg %p4435_p0  ;;  %p4442_p4 = por %p4441_p3, %p4440_p2 }
  0x2d   : > { %329 = vperm.xlu0 %4159, %v303_v34   ;;  %v294_v59 = vld [vmem:[%s5739_s1 + $0x18] sm:$0xff]  ;;  %v644_v61 = vld [vmem:[%s5742_s4 + $0x30] sm:$0xff]  ;;  %v295_v62 = vld [vmem:[%s5739_s1 + $0x20] sm:$0xff] }
  0x2e   : > { %3930 = vmatpush1.bf16.msra.mxu0 %v3929_v45  ;;  %v645_v60 = vld [vmem:[%s5742_s4 + $0x38] sm:$0xff]  ;;  %v3685_v63 = vld [vmem:[%s5740_s2 + $0x48] sm:$0xff]  ;;  %v3684_v0 = vld [vmem:[%s5740_s2 + $0x40] sm:$0xff]  ;;  %p4443_p5 = pnand %p4442_p4, %p4436_p1 }
  0x2f   : > { %3938 = vmatpush1.bf16.msra.mxu1 %v3937_v47  ;;  %v296_v1 = vld [vmem:[%s5739_s1 + $0x28] sm:$0xff]  ;;  %v3687_v2 = vld [vmem:[%s5740_s2 + $0x58] sm:$0xff]  ;;  %v3686_v3 = vld [vmem:[%s5740_s2 + $0x50] sm:$0xff] }
  0x30   : > { %344 = vperm.xlu1 %4160, %v306_v48   ;;  %v297_v4 = vld [vmem:[%s5739_s1 + $0x30] sm:$0xff]  ;;  %v3689_v5 = vld [vmem:[%s5740_s2 + $0x68] sm:$0xff]  ;;  %v3688_v6 = vld [vmem:[%s5740_s2 + $0x60] sm:$0xff] }
  0x31   : > { %339 = vperm.xlu0 %4159, %v305_v49   ;;  %3628 = vmatmul.mubr.msk.f32.vlgmr.msra.gmra.mrb[0].mxu0 %vm347_vm0, %v291_v50  ;;  %v298_v7 = vld [vmem:[%s5739_s1 + $0x38] sm:$0xff]  ;;  %v3690_v9 = vld [vmem:[%s5740_s2 + $0x70] sm:$0xff]  ;;  %v3717_v10 = vld [vmem:[%s5742_s4 + $0x48] sm:$0xff] }
  0x32   : > { %3636 = vmatmul.mubr.msk.f32.vlgmr.msra.gmra.mrb[0].mxu1 %vm347_vm0, %v291_v50  ;;  %442 = vmatprep.mubr.f32.mxu0 %v4498_v24  ;;  %v3691_v8 = vld [vmem:[%s5740_s2 + $0x78] sm:$0xff]  ;;  %v3716_v11 = vld [vmem:[%s5742_s4 + $0x40] sm:$0xff]  ;;  %v3718_v13 = vld [vmem:[%s5742_s4 + $0x50] sm:$0xff] }
  0x33   : > { %555 = vmatprep.mubr.f32.mxu1 %v4498_v24  ;;  %v3719_v12 = vld [vmem:[%s5742_s4 + $0x58] sm:$0xff]  ;;  %v3721_v14 = vld [vmem:[%s5742_s4 + $0x68] sm:$0xff]  ;;  %v3720_v15 = vld [vmem:[%s5742_s4 + $0x60] sm:$0xff] }
  0x34   : > { %653 = vperm.xlu1 %4160, %v639_v51   ;;  %v3723_v16 = vld [vmem:[%s5742_s4 + $0x78] sm:$0xff]  ;;  %v3722_v17 = vld [vmem:[%s5742_s4 + $0x70] sm:$0xff]  ;;  %v3765_v18 = vld [vmem:[%s5740_s2 + $0x88] sm:$0xff] }
  0x35   : > { %648 = vperm.xlu0 %4159, %v638_v52   ;;  %3629 = vmatmul.mubr.msk.f32.gmra.mrb[2].mxu0 %vm347_vm0, %v292_v53  ;;  %v3764_v19 = vld [vmem:[%s5740_s2 + $0x80] sm:$0xff]  ;;  %v3767_v20 = vld [vmem:[%s5740_s2 + $0x98] sm:$0xff]  ;;  %v3766_v21 = vld [vmem:[%s5740_s2 + $0x90] sm:$0xff] }
  0x36   : > { %3637 = vmatmul.mubr.msk.f32.gmra.mrb[2].mxu1 %vm347_vm0, %v292_v53  ;;  %448 = vmatprep.mubr.f32.mxu0 %v4498_v24  ;;  %v3769_v22 = vld [vmem:[%s5740_s2 + $0xa8] sm:$0xff]  ;;  %v3768_v23 = vld [vmem:[%s5740_s2 + $0xa0] sm:$0xff]  ;;  %v3771_v25 = vld [vmem:[%s5740_s2 + $0xb8] sm:$0xff] }
  0x37   : > { %561 = vmatprep.mubr.f32.mxu1 %v4498_v24  ;;  %v3770_v26 = vld [vmem:[%s5740_s2 + $0xb0] sm:$0xff]  ;;  %v3797_v27 = vld [vmem:[%s5742_s4 + $0x88] sm:$0xff]  ;;  %v3796_v28 = vld [vmem:[%s5742_s4 + $0x80] sm:$0xff] }
  0x38   : > { %663 = vperm.xlu1 %4160, %v641_v54   ;;  %v3799_v29 = vld [vmem:[%s5742_s4 + $0x98] sm:$0xff]  ;;  %v3798_v30 = vld [vmem:[%s5742_s4 + $0x90] sm:$0xff]  ;;  %v3801_v31 = vld [vmem:[%s5742_s4 + $0xa8] sm:$0xff] }
  0x39   : > { %658 = vperm.xlu0 %4159, %v640_v55   ;;  %3630 = vmatmul.mubr.msk.f32.gmra.mrb[4].mxu0 %vm347_vm0, %v293_v56  ;;  %v3800_v32 = vld [vmem:[%s5742_s4 + $0xa0] sm:$0xff]  ;;  %v3803_v33 = vld [vmem:[%s5742_s4 + $0xb8] sm:$0xff]  ;;  %v3802_v34 = vld [vmem:[%s5742_s4 + $0xb0] sm:$0xff] }
  0x3a   : > { %3638 = vmatmul.mubr.msk.f32.gmra.mrb[4].mxu1 %vm347_vm0, %v293_v56  ;;  %454 = vmatprep.mubr.f32.mxu0 %v4498_v24  ;;  %v3845_v35 = vld [vmem:[%s5740_s2 + $0xc8] sm:$0xff]  ;;  %v3844_v36 = vld [vmem:[%s5740_s2 + $0xc0] sm:$0xff]  ;;  %v3847_v37 = vld [vmem:[%s5740_s2 + $0xd8] sm:$0xff] }
  0x3b   : > { %567 = vmatprep.mubr.f32.mxu1 %v4498_v24  ;;  %v3846_v38 = vld [vmem:[%s5740_s2 + $0xd0] sm:$0xff]  ;;  %v3849_v39 = vld [vmem:[%s5740_s2 + $0xe8] sm:$0xff]  ;;  %v3848_v40 = vld [vmem:[%s5740_s2 + $0xe0] sm:$0xff] }
  0x3c   : > { %673 = vperm.xlu1 %4160, %v643_v57   ;;  %v3851_v41 = vld [vmem:[%s5740_s2 + $0xf8] sm:$0xff]  ;;  %v3850_v42 = vld [vmem:[%s5740_s2 + $0xf0] sm:$0xff]  ;;  %v3877_v43 = vld [vmem:[%s5742_s4 + $0xc8] sm:$0xff] }
  0x3d   : > { %668 = vperm.xlu0 %4159, %v642_v58   ;;  %3631 = vmatmul.mubr.msk.f32.gmra.mrb[6].mxu0 %vm347_vm0, %v294_v59  ;;  %v3876_v44 = vld [vmem:[%s5742_s4 + $0xc0] sm:$0xff]  ;;  %v3879_v45 = vld [vmem:[%s5742_s4 + $0xd8] sm:$0xff]  ;;  %v3878_v46 = vld [vmem:[%s5742_s4 + $0xd0] sm:$0xff] }
  0x3e   : > { %3639 = vmatmul.mubr.msk.f32.gmra.mrb[6].mxu1 %vm347_vm0, %v294_v59  ;;  %460 = vmatprep.mubr.f32.mxu0 %v4498_v24  ;;  %v3881_v47 = vld [vmem:[%s5742_s4 + $0xe8] sm:$0xff]  ;;  %v3880_v48 = vld [vmem:[%s5742_s4 + $0xe0] sm:$0xff]  ;;  %v3883_v49 = vld [vmem:[%s5742_s4 + $0xf8] sm:$0xff] }
  0x3f   : > { %573 = vmatprep.mubr.f32.mxu1 %v4498_v24  ;;  %v3882_v50 = vld [vmem:[%s5742_s4 + $0xf0] sm:$0xff] }
  0x40   : > { %683 = vperm.xlu1 %4160, %v645_v60  }
  0x41   : > { %678 = vperm.xlu0 %4159, %v644_v61   ;;  %3632 = vmatmul.mubr.msk.f32.gmra.mrb[8].mxu0 %vm347_vm0, %v295_v62 }
  0x42   : > { %3640 = vmatmul.mubr.msk.f32.gmra.mrb[8].mxu1 %vm347_vm0, %v295_v62  ;;  %466 = vmatprep.mubr.f32.mxu0 %v4498_v24 }
  0x43   : > { %579 = vmatprep.mubr.f32.mxu1 %v4498_v24 }
  0x44   : > { %1122 = vperm.xlu1 %4160, %v3685_v63  }
  0x45   : > { %1117 = vperm.xlu0 %4159, %v3684_v0   ;;  %3633 = vmatmul.mubr.msk.f32.gmra.mrb[10].mxu0 %vm347_vm0, %v296_v1 }
  0x46   : > { %3641 = vmatmul.mubr.msk.f32.gmra.mrb[10].mxu1 %vm347_vm0, %v296_v1  ;;  %472 = vmatprep.mubr.f32.mxu0 %v4498_v24 }
  0x47   : > { %585 = vmatprep.mubr.f32.mxu1 %v4498_v24 }
  0x48   : > { %1132 = vperm.xlu1 %4160, %v3687_v2  }
  0x49   : > { %1127 = vperm.xlu0 %4159, %v3686_v3   ;;  %3634 = vmatmul.mubr.msk.f32.gmra.mrb[12].mxu0 %vm347_vm0, %v297_v4 }
  0x4a   : > { %3642 = vmatmul.mubr.msk.f32.gmra.mrb[12].mxu1 %vm347_vm0, %v297_v4  ;;  %478 = vmatprep.mubr.f32.mxu0 %v4498_v24 }
  0x4b   : > { %591 = vmatprep.mubr.f32.mxu1 %v4498_v24 }
  0x4c   : > { %1142 = vperm.xlu1 %4160, %v3689_v5  }
  0x4d   : > { %1137 = vperm.xlu0 %4159, %v3688_v6   ;;  %3635 = vmatmul.mubr.msk.f32.gmra.mrb[14].mxu0 %vm347_vm0, %v298_v7 }
  0x4e   : > { %3643 = vmatmul.mubr.msk.f32.gmra.mrb[14].mxu1 %vm347_vm0, %v298_v7  ;;  %775 = vmatprep.mubr.f32.mxu0 %v4498_v24 }
  0x4f   : > { %888 = vmatprep.mubr.f32.mxu1 %v4498_v24 }
  0x50   : > { %1152 = vperm.xlu1 %4160, %v3691_v8  }
  0x51   : > { %1147 = vperm.xlu0 %4159, %v3690_v9  }
  0x54   : > { %1462 = vperm.xlu1 %4160, %v3717_v10  }
  0x55   : > { %1457 = vperm.xlu0 %4159, %v3716_v11  }
  0x58   : > { %1472 = vperm.xlu1 %4160, %v3719_v12  }
  0x59   : > { %1467 = vperm.xlu0 %4159, %v3718_v13  }
  0x5c   : > { %1482 = vperm.xlu1 %4160, %v3721_v14  }
  0x5d   : > { %1477 = vperm.xlu0 %4159, %v3720_v15  }
  0x60   : > { %1492 = vperm.xlu1 %4160, %v3723_v16  }
  0x61   : > { %1487 = vperm.xlu0 %4159, %v3722_v17  }
  0x64   : > { %1930 = vperm.xlu1 %4160, %v3765_v18  }
  0x65   : > { %1925 = vperm.xlu0 %4159, %v3764_v19  }
  0x68   : > { %1940 = vperm.xlu1 %4160, %v3767_v20  }
  0x69   : > { %1935 = vperm.xlu0 %4159, %v3766_v21  }
  0x6c   : > { %1950 = vperm.xlu1 %4160, %v3769_v22  }
  0x6d   : > { %1945 = vperm.xlu0 %4159, %v3768_v23  }
  0x70   : > { %1960 = vperm.xlu1 %4160, %v3771_v25  }
  0x71   : > { %1955 = vperm.xlu0 %4159, %v3770_v26  }
  0x74   : > { %2270 = vperm.xlu1 %4160, %v3797_v27  }
  0x75   : > { %2265 = vperm.xlu0 %4159, %v3796_v28  }
  0x78   : > { %2280 = vperm.xlu1 %4160, %v3799_v29  }
  0x79   : > { %2275 = vperm.xlu0 %4159, %v3798_v30  }
  0x7c   : > { %2290 = vperm.xlu1 %4160, %v3801_v31  }
  0x7d   : > { %2285 = vperm.xlu0 %4159, %v3800_v32  }
  0x80   : > { %2300 = vperm.xlu1 %4160, %v3803_v33  }
  0x81   : > { %2295 = vperm.xlu0 %4159, %v3802_v34  }
  0x84   : > { %2738 = vperm.xlu1 %4160, %v3845_v35  }
  0x85   : > { %2733 = vperm.xlu0 %4159, %v3844_v36  }
  0x88   : > { %2748 = vperm.xlu1 %4160, %v3847_v37  }
  0x89   : > { %2743 = vperm.xlu0 %4159, %v3846_v38  }
  0x8c   : > { %2758 = vperm.xlu1 %4160, %v3849_v39  }
  0x8d   : > { %2753 = vperm.xlu0 %4159, %v3848_v40  }
  0x90   : > { %2768 = vperm.xlu1 %4160, %v3851_v41  }
  0x91   : > { %2763 = vperm.xlu0 %4159, %v3850_v42  }
  0x94   : > { %3078 = vperm.xlu1 %4160, %v3877_v43  }
  0x95   : > { %3073 = vperm.xlu0 %4159, %v3876_v44  }
  0x98   : > { %3088 = vperm.xlu1 %4160, %v3879_v45  }
  0x99   : > { %3083 = vperm.xlu0 %4159, %v3878_v46  }
  0x9c   : > { %3098 = vperm.xlu1 %4160, %v3881_v47  }
  0x9d   : > { %3093 = vperm.xlu0 %4159, %v3880_v48  }
  0xa0   : > { %3108 = vperm.xlu1 %4160, %v3883_v49  }
  0xa1   : > { %3103 = vperm.xlu0 %4159, %v3882_v50  }
  0xa3   : > { %v310_v51 = vpop.permute.xlu0 %309  ;;  %v320_v56 = vpop.permute.xlu1 %319 }
  0xa7   : > { %v315_v57 = vpop.permute.xlu0 %314  ;;  %v325_v22 = vpop.permute.xlu1 %324 }
  0xac   : > { %v330_v50 = vpop.permute.xlu0 %329 }
 0x104   : > { %v438_v52 = vpop.f32.mrb[0].mxu0 }
 0x105   : > { %v551_v53 = vpop.f32.mrb[0].mxu1  ;;  %v440_v54 = vpop.f32.mrb[1].mxu0  ;;  %v439_v58 = vadd.f32 %v438_v52, %v310_v51 }
 0x106   : > { %v553_v55 = vpop.f32.mrb[1].mxu1  ;;  %v552_v59 = vadd.f32 %v551_v53, %v310_v51  ;;  %v441_v60 = vadd.f32 %v440_v54, %v310_v51  ;;  %v335_v53 = vpop.permute.xlu1 %334 }
 0x107   : > { %v554_v61 = vadd.f32 %v553_v55, %v310_v51  ;;  %v598_v6 = vmax.f32 %v439_v58, 0.0 }
 0x108   : > { %v444_v62 = vpop.f32.mrb[2].mxu0  ;;  %v600_v7 = vmax.f32 %v552_v59, 0.0  ;;  %v599_v10 = vmax.f32 %v441_v60, 0.0 }
 0x109   : > { %v557_v63 = vpop.f32.mrb[2].mxu1  ;;  %v445_v0 = vadd.f32 %v444_v62, %v315_v57  ;;  %v446_v2 = vpop.f32.mrb[3].mxu0  ;;  %v601_v11 = vmax.f32 %v554_v61, 0.0 }
 0x10a   : > { %v558_v1 = vadd.f32 %v557_v63, %v315_v57  ;;  %v559_v3 = vpop.f32.mrb[3].mxu1  ;;  %v447_v4 = vadd.f32 %v446_v2, %v315_v57 }
 0x10b   : > { %v560_v5 = vadd.f32 %v559_v3, %v315_v57  ;;  %v602_v8 = vmax.f32 %v445_v0, 0.0 }
 0x10c   : > { %v604_v9 = vmax.f32 %v558_v1, 0.0  ;;  %v603_v12 = vmax.f32 %v447_v4, 0.0  ;;  %v450_v14 = vpop.f32.mrb[4].mxu0 }
 0x10d   : > { %v605_v13 = vmax.f32 %v560_v5, 0.0  ;;  %v563_v15 = vpop.f32.mrb[4].mxu1  ;;  %v3941_v16 = vpack.c.bf16 %v602_v8, %v598_v6  ;;  %v452_v18 = vpop.f32.mrb[5].mxu0  ;;  %v451_v23 = vadd.f32 %v450_v14, %v320_v56 }
 0x10e   : > { %v3957_v17 = vpack.c.bf16 %v604_v9, %v600_v7  ;;  %v565_v19 = vpop.f32.mrb[5].mxu1  ;;  %v3939_v20 = vpack.c.bf16 %v603_v12, %v599_v10  ;;  %v564_v25 = vadd.f32 %v563_v15, %v320_v56  ;;  %v453_v26 = vadd.f32 %v452_v18, %v320_v56 }
 0x10f   : > { %v3955_v21 = vpack.c.bf16 %v605_v13, %v601_v11  ;;  %v566_v27 = vadd.f32 %v565_v19, %v320_v56  ;;  %v606_v36 = vmax.f32 %v451_v23, 0.0  ;;  %v345_v19 = vpop.permute.xlu1 %344 }
 0x110   : > { %v456_v28 = vpop.f32.mrb[6].mxu0  ;;  %3940 = vmatprep.subr.bf16.mxu0 %v3939_v20  ;;  %v608_v37 = vmax.f32 %v564_v25, 0.0  ;;  %v607_v40 = vmax.f32 %v453_v26, 0.0 }
 0x111   : > { %v569_v29 = vpop.f32.mrb[6].mxu1  ;;  %3956 = vmatprep.subr.bf16.mxu1 %v3955_v21  ;;  %v457_v30 = vadd.f32 %v456_v28, %v325_v22  ;;  %v458_v32 = vpop.f32.mrb[7].mxu0  ;;  %3942 = vmatpush1.bf16.msra.mxu0 %v3941_v16  ;;  %v609_v41 = vmax.f32 %v566_v27, 0.0 }
 0x112   : > { %v570_v31 = vadd.f32 %v569_v29, %v325_v22  ;;  %v571_v33 = vpop.f32.mrb[7].mxu1  ;;  %3958 = vmatpush1.bf16.msra.mxu1 %v3957_v17  ;;  %v459_v34 = vadd.f32 %v458_v32, %v325_v22  ;;  %v340_v16 = vpop.permute.xlu0 %339 }
 0x113   : > { %v572_v35 = vadd.f32 %v571_v33, %v325_v22  ;;  %v610_v38 = vmax.f32 %v457_v30, 0.0 }
 0x114   : > { %v612_v39 = vmax.f32 %v570_v31, 0.0  ;;  %v611_v42 = vmax.f32 %v459_v34, 0.0  ;;  %v462_v44 = vpop.f32.mrb[8].mxu0 }
 0x115   : > { %v613_v43 = vmax.f32 %v572_v35, 0.0  ;;  %v575_v45 = vpop.f32.mrb[8].mxu1  ;;  %v3945_v46 = vpack.c.bf16 %v610_v38, %v606_v36  ;;  %v464_v48 = vpop.f32.mrb[9].mxu0  ;;  %v463_v54 = vadd.f32 %v462_v44, %v330_v50 }
 0x116   : > { %v3961_v47 = vpack.c.bf16 %v612_v39, %v608_v37  ;;  %v577_v49 = vpop.f32.mrb[9].mxu1  ;;  %v3943_v51 = vpack.c.bf16 %v611_v42, %v607_v40  ;;  %v576_v55 = vadd.f32 %v575_v45, %v330_v50  ;;  %v465_v56 = vadd.f32 %v464_v48, %v330_v50  ;;  %v630_v45 = vld [vmem:[%s5741_s3] sm:$0xff]  ;;  %v633_v48 = vld [vmem:[%s5741_s3 + $0x18] sm:$0xff] }
 0x117   : > { %v3959_v52 = vpack.c.bf16 %v613_v43, %v609_v41  ;;  %v578_v57 = vadd.f32 %v577_v49, %v330_v50  ;;  %v614_v2 = vmax.f32 %v463_v54, 0.0  ;;  %v634_v49 = vld [vmem:[%s5741_s3 + $0x20] sm:$0xff]  ;;  %v635_v50 = vld [vmem:[%s5741_s3 + $0x28] sm:$0xff] }
 0x118   : > { %v468_v58 = vpop.f32.mrb[10].mxu0  ;;  %3944 = vmatprep.subr.bf16.mxu0 %v3943_v51  ;;  %v616_v3 = vmax.f32 %v576_v55, 0.0  ;;  %v615_v6 = vmax.f32 %v465_v56, 0.0  ;;  %v636_v51 = vld [vmem:[%s5741_s3 + $0x30] sm:$0xff] }
 0x119   : > { %v581_v59 = vpop.f32.mrb[10].mxu1  ;;  %3960 = vmatprep.subr.bf16.mxu1 %v3959_v52  ;;  %v469_v60 = vadd.f32 %v468_v58, %v335_v53  ;;  %v470_v62 = vpop.f32.mrb[11].mxu0  ;;  %3946 = vmatpush1.bf16.msra.mxu0 %v3945_v46  ;;  %v617_v7 = vmax.f32 %v578_v57, 0.0  ;;  %v631_v46 = vld [vmem:[%s5741_s3 + $0x8] sm:$0xff]  ;;  %v637_v52 = vld [vmem:[%s5741_s3 + $0x38] sm:$0xff] }
 0x11a   : > { %v582_v61 = vadd.f32 %v581_v59, %v335_v53  ;;  %v583_v63 = vpop.f32.mrb[11].mxu1  ;;  %3962 = vmatpush1.bf16.msra.mxu1 %v3961_v47  ;;  %v471_v0 = vadd.f32 %v470_v62, %v335_v53  ;;  %v632_v47 = vld [vmem:[%s5741_s3 + $0x10] sm:$0xff]  ;;  %v654_v62 = vpop.permute.xlu1 %653 }
 0x11b   : > { %v584_v1 = vadd.f32 %v583_v63, %v335_v53  ;;  %v618_v4 = vmax.f32 %v469_v60, 0.0  ;;  %v649_v53 = vpop.permute.xlu0 %648 }
 0x11c   : > { %v620_v5 = vmax.f32 %v582_v61, 0.0  ;;  %v619_v8 = vmax.f32 %v471_v0, 0.0  ;;  %v474_v10 = vpop.f32.mrb[12].mxu0 }
 0x11d   : > { %v621_v9 = vmax.f32 %v584_v1, 0.0  ;;  %v587_v11 = vpop.f32.mrb[12].mxu1  ;;  %v3949_v12 = vpack.c.bf16 %v618_v4, %v614_v2  ;;  %v476_v14 = vpop.f32.mrb[13].mxu0  ;;  %v475_v20 = vadd.f32 %v474_v10, %v340_v16 }
 0x11e   : > { %v3965_v13 = vpack.c.bf16 %v620_v5, %v616_v3  ;;  %v589_v15 = vpop.f32.mrb[13].mxu1  ;;  %v3947_v17 = vpack.c.bf16 %v619_v8, %v615_v6  ;;  %v588_v21 = vadd.f32 %v587_v11, %v340_v16  ;;  %v477_v22 = vadd.f32 %v476_v14, %v340_v16 }
 0x11f   : > { %v3963_v18 = vpack.c.bf16 %v621_v9, %v617_v7  ;;  %v590_v23 = vadd.f32 %v589_v15, %v340_v16  ;;  %v622_v33 = vmax.f32 %v475_v20, 0.0  ;;  %v659_v15 = vpop.permute.xlu0 %658 }
 0x120   : > { %v480_v25 = vpop.f32.mrb[14].mxu0  ;;  %3948 = vmatprep.subr.bf16.mxu0 %v3947_v17  ;;  %v624_v34 = vmax.f32 %v588_v21, 0.0  ;;  %v623_v37 = vmax.f32 %v477_v22, 0.0 }
 0x121   : > { %v593_v26 = vpop.f32.mrb[14].mxu1  ;;  %3964 = vmatprep.subr.bf16.mxu1 %v3963_v18  ;;  %v481_v27 = vadd.f32 %v480_v25, %v345_v19  ;;  %v482_v29 = vpop.f32.mrb[15].mxu0  ;;  %3950 = vmatpush1.bf16.msra.mxu0 %v3949_v12  ;;  %v625_v38 = vmax.f32 %v590_v23, 0.0 }
 0x122   : > { %v594_v28 = vadd.f32 %v593_v26, %v345_v19  ;;  %v595_v30 = vpop.f32.mrb[15].mxu1  ;;  %3966 = vmatpush1.bf16.msra.mxu1 %v3965_v13  ;;  %v483_v31 = vadd.f32 %v482_v29, %v345_v19 }
 0x123   : > { %v596_v32 = vadd.f32 %v595_v30, %v345_v19  ;;  %v626_v35 = vmax.f32 %v481_v27, 0.0 }
 0x124   : > { %v628_v36 = vmax.f32 %v594_v28, 0.0  ;;  %v627_v39 = vmax.f32 %v483_v31, 0.0 }
 0x125   : > { %v629_v40 = vmax.f32 %v596_v32, 0.0  ;;  %v3953_v41 = vpack.c.bf16 %v626_v35, %v622_v33 }
 0x126   : > { %v3969_v42 = vpack.c.bf16 %v628_v36, %v624_v34  ;;  %v3951_v43 = vpack.c.bf16 %v627_v39, %v623_v37 }
 0x127   : > { %v3967_v44 = vpack.c.bf16 %v629_v40, %v625_v38 }
 0x128   : > { %3952 = vmatprep.subr.bf16.mxu0 %v3951_v43 }
 0x129   : > { %3968 = vmatprep.subr.bf16.mxu1 %v3967_v44  ;;  %3954 = vmatpush1.bf16.msra.mxu0 %v3953_v41 }
 0x12a   : > { %3970 = vmatpush1.bf16.msra.mxu1 %v3969_v42 }
 0x12c   : > { %3644 = vmatmul.mubr.msk.f32.vlgmr.msra.gmra.mrb[16].mxu0 %vm686_vm1, %v630_v45 }
 0x12d   : > { %3652 = vmatmul.mubr.msk.f32.vlgmr.msra.gmra.mrb[16].mxu1 %vm686_vm1, %v630_v45  ;;  %781 = vmatprep.mubr.f32.mxu0 %v4498_v24 }
 0x12e   : > { %894 = vmatprep.mubr.f32.mxu1 %v4498_v24 }
 0x130   : > { %3645 = vmatmul.mubr.msk.f32.gmra.mrb[18].mxu0 %vm686_vm1, %v631_v46 }
 0x131   : > { %3653 = vmatmul.mubr.msk.f32.gmra.mrb[18].mxu1 %vm686_vm1, %v631_v46  ;;  %787 = vmatprep.mubr.f32.mxu0 %v4498_v24 }
 0x132   : > { %900 = vmatprep.mubr.f32.mxu1 %v4498_v24 }
 0x134   : > { %3646 = vmatmul.mubr.msk.f32.gmra.mrb[20].mxu0 %vm686_vm1, %v632_v47 }
 0x135   : > { %3654 = vmatmul.mubr.msk.f32.gmra.mrb[20].mxu1 %vm686_vm1, %v632_v47  ;;  %793 = vmatprep.mubr.f32.mxu0 %v4498_v24 }
 0x136   : > { %906 = vmatprep.mubr.f32.mxu1 %v4498_v24 }
 0x138   : > { %3647 = vmatmul.mubr.msk.f32.gmra.mrb[22].mxu0 %vm686_vm1, %v633_v48 }
 0x139   : > { %3655 = vmatmul.mubr.msk.f32.gmra.mrb[22].mxu1 %vm686_vm1, %v633_v48  ;;  %799 = vmatprep.mubr.f32.mxu0 %v4498_v24 }
 0x13a   : > { %912 = vmatprep.mubr.f32.mxu1 %v4498_v24 }
 0x13c   : > { %3648 = vmatmul.mubr.msk.f32.gmra.mrb[24].mxu0 %vm686_vm1, %v634_v49 }
 0x13d   : > { %3656 = vmatmul.mubr.msk.f32.gmra.mrb[24].mxu1 %vm686_vm1, %v634_v49  ;;  %805 = vmatprep.mubr.f32.mxu0 %v4498_v24 }
 0x13e   : > { %918 = vmatprep.mubr.f32.mxu1 %v4498_v24 }
 0x140   : > { %3649 = vmatmul.mubr.msk.f32.gmra.mrb[26].mxu0 %vm686_vm1, %v635_v50 }
 0x141   : > { %3657 = vmatmul.mubr.msk.f32.gmra.mrb[26].mxu1 %vm686_vm1, %v635_v50  ;;  %811 = vmatprep.mubr.f32.mxu0 %v4498_v24 }
 0x142   : > { %924 = vmatprep.mubr.f32.mxu1 %v4498_v24 }
 0x144   : > { %3650 = vmatmul.mubr.msk.f32.gmra.mrb[28].mxu0 %vm686_vm1, %v636_v51 }
 0x145   : > { %3658 = vmatmul.mubr.msk.f32.gmra.mrb[28].mxu1 %vm686_vm1, %v636_v51  ;;  %817 = vmatprep.mubr.f32.mxu0 %v4498_v24 }
 0x146   : > { %930 = vmatprep.mubr.f32.mxu1 %v4498_v24 }
 0x148   : > { %3651 = vmatmul.mubr.msk.f32.gmra.mrb[30].mxu0 %vm686_vm1, %v637_v52 }
 0x149   : > { %3659 = vmatmul.mubr.msk.f32.gmra.mrb[30].mxu1 %vm686_vm1, %v637_v52  ;;  %1243 = vmatprep.mubr.f32.mxu0 %v4498_v24 }
 0x14a   : > { %1356 = vmatprep.mubr.f32.mxu1 %v4498_v24 }
 0x1ff   : > { %v777_v54 = vpop.f32.mrb[16].mxu0 }
 0x200   : > { %v890_v55 = vpop.f32.mrb[16].mxu1  ;;  %v778_v56 = vadd.f32 %v777_v54, %v649_v53  ;;  %v779_v58 = vpop.f32.mrb[17].mxu0 }
 0x201   : > { %v891_v57 = vadd.f32 %v890_v55, %v649_v53  ;;  %v892_v59 = vpop.f32.mrb[17].mxu1  ;;  %v780_v60 = vadd.f32 %v779_v58, %v649_v53 }
 0x202   : > { %v893_v61 = vadd.f32 %v892_v59, %v649_v53  ;;  %v937_v63 = vadd.f32 2.0, %v778_v56  ;;  %v664_v53 = vpop.permute.xlu1 %663 }
 0x203   : > { %v939_v0 = vadd.f32 2.0, %v891_v57  ;;  %v938_v1 = vadd.f32 2.0, %v780_v60  ;;  %v783_v3 = vpop.f32.mrb[18].mxu0 }
 0x204   : > { %v940_v2 = vadd.f32 2.0, %v893_v61  ;;  %v896_v4 = vpop.f32.mrb[18].mxu1  ;;  %v3660_v5 = vmul.f32 -1.442695, %v937_v63  ;;  %v784_v7 = vadd.f32 %v783_v3, %v654_v62  ;;  %v785_v9 = vpop.f32.mrb[19].mxu0 }
 0x205   : > { %v3662_v6 = vmul.f32 -1.442695, %v939_v0  ;;  %v897_v8 = vadd.f32 %v896_v4, %v654_v62  ;;  %v898_v10 = vpop.f32.mrb[19].mxu1  ;;  %v3661_v11 = vmul.f32 -1.442695, %v938_v1  ;;  %v786_v13 = vadd.f32 %v785_v9, %v654_v62 }
 0x206   : > { %v3663_v12 = vmul.f32 -1.442695, %v940_v2  ;;  %v899_v14 = vadd.f32 %v898_v10, %v654_v62  ;;  %4161 = vpow2.f32 %v3660_v5  ;;  %v941_v16 = vadd.f32 2.0, %v784_v7 }
 0x207   : > { %v943_v17 = vadd.f32 2.0, %v897_v8  ;;  %4163 = vpow2.f32 %v3662_v6  ;;  %v942_v18 = vadd.f32 2.0, %v786_v13  ;;  %v789_v20 = vpop.f32.mrb[20].mxu0 }
 0x208   : > { %v944_v19 = vadd.f32 2.0, %v899_v14  ;;  %v902_v21 = vpop.f32.mrb[20].mxu1  ;;  %4165 = vpow2.f32 %v3661_v11  ;;  %v3664_v22 = vmul.f32 -1.442695, %v941_v16  ;;  %v790_v25 = vadd.f32 %v789_v20, %v659_v15  ;;  %v791_v26 = vpop.f32.mrb[21].mxu0 }
 0x209   : > { %v3666_v23 = vmul.f32 -1.442695, %v943_v17  ;;  %v904_v27 = vpop.f32.mrb[21].mxu1  ;;  %4167 = vpow2.f32 %v3663_v12  ;;  %v3665_v28 = vmul.f32 -1.442695, %v942_v18  ;;  %v903_v30 = vadd.f32 %v902_v21, %v659_v15  ;;  %v669_v21 = vpop.permute.xlu0 %668 }
 0x20a   : > { %v3667_v29 = vmul.f32 -1.442695, %v944_v19  ;;  %4169 = vpow2.f32 %v3664_v22  ;;  %v945_v31 = vadd.f32 2.0, %v790_v25  ;;  %v792_v32 = vadd.f32 %v791_v26, %v659_v15 }
 0x20b   : > { %v905_v33 = vadd.f32 %v904_v27, %v659_v15  ;;  %4171 = vpow2.f32 %v3666_v23  ;;  %v947_v34 = vadd.f32 2.0, %v903_v30  ;;  %v795_v35 = vpop.f32.mrb[22].mxu0 }
 0x20c   : > { %v908_v36 = vpop.f32.mrb[22].mxu1  ;;  %4173 = vpow2.f32 %v3665_v28  ;;  %v3668_v37 = vmul.f32 -1.442695, %v945_v31  ;;  %v946_v38 = vadd.f32 2.0, %v792_v32  ;;  %v797_v40 = vpop.f32.mrb[23].mxu0  ;;  %v796_v57 = vadd.f32 %v795_v35, %v664_v53 }
 0x20d   : > { %v948_v39 = vadd.f32 2.0, %v905_v33  ;;  %v910_v41 = vpop.f32.mrb[23].mxu1  ;;  %4175 = vpow2.f32 %v3667_v29  ;;  %v3670_v42 = vmul.f32 -1.442695, %v947_v34  ;;  %v909_v62 = vadd.f32 %v908_v36, %v664_v53 }
 0x20e   : > { %4177 = vpow2.f32 %v3668_v37  ;;  %v3669_v43 = vmul.f32 -1.442695, %v946_v38  ;;  %v798_v3 = vadd.f32 %v797_v40, %v664_v53  ;;  %v911_v6 = vadd.f32 %v910_v41, %v664_v53 }
 0x20f   : > { %v3671_v44 = vmul.f32 -1.442695, %v948_v39  ;;  %4179 = vpow2.f32 %v3670_v42  ;;  %v4937_v45 = vpop.f32.mrb[24].mxu0  ;;  %v949_v9 = vadd.f32 2.0, %v796_v57  ;;  %v951_v14 = vadd.f32 2.0, %v909_v62  ;;  %v674_v42 = vpop.permute.xlu1 %673 }
 0x210   : > { %v4939_v46 = vpop.f32.mrb[24].mxu1  ;;  %v4162_v47 = vpop.eup %4161  ;;  %4181 = vpow2.f32 %v3669_v43  ;;  %v950_v19 = vadd.f32 2.0, %v798_v3  ;;  %v952_v23 = vadd.f32 2.0, %v911_v6  ;;  %v802_v36 = vadd.f32 %v4937_v45, %v669_v21 }
 0x211   : > { %v4941_v48 = vpop.f32.mrb[25].mxu0  ;;  %v4943_v49 = vpop.f32.mrb[25].mxu1  ;;  %v1001_v51 = vadd.f32 1.0, %v4162_v47  ;;  %4183 = vpow2.f32 %v3671_v44  ;;  %v3672_v27 = vmul.f32 -1.442695, %v949_v9  ;;  %v915_v40 = vadd.f32 %v4939_v46, %v669_v21  ;;  %v4418_v46 = vld [vmem:[%s4625_s6 + $0x10] sm:$0xff] }
 0x212   : > { %v4164_v50 = vpop.eup %4163  ;;  %v3674_v31 = vmul.f32 -1.442695, %v951_v14  ;;  %v3673_v35 = vmul.f32 -1.442695, %v950_v19  ;;  %v3675_v38 = vmul.f32 -1.442695, %v952_v23  ;;  %v804_v44 = vadd.f32 %v4941_v48, %v669_v21 }
 0x213   : > { %v4166_v52 = vpop.eup %4165  ;;  %v1003_v54 = vadd.f32 1.0, %v4164_v50  ;;  %4185 = vrcp.f32 %v1001_v51  ;;  %v4945_v58 = vpop.f32.mrb[26].mxu0  ;;  %v917_v47 = vadd.f32 %v4943_v49, %v669_v21  ;;  %v4417_v51 = vld [vmem:[%s4625_s6] sm:$0xff]  ;;  %v4423_v23 = vld [vmem:[%s4625_s6 + $0x28] sm:$0xff] }
 0x214   : > { %v4168_v55 = vpop.eup %4167  ;;  %v1002_v56 = vadd.f32 1.0, %v4166_v52  ;;  %v4947_v59 = vpop.f32.mrb[26].mxu1  ;;  %v808_v53 = vadd.f32 %v4945_v58, %v674_v42  ;;  %v4420_v58 = vld [vmem:[%s4625_s6 + $0x18] sm:$0xff] }
 0x215   : > { %v4170_v60 = vpop.eup %4169  ;;  %4187 = vrcp.f32 %v1003_v54  ;;  %v1004_v61 = vadd.f32 1.0, %v4168_v55  ;;  %v4949_v63 = vpop.f32.mrb[27].mxu0  ;;  %v921_v57 = vadd.f32 %v4947_v59, %v674_v42 }
 0x216   : > { %v4951_v0 = vpop.f32.mrb[27].mxu1  ;;  %v4172_v1 = vpop.eup %4171  ;;  %4189 = vrcp.f32 %v1002_v56  ;;  %v1005_v2 = vadd.f32 1.0, %v4170_v60  ;;  %v4419_v60 = vld [vmem:[%s4625_s6 + $0x8] sm:$0xff] }
 0x217   : > { %v4174_v4 = vpop.eup %4173  ;;  %4191 = vrcp.f32 %v1004_v61  ;;  %v1007_v5 = vadd.f32 1.0, %v4172_v1  ;;  %v4953_v10 = vpop.f32.mrb[28].mxu0 }
 0x218   : > { %v4176_v7 = vpop.eup %4175  ;;  %4193 = vrcp.f32 %v1005_v2  ;;  %v1006_v8 = vadd.f32 1.0, %v4174_v4  ;;  %v4955_v11 = vpop.f32.mrb[28].mxu1 }
 0x219   : > { %v4178_v12 = vpop.eup %4177  ;;  %4195 = vrcp.f32 %v1007_v5  ;;  %v1008_v13 = vadd.f32 1.0, %v4176_v7  ;;  %v4957_v15 = vpop.f32.mrb[29].mxu0  ;;  %v810_v5 = vadd.f32 %v4949_v63, %v674_v42 }
 0x21a   : > { %v4959_v16 = vpop.f32.mrb[29].mxu1  ;;  %v4180_v17 = vpop.eup %4179  ;;  %4197 = vrcp.f32 %v1006_v8  ;;  %v1009_v18 = vadd.f32 1.0, %v4178_v12  ;;  %v4421_v8 = vld [vmem:[%s4625_s6 + $0x20] sm:$0xff] }
 0x21b   : > { %v4182_v20 = vpop.eup %4181  ;;  %4199 = vrcp.f32 %v1008_v13  ;;  %v1011_v22 = vadd.f32 1.0, %v4180_v17  ;;  %v4961_v28 = vpop.f32.mrb[30].mxu0  ;;  %v923_v13 = vadd.f32 %v4951_v0, %v674_v42 }
 0x21c   : > { %v4184_v25 = vpop.eup %4183  ;;  %4201 = vrcp.f32 %v1009_v18  ;;  %v1010_v26 = vadd.f32 1.0, %v4182_v20  ;;  %v4963_v29 = vpop.f32.mrb[30].mxu1  ;;  %v4422_v18 = vld [vmem:[%s4625_s6 + $0x30] sm:$0xff] }
 0x21d   : > { %4203 = vrcp.f32 %v1011_v22  ;;  %v1012_v30 = vadd.f32 1.0, %v4184_v25  ;;  %v4965_v32 = vpop.f32.mrb[31].mxu0  ;;  %v4967_v33 = vpop.f32.mrb[31].mxu1 }
 0x21e   : > { %v4186_v34 = vpop.eup %4185  ;;  %4205 = vrcp.f32 %v1010_v26  ;;  %v679_v59 = vpop.permute.xlu0 %678 }
 0x21f   : > { %v4188_v37 = vpop.eup %4187  ;;  %4207 = vrcp.f32 %v1012_v30  ;;  %v1049_v39 = vadd.f32 0.001, %v4186_v34  ;;  %v814_v63 = vadd.f32 %v4953_v10, %v679_v59 }
 0x220   : > { %v4190_v41 = vpop.eup %4189  ;;  %4209 = vpow2.f32 %v3672_v27  ;;  %v1051_v43 = vadd.f32 0.001, %v4188_v37  ;;  %v927_v27 = vadd.f32 %v4955_v11, %v679_v59 }
 0x221   : > { %v4192_v50 = vpop.eup %4191  ;;  %4211 = vpow2.f32 %v3674_v31  ;;  %v1065_v45 = vmul.f32 %v4417_v51, %v1049_v39  ;;  %v1050_v52 = vadd.f32 0.001, %v4190_v41  ;;  %v4424_v31 = vld [vmem:[%s4625_s6 + $0x38] sm:$0xff]  ;;  %v929_v41 = vadd.f32 %v4959_v16, %v679_v59 }
 0x222   : > { %v4194_v54 = vpop.eup %4193  ;;  %4213 = vpow2.f32 %v3673_v35  ;;  %v1067_v55 = vmul.f32 %v4418_v46, %v1051_v43  ;;  %v1052_v56 = vadd.f32 0.001, %v4192_v50 }
 0x223   : > { %v4196_v48 = vpop.eup %4195  ;;  %4215 = vpow2.f32 %v3675_v38  ;;  %v4977_v49 = vadd.f32 %v1065_v45, %v802_v36  ;;  %v1066_v61 = vmul.f32 %v4419_v60, %v1050_v52  ;;  %v1053_v62 = vadd.f32 0.001, %v4194_v54  ;;  %v4425_v38 = vld [vmem:[%s4625_s6 + $0x40] sm:$0xff]  ;;  %v4427_v52 = vld [vmem:[%s4625_s6 + $0x48] sm:$0xff] }
 0x224   : > { %v4198_v1 = vpop.eup %4197  ;;  %v4980_v2 = vadd.f32 %v1067_v55, %v915_v40  ;;  %v1068_v3 = vmul.f32 %v4420_v58, %v1052_v56  ;;  %v1055_v4 = vadd.f32 0.001, %v4196_v48  ;;  %v816_v36 = vadd.f32 %v4957_v15, %v679_v59  ;;  %v4428_v56 = vld [vmem:[%s4625_s6 + $0x58] sm:$0xff] }
 0x225   : > { %v4200_v6 = vpop.eup %4199  ;;  %v4984_v7 = vadd.f32 %v1066_v61, %v804_v44  ;;  %v1069_v9 = vmul.f32 %v4421_v8, %v1053_v62  ;;  %v1054_v12 = vadd.f32 0.001, %v4198_v1  ;;  %v4426_v44 = vld [vmem:[%s4625_s6 + $0x50] sm:$0xff]  ;;  %v684_v8 = vpop.permute.xlu1 %683 }
 0x226   : > { %v4202_v14 = vpop.eup %4201  ;;  %v4988_v17 = vadd.f32 %v1068_v3, %v917_v47  ;;  %v1071_v19 = vmul.f32 %v4422_v18, %v1055_v4  ;;  %v1056_v20 = vadd.f32 0.001, %v4200_v6 }
 0x227   : > { %v4204_v21 = vpop.eup %4203  ;;  %v4992_v22 = vadd.f32 %v1069_v9, %v808_v53  ;;  %v1070_v25 = vmul.f32 %v4423_v23, %v1054_v12  ;;  %v1057_v26 = vadd.f32 0.001, %v4202_v14  ;;  %v4429_v14 = vld [vmem:[%s4625_s6 + $0x60] sm:$0xff] }
 0x228   : > { %v4206_v30 = vpop.eup %4205  ;;  %v4996_v0 = vadd.f32 %v1071_v19, %v921_v57  ;;  %v1072_v34 = vmul.f32 %v4424_v31, %v1056_v20  ;;  %v1059_v35 = vadd.f32 0.001, %v4204_v21  ;;  %v933_v20 = vadd.f32 %v4963_v29, %v684_v8 }
 0x229   : > { %v4208_v37 = vpop.eup %4207  ;;  %v5000_v10 = vadd.f32 %v1070_v25, %v810_v5  ;;  %v1073_v39 = vmul.f32 %v4425_v38, %v1057_v26  ;;  %v1058_v40 = vadd.f32 0.001, %v4206_v30  ;;  %v3973_v42 = vpack.c.bf16 %v4992_v22, %v4977_v49 }
 0x22a   : > { %v4210_v11 = vpop.eup %4209  ;;  %v5006_v43 = vadd.f32 %v1072_v34, %v923_v13  ;;  %v1075_v47 = vmul.f32 %v4426_v44, %v1059_v35  ;;  %v1060_v50 = vadd.f32 0.001, %v4208_v37  ;;  %v3981_v62 = vpack.c.bf16 %v4996_v0, %v4980_v2  ;;  %v4432_v35 = vld [vmem:[%s4625_s6 + $0x78] sm:$0xff]  ;;  %v3681_v44 = vld [vmem:[%s5739_s1 + $0x68] sm:$0xff] }
 0x22b   : > { %v4212_v15 = vpop.eup %4211  ;;  %v1013_v51 = vadd.f32 1.0, %v4210_v11  ;;  %v5009_v45 = vadd.f32 %v1073_v39, %v814_v63  ;;  %v1074_v53 = vmul.f32 %v4427_v52, %v1058_v40  ;;  %v3971_v54 = vpack.c.bf16 %v5000_v10, %v4984_v7  ;;  %v4430_v63 = vld [vmem:[%s4625_s6 + $0x70] sm:$0xff]  ;;  %v3677_v40 = vld [vmem:[%s5739_s1 + $0x48] sm:$0xff]  ;;  %v3679_v11 = vld [vmem:[%s5739_s1 + $0x58] sm:$0xff] }
 0x22c   : > { %v4214_v16 = vpop.eup %4213  ;;  %v1015_v46 = vadd.f32 1.0, %v4212_v15  ;;  %v5014_v55 = vadd.f32 %v1075_v47, %v927_v27  ;;  %v1076_v57 = vmul.f32 %v4428_v56, %v1060_v50  ;;  %v3979_v48 = vpack.c.bf16 %v5006_v43, %v4988_v17  ;;  %v4431_v27 = vld [vmem:[%s4625_s6 + $0x68] sm:$0xff]  ;;  %v3682_v47 = vld [vmem:[%s5739_s1 + $0x70] sm:$0xff]  ;;  %v3683_v50 = vld [vmem:[%s5739_s1 + $0x78] sm:$0xff] }
 0x22d   : > { %v4216_v60 = vpop.eup %4215  ;;  %4217 = vrcp.f32 %v1013_v51  ;;  %v1014_v61 = vadd.f32 1.0, %v4214_v16  ;;  %v5021_v1 = vadd.f32 %v1074_v53, %v816_v36  ;;  %3972 = vmatprep.subr.bf16.mxu0 %v3971_v54  ;;  %v820_v13 = vadd.f32 %v4961_v28, %v684_v8  ;;  %v1118_v53 = vpop.permute.xlu0 %1117 }
 0x22e   : > { %4219 = vrcp.f32 %v1015_v46  ;;  %v1016_v58 = vadd.f32 1.0, %v4216_v60  ;;  %v5023_v3 = vadd.f32 %v1076_v57, %v929_v41  ;;  %3980 = vmatprep.subr.bf16.mxu1 %v3979_v48  ;;  %3974 = vmatpush1.bf16.msra.mxu0 %v3973_v42  ;;  %v822_v26 = vadd.f32 %v4965_v32, %v684_v8  ;;  %v3678_v41 = vld [vmem:[%s5739_s1 + $0x50] sm:$0xff]  ;;  %v3680_v42 = vld [vmem:[%s5739_s1 + $0x60] sm:$0xff]  ;;  %v1123_v46 = vpop.permute.xlu1 %1122 }
 0x22f   : > { %4221 = vrcp.f32 %v1014_v61  ;;  %3982 = vmatpush1.bf16.msra.mxu1 %v3981_v62  ;;  %v935_v34 = vadd.f32 %v4967_v33, %v684_v8  ;;  %v3676_v33 = vld [vmem:[%s5739_s1 + $0x40] sm:$0xff] }
 0x230   : > { %4223 = vrcp.f32 %v1016_v58 }
 0x237   : > { %v4218_v4 = vpop.eup %4217 }
 0x238   : > { %v4220_v5 = vpop.eup %4219  ;;  %v1061_v6 = vadd.f32 0.001, %v4218_v4 }
 0x239   : > { %v4222_v59 = vpop.eup %4221  ;;  %v1063_v9 = vadd.f32 0.001, %v4220_v5 }
 0x23a   : > { %v4224_v12 = vpop.eup %4223  ;;  %v1077_v18 = vmul.f32 %v4429_v14, %v1061_v6  ;;  %v1062_v19 = vadd.f32 0.001, %v4222_v59 }
 0x23b   : > { %v1079_v21 = vmul.f32 %v4430_v63, %v1063_v9  ;;  %v1064_v23 = vadd.f32 0.001, %v4224_v12 }
 0x23c   : > { %v5029_v25 = vadd.f32 %v1077_v18, %v820_v13  ;;  %v1078_v30 = vmul.f32 %v4431_v27, %v1062_v19  ;;  %v1128_v27 = vpop.permute.xlu0 %1127 }
 0x23d   : > { %v5033_v31 = vadd.f32 %v1079_v21, %v933_v20  ;;  %v1080_v28 = vmul.f32 %v4432_v35, %v1064_v23 }
 0x23e   : > { %v5037_v36 = vadd.f32 %v1078_v30, %v822_v26  ;;  %v3977_v38 = vpack.c.bf16 %v5029_v25, %v5009_v45 }
 0x23f   : > { %v5039_v37 = vadd.f32 %v1080_v28, %v935_v34  ;;  %v3985_v39 = vpack.c.bf16 %v5033_v31, %v5014_v55 }
 0x240   : > { %v3975_v29 = vpack.c.bf16 %v5037_v36, %v5021_v1 }
 0x241   : > { %v3983_v32 = vpack.c.bf16 %v5039_v37, %v5023_v3 }
 0x242   : > { %3976 = vmatprep.subr.bf16.mxu0 %v3975_v29 }
 0x243   : > { %3984 = vmatprep.subr.bf16.mxu1 %v3983_v32  ;;  %3978 = vmatpush1.bf16.msra.mxu0 %v3977_v38  ;;  %v1133_v38 = vpop.permute.xlu1 %1132 }
 0x244   : > { %3986 = vmatpush1.bf16.msra.mxu1 %v3985_v39 }
 0x246   : > { %3692 = vmatmul.mubr.msk.f32.vlgmr.msra.gmra.mrb[32].mxu0 %vm347_vm0, %v3676_v33 }
 0x247   : > { %3700 = vmatmul.mubr.msk.f32.vlgmr.msra.gmra.mrb[32].mxu1 %vm347_vm0, %v3676_v33  ;;  %1249 = vmatprep.mubr.f32.mxu0 %v4498_v24 }
 0x248   : > { %1362 = vmatprep.mubr.f32.mxu1 %v4498_v24 }
 0x24a   : > { %3693 = vmatmul.mubr.msk.f32.gmra.mrb[34].mxu0 %vm347_vm0, %v3677_v40 }
 0x24b   : > { %3701 = vmatmul.mubr.msk.f32.gmra.mrb[34].mxu1 %vm347_vm0, %v3677_v40  ;;  %1255 = vmatprep.mubr.f32.mxu0 %v4498_v24 }
 0x24c   : > { %1368 = vmatprep.mubr.f32.mxu1 %v4498_v24 }
 0x24e   : > { %3694 = vmatmul.mubr.msk.f32.gmra.mrb[36].mxu0 %vm347_vm0, %v3678_v41 }
 0x24f   : > { %3702 = vmatmul.mubr.msk.f32.gmra.mrb[36].mxu1 %vm347_vm0, %v3678_v41  ;;  %1261 = vmatprep.mubr.f32.mxu0 %v4498_v24 }
 0x250   : > { %1374 = vmatprep.mubr.f32.mxu1 %v4498_v24 }
 0x252   : > { %3695 = vmatmul.mubr.msk.f32.gmra.mrb[38].mxu0 %vm347_vm0, %v3679_v11 }
 0x253   : > { %3703 = vmatmul.mubr.msk.f32.gmra.mrb[38].mxu1 %vm347_vm0, %v3679_v11  ;;  %1267 = vmatprep.mubr.f32.mxu0 %v4498_v24 }
 0x254   : > { %1380 = vmatprep.mubr.f32.mxu1 %v4498_v24 }
 0x256   : > { %3696 = vmatmul.mubr.msk.f32.gmra.mrb[40].mxu0 %vm347_vm0, %v3680_v42 }
 0x257   : > { %3704 = vmatmul.mubr.msk.f32.gmra.mrb[40].mxu1 %vm347_vm0, %v3680_v42  ;;  %1273 = vmatprep.mubr.f32.mxu0 %v4498_v24 }
 0x258   : > { %1386 = vmatprep.mubr.f32.mxu1 %v4498_v24 }
 0x25a   : > { %3697 = vmatmul.mubr.msk.f32.gmra.mrb[42].mxu0 %vm347_vm0, %v3681_v44 }
 0x25b   : > { %3705 = vmatmul.mubr.msk.f32.gmra.mrb[42].mxu1 %vm347_vm0, %v3681_v44  ;;  %1279 = vmatprep.mubr.f32.mxu0 %v4498_v24 }
 0x25c   : > { %1392 = vmatprep.mubr.f32.mxu1 %v4498_v24 }
 0x25e   : > { %3698 = vmatmul.mubr.msk.f32.gmra.mrb[44].mxu0 %vm347_vm0, %v3682_v47 }
 0x25f   : > { %3706 = vmatmul.mubr.msk.f32.gmra.mrb[44].mxu1 %vm347_vm0, %v3682_v47  ;;  %1285 = vmatprep.mubr.f32.mxu0 %v4498_v24 }
 0x260   : > { %1398 = vmatprep.mubr.f32.mxu1 %v4498_v24 }
 0x262   : > { %3699 = vmatmul.mubr.msk.f32.gmra.mrb[46].mxu0 %vm347_vm0, %v3683_v50 }
 0x263   : > { %3707 = vmatmul.mubr.msk.f32.gmra.mrb[46].mxu1 %vm347_vm0, %v3683_v50  ;;  %1583 = vmatprep.mubr.f32.mxu0 %v4498_v24 }
 0x264   : > { %1696 = vmatprep.mubr.f32.mxu1 %v4498_v24 }
 0x319   : > { %v1245_v15 = vpop.f32.mrb[32].mxu0 }
 0x31a   : > { %v1358_v51 = vpop.f32.mrb[32].mxu1  ;;  %v1247_v52 = vpop.f32.mrb[33].mxu0  ;;  %v1246_v16 = vadd.f32 %v1245_v15, %v1118_v53 }
 0x31b   : > { %v1360_v54 = vpop.f32.mrb[33].mxu1  ;;  %v1359_v56 = vadd.f32 %v1358_v51, %v1118_v53  ;;  %v1248_v57 = vadd.f32 %v1247_v52, %v1118_v53 }
 0x31c   : > { %v1361_v60 = vadd.f32 %v1360_v54, %v1118_v53  ;;  %v1405_v59 = vmax.f32 %v1246_v16, 0.0 }
 0x31d   : > { %v1251_v48 = vpop.f32.mrb[34].mxu0  ;;  %v1407_v12 = vmax.f32 %v1359_v56, 0.0  ;;  %v1406_v13 = vmax.f32 %v1248_v57, 0.0 }
 0x31e   : > { %v1252_v61 = vadd.f32 %v1251_v48, %v1123_v46  ;;  %v1364_v62 = vpop.f32.mrb[34].mxu1  ;;  %v1253_v58 = vpop.f32.mrb[35].mxu0  ;;  %v1408_v20 = vmax.f32 %v1361_v60, 0.0 }
 0x31f   : > { %v1365_v4 = vadd.f32 %v1364_v62, %v1123_v46  ;;  %v1254_v5 = vadd.f32 %v1253_v58, %v1123_v46  ;;  %v1366_v6 = vpop.f32.mrb[35].mxu1  ;;  %v1138_v58 = vpop.permute.xlu0 %1137 }
 0x320   : > { %v1409_v8 = vmax.f32 %v1252_v61, 0.0  ;;  %v1367_v9 = vadd.f32 %v1366_v6, %v1123_v46 }
 0x321   : > { %v1411_v14 = vmax.f32 %v1365_v4, 0.0  ;;  %v1410_v18 = vmax.f32 %v1254_v5, 0.0  ;;  %v1257_v19 = vpop.f32.mrb[36].mxu0 }
 0x322   : > { %v3989_v63 = vpack.c.bf16 %v1409_v8, %v1405_v59  ;;  %v1412_v21 = vmax.f32 %v1367_v9, 0.0  ;;  %v1370_v23 = vpop.f32.mrb[36].mxu1  ;;  %v1259_v26 = vpop.f32.mrb[37].mxu0  ;;  %v1258_v29 = vadd.f32 %v1257_v19, %v1128_v27 }
 0x323   : > { %v4005_v30 = vpack.c.bf16 %v1411_v14, %v1407_v12  ;;  %v3987_v34 = vpack.c.bf16 %v1410_v18, %v1406_v13  ;;  %v1372_v35 = vpop.f32.mrb[37].mxu1  ;;  %v1371_v32 = vadd.f32 %v1370_v23, %v1128_v27  ;;  %v1260_v39 = vadd.f32 %v1259_v26, %v1128_v27  ;;  %v1143_v9 = vpop.permute.xlu1 %1142 }
 0x324   : > { %v4003_v28 = vpack.c.bf16 %v1412_v21, %v1408_v20  ;;  %v1373_v40 = vadd.f32 %v1372_v35, %v1128_v27  ;;  %v1413_v15 = vmax.f32 %v1258_v29, 0.0 }
 0x325   : > { %v1263_v33 = vpop.f32.mrb[38].mxu0  ;;  %3988 = vmatprep.subr.bf16.mxu0 %v3987_v34  ;;  %v1415_v53 = vmax.f32 %v1371_v32, 0.0  ;;  %v1414_v54 = vmax.f32 %v1260_v39, 0.0 }
 0x326   : > { %v1264_v41 = vadd.f32 %v1263_v33, %v1133_v38  ;;  %v1376_v11 = vpop.f32.mrb[38].mxu1  ;;  %4004 = vmatprep.subr.bf16.mxu1 %v4003_v28  ;;  %v1265_v42 = vpop.f32.mrb[39].mxu0  ;;  %3990 = vmatpush1.bf16.msra.mxu0 %v3989_v63  ;;  %v1416_v57 = vmax.f32 %v1373_v40, 0.0 }
 0x327   : > { %v1377_v44 = vadd.f32 %v1376_v11, %v1133_v38  ;;  %v1266_v47 = vadd.f32 %v1265_v42, %v1133_v38  ;;  %v1378_v50 = vpop.f32.mrb[39].mxu1  ;;  %4006 = vmatpush1.bf16.msra.mxu1 %v4005_v30  ;;  %v1148_v42 = vpop.permute.xlu0 %1147 }
 0x328   : > { %v1417_v51 = vmax.f32 %v1264_v41, 0.0  ;;  %v1379_v52 = vadd.f32 %v1378_v50, %v1133_v38 }
 0x329   : > { %v1419_v16 = vmax.f32 %v1377_v44, 0.0  ;;  %v1418_v46 = vmax.f32 %v1266_v47, 0.0  ;;  %v1269_v56 = vpop.f32.mrb[40].mxu0 }
 0x32a   : > { %v3993_v48 = vpack.c.bf16 %v1417_v51, %v1413_v15  ;;  %v1420_v60 = vmax.f32 %v1379_v52, 0.0  ;;  %v1382_v61 = vpop.f32.mrb[40].mxu1  ;;  %v1271_v62 = vpop.f32.mrb[41].mxu0  ;;  %v1270_v8 = vadd.f32 %v1269_v56, %v1138_v58 }
 0x32b   : > { %v4009_v4 = vpack.c.bf16 %v1419_v16, %v1415_v53  ;;  %v3991_v5 = vpack.c.bf16 %v1418_v46, %v1414_v54  ;;  %v1384_v6 = vpop.f32.mrb[41].mxu1  ;;  %v1383_v12 = vadd.f32 %v1382_v61, %v1138_v58  ;;  %v1272_v13 = vadd.f32 %v1271_v62, %v1138_v58  ;;  %v1153_v52 = vpop.permute.xlu1 %1152 }
 0x32c   : > { %v4007_v59 = vpack.c.bf16 %v1420_v60, %v1416_v57  ;;  %v1385_v18 = vadd.f32 %v1384_v6, %v1138_v58  ;;  %v1421_v27 = vmax.f32 %v1270_v8, 0.0 }
 0x32d   : > { %v1275_v14 = vpop.f32.mrb[42].mxu0  ;;  %3992 = vmatprep.subr.bf16.mxu0 %v3991_v5  ;;  %v1423_v35 = vmax.f32 %v1383_v12, 0.0  ;;  %v1422_v28 = vmax.f32 %v1272_v13, 0.0 }
 0x32e   : > { %v1276_v19 = vadd.f32 %v1275_v14, %v1143_v9  ;;  %v1388_v20 = vpop.f32.mrb[42].mxu1  ;;  %4008 = vmatprep.subr.bf16.mxu1 %v4007_v59  ;;  %v1277_v63 = vpop.f32.mrb[43].mxu0  ;;  %3994 = vmatpush1.bf16.msra.mxu0 %v3993_v48  ;;  %v1424_v39 = vmax.f32 %v1385_v18, 0.0 }
 0x32f   : > { %v1389_v21 = vadd.f32 %v1388_v20, %v1143_v9  ;;  %v1278_v23 = vadd.f32 %v1277_v63, %v1143_v9  ;;  %v1390_v26 = vpop.f32.mrb[43].mxu1  ;;  %4010 = vmatpush1.bf16.msra.mxu1 %v4009_v4  ;;  %v3708_v63 = vld [vmem:[%s5741_s3 + $0x40] sm:$0xff] }
 0x330   : > { %v1425_v30 = vmax.f32 %v1276_v19, 0.0  ;;  %v1391_v34 = vadd.f32 %v1390_v26, %v1143_v9  ;;  %v3711_v26 = vld [vmem:[%s5741_s3 + $0x58] sm:$0xff] }
 0x331   : > { %v1427_v29 = vmax.f32 %v1389_v21, 0.0  ;;  %v1426_v38 = vmax.f32 %v1278_v23, 0.0  ;;  %v1281_v32 = vpop.f32.mrb[44].mxu0  ;;  %v3709_v21 = vld [vmem:[%s5741_s3 + $0x48] sm:$0xff]  ;;  %v3710_v23 = vld [vmem:[%s5741_s3 + $0x50] sm:$0xff] }
 0x332   : > { %v3997_v33 = vpack.c.bf16 %v1425_v30, %v1421_v27  ;;  %v1428_v40 = vmax.f32 %v1391_v34, 0.0  ;;  %v1394_v41 = vpop.f32.mrb[44].mxu1  ;;  %v1283_v11 = vpop.f32.mrb[45].mxu0  ;;  %v1282_v51 = vadd.f32 %v1281_v32, %v1148_v42  ;;  %v3712_v27 = vld [vmem:[%s5741_s3 + $0x60] sm:$0xff]  ;;  %v3713_v30 = vld [vmem:[%s5741_s3 + $0x68] sm:$0xff]  ;;  %v3714_v34 = vld [vmem:[%s5741_s3 + $0x70] sm:$0xff] }
 0x333   : > { %v4013_v44 = vpack.c.bf16 %v1427_v29, %v1423_v35  ;;  %v3995_v47 = vpack.c.bf16 %v1426_v38, %v1422_v28  ;;  %v1396_v50 = vpop.f32.mrb[45].mxu1  ;;  %v1395_v53 = vadd.f32 %v1394_v41, %v1148_v42  ;;  %v1284_v54 = vadd.f32 %v1283_v11, %v1148_v42  ;;  %v3715_v35 = vld [vmem:[%s5741_s3 + $0x78] sm:$0xff]  ;;  %v1458_v28 = vpop.permute.xlu0 %1457 }
 0x334   : > { %v4011_v15 = vpack.c.bf16 %v1428_v40, %v1424_v39  ;;  %v1397_v46 = vadd.f32 %v1396_v50, %v1148_v42  ;;  %v1429_v58 = vmax.f32 %v1282_v51, 0.0 }
 0x335   : > { %v1287_v16 = vpop.f32.mrb[46].mxu0  ;;  %3996 = vmatprep.subr.bf16.mxu0 %v3995_v47  ;;  %v1431_v6 = vmax.f32 %v1395_v53, 0.0  ;;  %v1430_v59 = vmax.f32 %v1284_v54, 0.0 }
 0x336   : > { %v1288_v56 = vadd.f32 %v1287_v16, %v1153_v52  ;;  %v1400_v57 = vpop.f32.mrb[46].mxu1  ;;  %4012 = vmatprep.subr.bf16.mxu1 %v4011_v15  ;;  %v1289_v48 = vpop.f32.mrb[47].mxu0  ;;  %3998 = vmatpush1.bf16.msra.mxu0 %v3997_v33  ;;  %v1432_v12 = vmax.f32 %v1397_v46, 0.0 }
 0x337   : > { %v1401_v60 = vadd.f32 %v1400_v57, %v1153_v52  ;;  %v1290_v61 = vadd.f32 %v1289_v48, %v1153_v52  ;;  %v1402_v62 = vpop.f32.mrb[47].mxu1  ;;  %4014 = vmatpush1.bf16.msra.mxu1 %v4013_v44  ;;  %v1463_v44 = vpop.permute.xlu1 %1462 }
 0x338   : > { %v1433_v4 = vmax.f32 %v1288_v56, 0.0  ;;  %v1403_v5 = vadd.f32 %v1402_v62, %v1153_v52 }
 0x339   : > { %v1435_v8 = vmax.f32 %v1401_v60, 0.0  ;;  %v1434_v9 = vmax.f32 %v1290_v61, 0.0 }
 0x33a   : > { %v4001_v13 = vpack.c.bf16 %v1433_v4, %v1429_v58  ;;  %v1436_v14 = vmax.f32 %v1403_v5, 0.0  ;;  %v1468_v4 = vpop.permute.xlu0 %1467 }
 0x33b   : > { %v4017_v18 = vpack.c.bf16 %v1435_v8, %v1431_v6  ;;  %v3999_v19 = vpack.c.bf16 %v1434_v9, %v1430_v59 }
 0x33c   : > { %v4015_v20 = vpack.c.bf16 %v1436_v14, %v1432_v12 }
 0x33d   : > { %4000 = vmatprep.subr.bf16.mxu0 %v3999_v19 }
 0x33e   : > { %4016 = vmatprep.subr.bf16.mxu1 %v4015_v20  ;;  %4002 = vmatpush1.bf16.msra.mxu0 %v4001_v13 }
 0x33f   : > { %4018 = vmatpush1.bf16.msra.mxu1 %v4017_v18 }
 0x341   : > { %3724 = vmatmul.mubr.msk.f32.vlgmr.msra.gmra.mrb[48].mxu0 %vm686_vm1, %v3708_v63 }
 0x342   : > { %3732 = vmatmul.mubr.msk.f32.vlgmr.msra.gmra.mrb[48].mxu1 %vm686_vm1, %v3708_v63  ;;  %1589 = vmatprep.mubr.f32.mxu0 %v4498_v24 }
 0x343   : > { %1702 = vmatprep.mubr.f32.mxu1 %v4498_v24 }
 0x345   : > { %3725 = vmatmul.mubr.msk.f32.gmra.mrb[50].mxu0 %vm686_vm1, %v3709_v21 }
 0x346   : > { %3733 = vmatmul.mubr.msk.f32.gmra.mrb[50].mxu1 %vm686_vm1, %v3709_v21  ;;  %1595 = vmatprep.mubr.f32.mxu0 %v4498_v24 }
 0x347   : > { %1708 = vmatprep.mubr.f32.mxu1 %v4498_v24 }
 0x349   : > { %3726 = vmatmul.mubr.msk.f32.gmra.mrb[52].mxu0 %vm686_vm1, %v3710_v23 }
 0x34a   : > { %3734 = vmatmul.mubr.msk.f32.gmra.mrb[52].mxu1 %vm686_vm1, %v3710_v23  ;;  %1601 = vmatprep.mubr.f32.mxu0 %v4498_v24 }
 0x34b   : > { %1714 = vmatprep.mubr.f32.mxu1 %v4498_v24 }
 0x34d   : > { %3727 = vmatmul.mubr.msk.f32.gmra.mrb[54].mxu0 %vm686_vm1, %v3711_v26 }
 0x34e   : > { %3735 = vmatmul.mubr.msk.f32.gmra.mrb[54].mxu1 %vm686_vm1, %v3711_v26  ;;  %1607 = vmatprep.mubr.f32.mxu0 %v4498_v24 }
 0x34f   : > { %1720 = vmatprep.mubr.f32.mxu1 %v4498_v24 }
 0x351   : > { %3728 = vmatmul.mubr.msk.f32.gmra.mrb[56].mxu0 %vm686_vm1, %v3712_v27 }
 0x352   : > { %3736 = vmatmul.mubr.msk.f32.gmra.mrb[56].mxu1 %vm686_vm1, %v3712_v27  ;;  %1613 = vmatprep.mubr.f32.mxu0 %v4498_v24  ;;  %v1473_v27 = vpop.permute.xlu1 %1472 }
 0x353   : > { %1726 = vmatprep.mubr.f32.mxu1 %v4498_v24 }
 0x355   : > { %3729 = vmatmul.mubr.msk.f32.gmra.mrb[58].mxu0 %vm686_vm1, %v3713_v30 }
 0x356   : > { %3737 = vmatmul.mubr.msk.f32.gmra.mrb[58].mxu1 %vm686_vm1, %v3713_v30  ;;  %1619 = vmatprep.mubr.f32.mxu0 %v4498_v24 }
 0x357   : > { %1732 = vmatprep.mubr.f32.mxu1 %v4498_v24 }
 0x359   : > { %3730 = vmatmul.mubr.msk.f32.gmra.mrb[60].mxu0 %vm686_vm1, %v3714_v34 }
 0x35a   : > { %3738 = vmatmul.mubr.msk.f32.gmra.mrb[60].mxu1 %vm686_vm1, %v3714_v34  ;;  %1625 = vmatprep.mubr.f32.mxu0 %v4498_v24 }
 0x35b   : > { %1738 = vmatprep.mubr.f32.mxu1 %v4498_v24 }
 0x35d   : > { %3731 = vmatmul.mubr.msk.f32.gmra.mrb[62].mxu0 %vm686_vm1, %v3715_v35 }
 0x35e   : > { %3739 = vmatmul.mubr.msk.f32.gmra.mrb[62].mxu1 %vm686_vm1, %v3715_v35  ;;  %2051 = vmatprep.mubr.f32.mxu0 %v4498_v24 }
 0x35f   : > { %2164 = vmatprep.mubr.f32.mxu1 %v4498_v24 }
 0x414   : > { %v1585_v29 = vpop.f32.mrb[48].mxu0 }
 0x415   : > { %v1586_v38 = vadd.f32 %v1585_v29, %v1458_v28  ;;  %v1698_v32 = vpop.f32.mrb[48].mxu1  ;;  %v1587_v39 = vpop.f32.mrb[49].mxu0 }
 0x416   : > { %v1699_v33 = vadd.f32 %v1698_v32, %v1458_v28  ;;  %v1588_v40 = vadd.f32 %v1587_v39, %v1458_v28  ;;  %v1700_v41 = vpop.f32.mrb[49].mxu1 }
 0x417   : > { %v1745_v11 = vadd.f32 2.0, %v1586_v38  ;;  %v1701_v42 = vadd.f32 %v1700_v41, %v1458_v28 }
 0x418   : > { %v1747_v47 = vadd.f32 2.0, %v1699_v33  ;;  %v1746_v50 = vadd.f32 2.0, %v1588_v40  ;;  %v1591_v15 = vpop.f32.mrb[50].mxu0 }
 0x419   : > { %v3740_v51 = vmul.f32 -1.442695, %v1745_v11  ;;  %v1748_v52 = vadd.f32 2.0, %v1701_v42  ;;  %v1592_v53 = vadd.f32 %v1591_v15, %v1463_v44  ;;  %v1704_v54 = vpop.f32.mrb[50].mxu1  ;;  %v1593_v16 = vpop.f32.mrb[51].mxu0 }
 0x41a   : > { %v3742_v46 = vmul.f32 -1.442695, %v1747_v47  ;;  %v3741_v56 = vmul.f32 -1.442695, %v1746_v50  ;;  %v1705_v57 = vadd.f32 %v1704_v54, %v1463_v44  ;;  %v1594_v48 = vadd.f32 %v1593_v16, %v1463_v44  ;;  %v1706_v60 = vpop.f32.mrb[51].mxu1 }
 0x41b   : > { %4225 = vpow2.f32 %v3740_v51  ;;  %v3743_v61 = vmul.f32 -1.442695, %v1748_v52  ;;  %v1749_v62 = vadd.f32 2.0, %v1592_v53  ;;  %v1707_v58 = vadd.f32 %v1706_v60, %v1463_v44 }
 0x41c   : > { %4227 = vpow2.f32 %v3742_v46  ;;  %v1751_v5 = vadd.f32 2.0, %v1705_v57  ;;  %v1750_v6 = vadd.f32 2.0, %v1594_v48  ;;  %v1597_v59 = vpop.f32.mrb[52].mxu0 }
 0x41d   : > { %4229 = vpow2.f32 %v3741_v56  ;;  %v3744_v8 = vmul.f32 -1.442695, %v1749_v62  ;;  %v1752_v9 = vadd.f32 2.0, %v1707_v58  ;;  %v1598_v12 = vadd.f32 %v1597_v59, %v1468_v4  ;;  %v1710_v13 = vpop.f32.mrb[52].mxu1  ;;  %v1599_v14 = vpop.f32.mrb[53].mxu0 }
 0x41e   : > { %4231 = vpow2.f32 %v3743_v61  ;;  %v3746_v18 = vmul.f32 -1.442695, %v1751_v5  ;;  %v3745_v19 = vmul.f32 -1.442695, %v1750_v6  ;;  %v1711_v20 = vadd.f32 %v1710_v13, %v1468_v4  ;;  %v1712_v63 = vpop.f32.mrb[53].mxu1 }
 0x41f   : > { %4233 = vpow2.f32 %v3744_v8  ;;  %v3747_v21 = vmul.f32 -1.442695, %v1752_v9  ;;  %v1753_v23 = vadd.f32 2.0, %v1598_v12  ;;  %v1600_v26 = vadd.f32 %v1599_v14, %v1468_v4 }
 0x420   : > { %4235 = vpow2.f32 %v3746_v18  ;;  %v1755_v30 = vadd.f32 2.0, %v1711_v20  ;;  %v1713_v34 = vadd.f32 %v1712_v63, %v1468_v4  ;;  %v1603_v35 = vpop.f32.mrb[54].mxu0 }
 0x421   : > { %4237 = vpow2.f32 %v3745_v19  ;;  %v3748_v28 = vmul.f32 -1.442695, %v1753_v23  ;;  %v1754_v29 = vadd.f32 2.0, %v1600_v26  ;;  %v1604_v38 = vadd.f32 %v1603_v35, %v1473_v27  ;;  %v1716_v32 = vpop.f32.mrb[54].mxu1  ;;  %v1605_v39 = vpop.f32.mrb[55].mxu0 }
 0x422   : > { %4239 = vpow2.f32 %v3747_v21  ;;  %v3750_v33 = vmul.f32 -1.442695, %v1755_v30  ;;  %v1756_v40 = vadd.f32 2.0, %v1713_v34  ;;  %v1718_v41 = vpop.f32.mrb[55].mxu1  ;;  %v1717_v58 = vadd.f32 %v1716_v32, %v1473_v27 }
 0x423   : > { %4241 = vpow2.f32 %v3748_v28  ;;  %v3749_v11 = vmul.f32 -1.442695, %v1754_v29  ;;  %v1757_v42 = vadd.f32 2.0, %v1604_v38  ;;  %v1606_v8 = vadd.f32 %v1605_v39, %v1473_v27 }
 0x424   : > { %4243 = vpow2.f32 %v3750_v33  ;;  %v3751_v44 = vmul.f32 -1.442695, %v1756_v40  ;;  %v1609_v47 = vpop.f32.mrb[56].mxu0  ;;  %v1719_v14 = vadd.f32 %v1718_v41, %v1473_v27  ;;  %v1759_v23 = vadd.f32 2.0, %v1717_v58  ;;  %v1478_v33 = vpop.permute.xlu0 %1477 }
 0x425   : > { %v4226_v50 = vpop.eup %4225  ;;  %4245 = vpow2.f32 %v3749_v11  ;;  %v3752_v15 = vmul.f32 -1.442695, %v1757_v42  ;;  %v5161_v51 = vpop.f32.mrb[56].mxu1  ;;  %v1758_v28 = vadd.f32 2.0, %v1606_v8 }
 0x426   : > { %v5163_v52 = vpop.f32.mrb[57].mxu0  ;;  %v4228_v53 = vpop.eup %4227  ;;  %v1809_v54 = vadd.f32 1.0, %v4226_v50  ;;  %4247 = vpow2.f32 %v3751_v44  ;;  %v1760_v32 = vadd.f32 2.0, %v1719_v14  ;;  %v3754_v44 = vmul.f32 -1.442695, %v1759_v23 }
 0x427   : > { %v5165_v16 = vpop.f32.mrb[57].mxu1  ;;  %v4230_v46 = vpop.eup %4229  ;;  %v1811_v56 = vadd.f32 1.0, %v4228_v53  ;;  %4249 = vpow2.f32 %v3752_v15  ;;  %v1610_v50 = vadd.f32 %v1609_v47, %v1478_v33 }
 0x428   : > { %v4232_v57 = vpop.eup %4231  ;;  %4251 = vrcp.f32 %v1809_v54  ;;  %v1810_v48 = vadd.f32 1.0, %v4230_v46  ;;  %v5167_v60 = vpop.f32.mrb[58].mxu0  ;;  %v3755_v58 = vmul.f32 -1.442695, %v1760_v32 }
 0x429   : > { %v4234_v61 = vpop.eup %4233  ;;  %4253 = vrcp.f32 %v1811_v56  ;;  %v1812_v62 = vadd.f32 1.0, %v4232_v57  ;;  %v5169_v4 = vpop.f32.mrb[58].mxu1  ;;  %v3753_v56 = vmul.f32 -1.442695, %v1758_v28  ;;  %v1723_v57 = vadd.f32 %v5161_v51, %v1478_v33 }
 0x42a   : > { %v5171_v5 = vpop.f32.mrb[59].mxu0  ;;  %v4236_v6 = vpop.eup %4235  ;;  %4255 = vrcp.f32 %v1810_v48  ;;  %v1813_v59 = vadd.f32 1.0, %v4234_v61 }
 0x42b   : > { %v5173_v9 = vpop.f32.mrb[59].mxu1  ;;  %v4238_v12 = vpop.eup %4237  ;;  %4257 = vrcp.f32 %v1812_v62  ;;  %v1815_v13 = vadd.f32 1.0, %v4236_v6 }
 0x42c   : > { %v4240_v18 = vpop.eup %4239  ;;  %4259 = vrcp.f32 %v1813_v59  ;;  %v1814_v19 = vadd.f32 1.0, %v4238_v12  ;;  %v5175_v20 = vpop.f32.mrb[60].mxu0  ;;  %v1612_v59 = vadd.f32 %v5163_v52, %v1478_v33  ;;  %v1725_v12 = vadd.f32 %v5165_v16, %v1478_v33 }
 0x42d   : > { %v4242_v63 = vpop.eup %4241  ;;  %4261 = vrcp.f32 %v1815_v13  ;;  %v1816_v21 = vadd.f32 1.0, %v4240_v18  ;;  %v5177_v26 = vpop.f32.mrb[60].mxu1 }
 0x42e   : > { %v5179_v30 = vpop.f32.mrb[61].mxu0  ;;  %v4244_v34 = vpop.eup %4243  ;;  %4263 = vrcp.f32 %v1814_v19  ;;  %v1817_v35 = vadd.f32 1.0, %v4242_v63 }
 0x42f   : > { %v5181_v29 = vpop.f32.mrb[61].mxu1  ;;  %v4246_v27 = vpop.eup %4245  ;;  %4265 = vrcp.f32 %v1816_v21  ;;  %v1819_v38 = vadd.f32 1.0, %v4244_v34 }
 0x430   : > { %v4248_v39 = vpop.eup %4247  ;;  %4267 = vrcp.f32 %v1817_v35  ;;  %v1818_v40 = vadd.f32 1.0, %v4246_v27  ;;  %v5183_v41 = vpop.f32.mrb[62].mxu0 }
 0x431   : > { %v4250_v11 = vpop.eup %4249  ;;  %4269 = vrcp.f32 %v1819_v38  ;;  %v1820_v42 = vadd.f32 1.0, %v4248_v39  ;;  %v5185_v15 = vpop.f32.mrb[62].mxu1 }
 0x432   : > { %v5187_v53 = vpop.f32.mrb[63].mxu0  ;;  %v4252_v54 = vpop.eup %4251  ;;  %4271 = vrcp.f32 %v1818_v40  ;;  %v1821_v46 = vadd.f32 1.0, %v4250_v11 }
 0x433   : > { %v5190_v48 = vpop.f32.mrb[63].mxu1  ;;  %v4254_v61 = vpop.eup %4253  ;;  %4273 = vrcp.f32 %v1820_v42  ;;  %v1857_v6 = vadd.f32 0.001, %v4252_v54 }
 0x434   : > { %v1483_v62 = vpop.permute.xlu1 %1482  ;;  %v4256_v47 = vpop.eup %4255  ;;  %4275 = vrcp.f32 %v1821_v46  ;;  %v1859_v8 = vadd.f32 0.001, %v4254_v61 }
 0x435   : > { %v1616_v13 = vadd.f32 %v5167_v60, %v1483_v62  ;;  %v4258_v14 = vpop.eup %4257  ;;  %4277 = vpow2.f32 %v3754_v44  ;;  %v1873_v51 = vmul.f32 %v1857_v6, %v4977_v49  ;;  %v1858_v18 = vadd.f32 0.001, %v4256_v47  ;;  %v1488_v27 = vpop.permute.xlu0 %1487 }
 0x436   : > { %v1729_v19 = vadd.f32 %v5169_v4, %v1483_v62  ;;  %v4260_v63 = vpop.eup %4259  ;;  %4279 = vpow2.f32 %v3753_v56  ;;  %v1875_v21 = vmul.f32 %v1859_v8, %v4980_v2  ;;  %v1860_v23 = vadd.f32 0.001, %v4258_v14 }
 0x437   : > { %v1618_v52 = vadd.f32 %v5171_v5, %v1483_v62  ;;  %v4262_v34 = vpop.eup %4261  ;;  %4281 = vpow2.f32 %v3755_v58  ;;  %v5199_v35 = vadd.f32 %v1873_v51, %v1610_v50  ;;  %v1874_v16 = vmul.f32 %v1858_v18, %v4984_v7 }
 0x438   : > { %v1861_v60 = vadd.f32 0.001, %v4260_v63  ;;  %v4264_v28 = vpop.eup %4263  ;;  %v5202_v49 = vadd.f32 %v1875_v21, %v1723_v57  ;;  %v1876_v4 = vmul.f32 %v1860_v23, %v4988_v17  ;;  %v1863_v38 = vadd.f32 0.001, %v4262_v34  ;;  %v1493_v57 = vpop.permute.xlu1 %1492 }
 0x439   : > { %v1731_v32 = vadd.f32 %v5173_v9, %v1483_v62  ;;  %v4266_v2 = vpop.eup %4265  ;;  %v5206_v39 = vadd.f32 %v1874_v16, %v1612_v59  ;;  %v1862_v33 = vadd.f32 0.001, %v4264_v28  ;;  %v1622_v40 = vadd.f32 %v5175_v20, %v1488_v27 }
 0x43a   : > { %v1877_v5 = vmul.f32 %v1861_v60, %v4992_v22  ;;  %v4268_v11 = vpop.eup %4267  ;;  %v5210_v7 = vadd.f32 %v1876_v4, %v1725_v12  ;;  %v1879_v42 = vmul.f32 %v1863_v38, %v4996_v0  ;;  %v1864_v44 = vadd.f32 0.001, %v4266_v2 }
 0x43b   : > { %v1735_v50 = vadd.f32 %v5177_v26, %v1488_v27  ;;  %v4270_v17 = vpop.eup %4269  ;;  %v1878_v9 = vmul.f32 %v1862_v33, %v5000_v10  ;;  %v1865_v46 = vadd.f32 0.001, %v4268_v11  ;;  %v1624_v56 = vadd.f32 %v5179_v30, %v1488_v27 }
 0x43c   : > { %v5214_v54 = vadd.f32 %v1877_v5, %v1616_v13  ;;  %v4272_v22 = vpop.eup %4271  ;;  %v5218_v61 = vadd.f32 %v1879_v42, %v1729_v19  ;;  %v1880_v20 = vmul.f32 %v1864_v44, %v5006_v43  ;;  %v1867_v62 = vadd.f32 0.001, %v4270_v17 }
 0x43d   : > { %v1737_v0 = vadd.f32 %v5181_v29, %v1488_v27  ;;  %v4274_v58 = vpop.eup %4273  ;;  %v5222_v6 = vadd.f32 %v1878_v9, %v1618_v52  ;;  %v1881_v26 = vmul.f32 %v1865_v46, %v5009_v45  ;;  %v1866_v59 = vadd.f32 0.001, %v4272_v22  ;;  %v3758_v9 = vld [vmem:[%s5739_s1 + $0x90] sm:$0xff]  ;;  %v3759_v46 = vld [vmem:[%s5739_s1 + $0x98] sm:$0xff]  ;;  %v3761_v22 = vld [vmem:[%s5739_s1 + $0xa8] sm:$0xff] }
 0x43e   : > { %v1628_v10 = vadd.f32 %v5183_v41, %v1493_v57  ;;  %v4276_v47 = vpop.eup %4275  ;;  %v4021_v30 = vpack.c.bf16 %v5214_v54, %v5199_v35  ;;  %v5228_v8 = vadd.f32 %v1880_v20, %v1731_v32  ;;  %v1883_v12 = vmul.f32 %v1867_v62, %v5014_v55  ;;  %v3763_v20 = vld [vmem:[%s5739_s1 + $0xb8] sm:$0xff] }
 0x43f   : > { %v1868_v43 = vadd.f32 0.001, %v4274_v58  ;;  %v4278_v13 = vpop.eup %4277  ;;  %v5231_v14 = vadd.f32 %v1881_v26, %v1622_v40  ;;  %v1882_v29 = vmul.f32 %v1866_v59, %v5021_v1  ;;  %v1869_v51 = vadd.f32 0.001, %v4276_v47  ;;  %v1926_v26 = vpop.permute.xlu0 %1925 }
 0x440   : > { %v4019_v45 = vpack.c.bf16 %v5222_v6, %v5206_v39  ;;  %v4280_v18 = vpop.eup %4279  ;;  %v1823_v41 = vadd.f32 1.0, %v4278_v13  ;;  %v5236_v19 = vadd.f32 %v1883_v12, %v1735_v50  ;;  %v4027_v21 = vpack.c.bf16 %v5228_v8, %v5210_v7  ;;  %v1931_v47 = vpop.permute.xlu1 %1930 }
 0x441   : > { %v1884_v63 = vmul.f32 %v1868_v43, %v5023_v3  ;;  %v4282_v55 = vpop.eup %4281  ;;  %v1822_v23 = vadd.f32 1.0, %v4280_v18  ;;  %v4029_v52 = vpack.c.bf16 %v5218_v61, %v5202_v49  ;;  %v5243_v34 = vadd.f32 %v1882_v29, %v1624_v56  ;;  %v3760_v56 = vld [vmem:[%s5739_s1 + $0xa0] sm:$0xff] }
 0x442   : > { %v1885_v1 = vmul.f32 %v1869_v51, %v5029_v25  ;;  %4020 = vmatprep.subr.bf16.mxu0 %v4019_v45  ;;  %4283 = vrcp.f32 %v1823_v41  ;;  %v1824_v16 = vadd.f32 1.0, %v4282_v55  ;;  %4028 = vmatprep.subr.bf16.mxu1 %v4027_v21  ;;  %v1741_v2 = vadd.f32 %v5185_v15, %v1493_v57 }
 0x443   : > { %v5246_v60 = vadd.f32 %v1884_v63, %v1737_v0  ;;  %4022 = vmatpush1.bf16.msra.mxu0 %v4021_v30  ;;  %4285 = vrcp.f32 %v1822_v23  ;;  %4030 = vmatpush1.bf16.msra.mxu1 %v4029_v52  ;;  %v1630_v33 = vadd.f32 %v5187_v53, %v1493_v57  ;;  %v1743_v42 = vadd.f32 %v5190_v48, %v1493_v57  ;;  %v3757_v48 = vld [vmem:[%s5739_s1 + $0x88] sm:$0xff]  ;;  %v3762_v57 = vld [vmem:[%s5739_s1 + $0xb0] sm:$0xff] }
 0x444   : > { %v5248_v3 = vadd.f32 %v1885_v1, %v1628_v10  ;;  %4287 = vrcp.f32 %v1824_v16 }
 0x44c   : > { %v4284_v28 = vpop.eup %4283 }
 0x44d   : > { %v4286_v27 = vpop.eup %4285  ;;  %v1871_v4 = vadd.f32 0.001, %v4284_v28 }
 0x44e   : > { %v4288_v38 = vpop.eup %4287  ;;  %v1870_v32 = vadd.f32 0.001, %v4286_v27 }
 0x44f   : > { %v1887_v25 = vmul.f32 %v1871_v4, %v5033_v31  ;;  %v1872_v5 = vadd.f32 0.001, %v4288_v38  ;;  %v4025_v31 = vpack.c.bf16 %v5248_v3, %v5231_v14 }
 0x450   : > { %v1886_v40 = vmul.f32 %v1870_v32, %v5037_v36 }
 0x451   : > { %v5254_v11 = vadd.f32 %v1887_v25, %v1741_v2  ;;  %v1888_v44 = vmul.f32 %v1872_v5, %v5039_v37  ;;  %v3756_v37 = vld [vmem:[%s5739_s1 + $0x80] sm:$0xff]  ;;  %v1936_v5 = vpop.permute.xlu0 %1935 }
 0x452   : > { %v5258_v50 = vadd.f32 %v1886_v40, %v1630_v33 }
 0x453   : > { %v5260_v17 = vadd.f32 %v1888_v44, %v1743_v42  ;;  %v4033_v36 = vpack.c.bf16 %v5254_v11, %v5236_v19 }
 0x454   : > { %v4023_v15 = vpack.c.bf16 %v5258_v50, %v5243_v34 }
 0x455   : > { %v4031_v53 = vpack.c.bf16 %v5260_v17, %v5246_v60 }
 0x456   : > { %4024 = vmatprep.subr.bf16.mxu0 %v4023_v15 }
 0x457   : > { %4032 = vmatprep.subr.bf16.mxu1 %v4031_v53  ;;  %4026 = vmatpush1.bf16.msra.mxu0 %v4025_v31  ;;  %v1941_v31 = vpop.permute.xlu1 %1940 }
 0x458   : > { %4034 = vmatpush1.bf16.msra.mxu1 %v4033_v36 }
 0x45a   : > { %3772 = vmatmul.mubr.msk.f32.vlgmr.msra.gmra.mrb[64].mxu0 %vm347_vm0, %v3756_v37 }
 0x45b   : > { %3780 = vmatmul.mubr.msk.f32.vlgmr.msra.gmra.mrb[64].mxu1 %vm347_vm0, %v3756_v37  ;;  %2057 = vmatprep.mubr.f32.mxu0 %v4498_v24 }
 0x45c   : > { %2170 = vmatprep.mubr.f32.mxu1 %v4498_v24 }
 0x45e   : > { %3773 = vmatmul.mubr.msk.f32.gmra.mrb[66].mxu0 %vm347_vm0, %v3757_v48 }
 0x45f   : > { %3781 = vmatmul.mubr.msk.f32.gmra.mrb[66].mxu1 %vm347_vm0, %v3757_v48  ;;  %2063 = vmatprep.mubr.f32.mxu0 %v4498_v24 }
 0x460   : > { %2176 = vmatprep.mubr.f32.mxu1 %v4498_v24 }
 0x462   : > { %3774 = vmatmul.mubr.msk.f32.gmra.mrb[68].mxu0 %vm347_vm0, %v3758_v9 }
 0x463   : > { %3782 = vmatmul.mubr.msk.f32.gmra.mrb[68].mxu1 %vm347_vm0, %v3758_v9  ;;  %2069 = vmatprep.mubr.f32.mxu0 %v4498_v24 }
 0x464   : > { %2182 = vmatprep.mubr.f32.mxu1 %v4498_v24 }
 0x466   : > { %3775 = vmatmul.mubr.msk.f32.gmra.mrb[70].mxu0 %vm347_vm0, %v3759_v46 }
 0x467   : > { %3783 = vmatmul.mubr.msk.f32.gmra.mrb[70].mxu1 %vm347_vm0, %v3759_v46  ;;  %2075 = vmatprep.mubr.f32.mxu0 %v4498_v24 }
 0x468   : > { %2188 = vmatprep.mubr.f32.mxu1 %v4498_v24 }
 0x46a   : > { %3776 = vmatmul.mubr.msk.f32.gmra.mrb[72].mxu0 %vm347_vm0, %v3760_v56 }
 0x46b   : > { %3784 = vmatmul.mubr.msk.f32.gmra.mrb[72].mxu1 %vm347_vm0, %v3760_v56  ;;  %2081 = vmatprep.mubr.f32.mxu0 %v4498_v24 }
 0x46c   : > { %2194 = vmatprep.mubr.f32.mxu1 %v4498_v24 }
 0x46e   : > { %3777 = vmatmul.mubr.msk.f32.gmra.mrb[74].mxu0 %vm347_vm0, %v3761_v22 }
 0x46f   : > { %3785 = vmatmul.mubr.msk.f32.gmra.mrb[74].mxu1 %vm347_vm0, %v3761_v22  ;;  %2087 = vmatprep.mubr.f32.mxu0 %v4498_v24 }
 0x470   : > { %2200 = vmatprep.mubr.f32.mxu1 %v4498_v24 }
 0x472   : > { %3778 = vmatmul.mubr.msk.f32.gmra.mrb[76].mxu0 %vm347_vm0, %v3762_v57 }
 0x473   : > { %3786 = vmatmul.mubr.msk.f32.gmra.mrb[76].mxu1 %vm347_vm0, %v3762_v57  ;;  %2093 = vmatprep.mubr.f32.mxu0 %v4498_v24 }
 0x474   : > { %2206 = vmatprep.mubr.f32.mxu1 %v4498_v24 }
 0x476   : > { %3779 = vmatmul.mubr.msk.f32.gmra.mrb[78].mxu0 %vm347_vm0, %v3763_v20 }
 0x477   : > { %3787 = vmatmul.mubr.msk.f32.gmra.mrb[78].mxu1 %vm347_vm0, %v3763_v20  ;;  %2391 = vmatprep.mubr.f32.mxu0 %v4498_v24 }
 0x478   : > { %2504 = vmatprep.mubr.f32.mxu1 %v4498_v24 }
 0x52d   : > { %v2053_v62 = vpop.f32.mrb[64].mxu0 }
 0x52e   : > { %v2166_v0 = vpop.f32.mrb[64].mxu1  ;;  %v2055_v58 = vpop.f32.mrb[65].mxu0  ;;  %v2054_v10 = vadd.f32 %v2053_v62, %v1926_v26 }
 0x52f   : > { %v2168_v59 = vpop.f32.mrb[65].mxu1  ;;  %v2167_v30 = vadd.f32 %v2166_v0, %v1926_v26  ;;  %v2056_v12 = vadd.f32 %v2055_v58, %v1926_v26 }
 0x530   : > { %v2169_v13 = vadd.f32 %v2168_v59, %v1926_v26  ;;  %v2213_v21 = vmax.f32 %v2054_v10, 0.0 }
 0x531   : > { %v2059_v43 = vpop.f32.mrb[66].mxu0  ;;  %v2215_v52 = vmax.f32 %v2167_v30, 0.0  ;;  %v2214_v1 = vmax.f32 %v2056_v12, 0.0 }
 0x532   : > { %v2060_v29 = vadd.f32 %v2059_v43, %v1931_v47  ;;  %v2172_v51 = vpop.f32.mrb[66].mxu1  ;;  %v2061_v45 = vpop.f32.mrb[67].mxu0  ;;  %v2216_v4 = vmax.f32 %v2169_v13, 0.0 }
 0x533   : > { %v2173_v18 = vadd.f32 %v2172_v51, %v1931_v47  ;;  %v2062_v41 = vadd.f32 %v2061_v45, %v1931_v47  ;;  %v2174_v63 = vpop.f32.mrb[67].mxu1  ;;  %v1946_v45 = vpop.permute.xlu0 %1945 }
 0x534   : > { %v2217_v55 = vmax.f32 %v2060_v29, 0.0  ;;  %v2175_v23 = vadd.f32 %v2174_v63, %v1931_v47 }
 0x535   : > { %v2219_v16 = vmax.f32 %v2173_v18, 0.0  ;;  %v2218_v28 = vmax.f32 %v2062_v41, 0.0  ;;  %v2065_v27 = vpop.f32.mrb[68].mxu0 }
 0x536   : > { %v4037_v38 = vpack.c.bf16 %v2217_v55, %v2213_v21  ;;  %v2220_v32 = vmax.f32 %v2175_v23, 0.0  ;;  %v2178_v2 = vpop.f32.mrb[68].mxu1  ;;  %v2067_v25 = vpop.f32.mrb[69].mxu0  ;;  %v2066_v15 = vadd.f32 %v2065_v27, %v1936_v5 }
 0x537   : > { %v4053_v33 = vpack.c.bf16 %v2219_v16, %v2215_v52  ;;  %v4035_v40 = vpack.c.bf16 %v2218_v28, %v2214_v1  ;;  %v2180_v42 = vpop.f32.mrb[69].mxu1  ;;  %v2179_v53 = vadd.f32 %v2178_v2, %v1936_v5  ;;  %v2068_v36 = vadd.f32 %v2067_v25, %v1936_v5  ;;  %v1951_v23 = vpop.permute.xlu1 %1950 }
 0x538   : > { %v4051_v44 = vpack.c.bf16 %v2220_v32, %v2216_v4  ;;  %v2181_v48 = vadd.f32 %v2180_v42, %v1936_v5  ;;  %v2221_v62 = vmax.f32 %v2066_v15, 0.0 }
 0x539   : > { %v2071_v37 = vpop.f32.mrb[70].mxu0  ;;  %4036 = vmatprep.subr.bf16.mxu0 %v4035_v40  ;;  %v2223_v26 = vmax.f32 %v2179_v53, 0.0  ;;  %v2222_v59 = vmax.f32 %v2068_v36, 0.0 }
 0x53a   : > { %v2072_v9 = vadd.f32 %v2071_v37, %v1941_v31  ;;  %v2184_v46 = vpop.f32.mrb[70].mxu1  ;;  %4052 = vmatprep.subr.bf16.mxu1 %v4051_v44  ;;  %v2073_v56 = vpop.f32.mrb[71].mxu0  ;;  %4038 = vmatpush1.bf16.msra.mxu0 %v4037_v38  ;;  %v2224_v12 = vmax.f32 %v2181_v48, 0.0 }
 0x53b   : > { %v2185_v22 = vadd.f32 %v2184_v46, %v1941_v31  ;;  %v2074_v57 = vadd.f32 %v2073_v56, %v1941_v31  ;;  %v2186_v20 = vpop.f32.mrb[71].mxu1  ;;  %4054 = vmatpush1.bf16.msra.mxu1 %v4053_v33  ;;  %v1956_v56 = vpop.permute.xlu0 %1955 }
 0x53c   : > { %v2225_v0 = vmax.f32 %v2072_v9, 0.0  ;;  %v2187_v58 = vadd.f32 %v2186_v20, %v1941_v31 }
 0x53d   : > { %v2227_v10 = vmax.f32 %v2185_v22, 0.0  ;;  %v2226_v47 = vmax.f32 %v2074_v57, 0.0  ;;  %v2077_v30 = vpop.f32.mrb[72].mxu0 }
 0x53e   : > { %v4041_v43 = vpack.c.bf16 %v2225_v0, %v2221_v62  ;;  %v2228_v13 = vmax.f32 %v2187_v58, 0.0  ;;  %v2190_v29 = vpop.f32.mrb[72].mxu1  ;;  %v2079_v51 = vpop.f32.mrb[73].mxu0  ;;  %v2078_v55 = vadd.f32 %v2077_v30, %v1946_v45 }
 0x53f   : > { %v4057_v18 = vpack.c.bf16 %v2227_v10, %v2223_v26  ;;  %v4039_v41 = vpack.c.bf16 %v2226_v47, %v2222_v59  ;;  %v2192_v63 = vpop.f32.mrb[73].mxu1  ;;  %v2191_v52 = vadd.f32 %v2190_v29, %v1946_v45  ;;  %v2080_v1 = vadd.f32 %v2079_v51, %v1946_v45  ;;  %v1961_v58 = vpop.permute.xlu1 %1960 }
 0x540   : > { %v4055_v21 = vpack.c.bf16 %v2228_v13, %v2224_v12  ;;  %v2193_v28 = vadd.f32 %v2192_v63, %v1946_v45  ;;  %v2229_v5 = vmax.f32 %v2078_v55, 0.0 }
 0x541   : > { %v2083_v16 = vpop.f32.mrb[74].mxu0  ;;  %4040 = vmatprep.subr.bf16.mxu0 %v4039_v41  ;;  %v2231_v42 = vmax.f32 %v2191_v52, 0.0  ;;  %v2230_v44 = vmax.f32 %v2080_v1, 0.0 }
 0x542   : > { %v2084_v27 = vadd.f32 %v2083_v16, %v1951_v23  ;;  %v2196_v4 = vpop.f32.mrb[74].mxu1  ;;  %4056 = vmatprep.subr.bf16.mxu1 %v4055_v21  ;;  %v2085_v38 = vpop.f32.mrb[75].mxu0  ;;  %4042 = vmatpush1.bf16.msra.mxu0 %v4041_v43  ;;  %v2232_v36 = vmax.f32 %v2193_v28, 0.0 }
 0x543   : > { %v2197_v32 = vadd.f32 %v2196_v4, %v1951_v23  ;;  %v2086_v2 = vadd.f32 %v2085_v38, %v1951_v23  ;;  %v2198_v25 = vpop.f32.mrb[75].mxu1  ;;  %4058 = vmatpush1.bf16.msra.mxu1 %v4057_v18  ;;  %v3788_v38 = vld [vmem:[%s5741_s3 + $0x80] sm:$0xff] }
 0x544   : > { %v2233_v33 = vmax.f32 %v2084_v27, 0.0  ;;  %v2199_v40 = vadd.f32 %v2198_v25, %v1951_v23  ;;  %v3791_v25 = vld [vmem:[%s5741_s3 + $0x98] sm:$0xff] }
 0x545   : > { %v2235_v15 = vmax.f32 %v2197_v32, 0.0  ;;  %v2234_v31 = vmax.f32 %v2086_v2, 0.0  ;;  %v2089_v53 = vpop.f32.mrb[76].mxu0  ;;  %v3789_v32 = vld [vmem:[%s5741_s3 + $0x88] sm:$0xff]  ;;  %v3790_v2 = vld [vmem:[%s5741_s3 + $0x90] sm:$0xff] }
 0x546   : > { %v4045_v37 = vpack.c.bf16 %v2233_v33, %v2229_v5  ;;  %v2236_v48 = vmax.f32 %v2199_v40, 0.0  ;;  %v2202_v9 = vpop.f32.mrb[76].mxu1  ;;  %v2091_v46 = vpop.f32.mrb[77].mxu0  ;;  %v2090_v0 = vadd.f32 %v2089_v53, %v1956_v56  ;;  %v3792_v5 = vld [vmem:[%s5741_s3 + $0xa0] sm:$0xff]  ;;  %v3793_v33 = vld [vmem:[%s5741_s3 + $0xa8] sm:$0xff]  ;;  %v3794_v40 = vld [vmem:[%s5741_s3 + $0xb0] sm:$0xff] }
 0x547   : > { %v4061_v22 = vpack.c.bf16 %v2235_v15, %v2231_v42  ;;  %v4043_v57 = vpack.c.bf16 %v2234_v31, %v2230_v44  ;;  %v2204_v20 = vpop.f32.mrb[77].mxu1  ;;  %v2203_v26 = vadd.f32 %v2202_v9, %v1956_v56  ;;  %v2092_v59 = vadd.f32 %v2091_v46, %v1956_v56  ;;  %v3795_v42 = vld [vmem:[%s5741_s3 + $0xb8] sm:$0xff]  ;;  %v2266_v44 = vpop.permute.xlu0 %2265 }
 0x548   : > { %v4059_v62 = vpack.c.bf16 %v2236_v48, %v2232_v36  ;;  %v2205_v47 = vadd.f32 %v2204_v20, %v1956_v56  ;;  %v2237_v45 = vmax.f32 %v2090_v0, 0.0 }
 0x549   : > { %v2095_v10 = vpop.f32.mrb[78].mxu0  ;;  %4044 = vmatprep.subr.bf16.mxu0 %v4043_v57  ;;  %v2239_v63 = vmax.f32 %v2203_v26, 0.0  ;;  %v2238_v21 = vmax.f32 %v2092_v59, 0.0 }
 0x54a   : > { %v2096_v30 = vadd.f32 %v2095_v10, %v1961_v58  ;;  %v2208_v12 = vpop.f32.mrb[78].mxu1  ;;  %4060 = vmatprep.subr.bf16.mxu1 %v4059_v62  ;;  %v2097_v43 = vpop.f32.mrb[79].mxu0  ;;  %4046 = vmatpush1.bf16.msra.mxu0 %v4045_v37  ;;  %v2240_v52 = vmax.f32 %v2205_v47, 0.0 }
 0x54b   : > { %v2209_v13 = vadd.f32 %v2208_v12, %v1961_v58  ;;  %v2098_v29 = vadd.f32 %v2097_v43, %v1961_v58  ;;  %v2210_v51 = vpop.f32.mrb[79].mxu1  ;;  %4062 = vmatpush1.bf16.msra.mxu1 %v4061_v22  ;;  %v2271_v22 = vpop.permute.xlu1 %2270 }
 0x54c   : > { %v2241_v18 = vmax.f32 %v2096_v30, 0.0  ;;  %v2211_v41 = vadd.f32 %v2210_v51, %v1961_v58 }
 0x54d   : > { %v2243_v55 = vmax.f32 %v2209_v13, 0.0  ;;  %v2242_v23 = vmax.f32 %v2098_v29, 0.0 }
 0x54e   : > { %v4049_v1 = vpack.c.bf16 %v2241_v18, %v2237_v45  ;;  %v2244_v16 = vmax.f32 %v2211_v41, 0.0  ;;  %v2276_v18 = vpop.permute.xlu0 %2275 }
 0x54f   : > { %v4065_v28 = vpack.c.bf16 %v2243_v55, %v2239_v63  ;;  %v4047_v27 = vpack.c.bf16 %v2242_v23, %v2238_v21 }
 0x550   : > { %v4063_v4 = vpack.c.bf16 %v2244_v16, %v2240_v52 }
 0x551   : > { %4048 = vmatprep.subr.bf16.mxu0 %v4047_v27 }
 0x552   : > { %4064 = vmatprep.subr.bf16.mxu1 %v4063_v4  ;;  %4050 = vmatpush1.bf16.msra.mxu0 %v4049_v1 }
 0x553   : > { %4066 = vmatpush1.bf16.msra.mxu1 %v4065_v28 }
 0x555   : > { %3804 = vmatmul.mubr.msk.f32.vlgmr.msra.gmra.mrb[80].mxu0 %vm686_vm1, %v3788_v38 }
 0x556   : > { %3812 = vmatmul.mubr.msk.f32.vlgmr.msra.gmra.mrb[80].mxu1 %vm686_vm1, %v3788_v38  ;;  %2397 = vmatprep.mubr.f32.mxu0 %v4498_v24 }
 0x557   : > { %2510 = vmatprep.mubr.f32.mxu1 %v4498_v24 }
 0x559   : > { %3805 = vmatmul.mubr.msk.f32.gmra.mrb[82].mxu0 %vm686_vm1, %v3789_v32 }
 0x55a   : > { %3813 = vmatmul.mubr.msk.f32.gmra.mrb[82].mxu1 %vm686_vm1, %v3789_v32  ;;  %2403 = vmatprep.mubr.f32.mxu0 %v4498_v24 }
 0x55b   : > { %2516 = vmatprep.mubr.f32.mxu1 %v4498_v24 }
 0x55d   : > { %3806 = vmatmul.mubr.msk.f32.gmra.mrb[84].mxu0 %vm686_vm1, %v3790_v2 }
 0x55e   : > { %3814 = vmatmul.mubr.msk.f32.gmra.mrb[84].mxu1 %vm686_vm1, %v3790_v2  ;;  %2409 = vmatprep.mubr.f32.mxu0 %v4498_v24 }
 0x55f   : > { %2522 = vmatprep.mubr.f32.mxu1 %v4498_v24 }
 0x561   : > { %3807 = vmatmul.mubr.msk.f32.gmra.mrb[86].mxu0 %vm686_vm1, %v3791_v25 }
 0x562   : > { %3815 = vmatmul.mubr.msk.f32.gmra.mrb[86].mxu1 %vm686_vm1, %v3791_v25  ;;  %2415 = vmatprep.mubr.f32.mxu0 %v4498_v24 }
 0x563   : > { %2528 = vmatprep.mubr.f32.mxu1 %v4498_v24 }
 0x565   : > { %3808 = vmatmul.mubr.msk.f32.gmra.mrb[88].mxu0 %vm686_vm1, %v3792_v5 }
 0x566   : > { %3816 = vmatmul.mubr.msk.f32.gmra.mrb[88].mxu1 %vm686_vm1, %v3792_v5  ;;  %2421 = vmatprep.mubr.f32.mxu0 %v4498_v24  ;;  %v2281_v5 = vpop.permute.xlu1 %2280 }
 0x567   : > { %2534 = vmatprep.mubr.f32.mxu1 %v4498_v24 }
 0x569   : > { %3809 = vmatmul.mubr.msk.f32.gmra.mrb[90].mxu0 %vm686_vm1, %v3793_v33 }
 0x56a   : > { %3817 = vmatmul.mubr.msk.f32.gmra.mrb[90].mxu1 %vm686_vm1, %v3793_v33  ;;  %2427 = vmatprep.mubr.f32.mxu0 %v4498_v24 }
 0x56b   : > { %2540 = vmatprep.mubr.f32.mxu1 %v4498_v24 }
 0x56d   : > { %3810 = vmatmul.mubr.msk.f32.gmra.mrb[92].mxu0 %vm686_vm1, %v3794_v40 }
 0x56e   : > { %3818 = vmatmul.mubr.msk.f32.gmra.mrb[92].mxu1 %vm686_vm1, %v3794_v40  ;;  %2433 = vmatprep.mubr.f32.mxu0 %v4498_v24 }
 0x56f   : > { %2546 = vmatprep.mubr.f32.mxu1 %v4498_v24 }
 0x571   : > { %3811 = vmatmul.mubr.msk.f32.gmra.mrb[94].mxu0 %vm686_vm1, %v3795_v42 }
 0x572   : > { %3819 = vmatmul.mubr.msk.f32.gmra.mrb[94].mxu1 %vm686_vm1, %v3795_v42  ;;  %2859 = vmatprep.mubr.f32.mxu0 %v4498_v24 }
 0x573   : > { %2972 = vmatprep.mubr.f32.mxu1 %v4498_v24 }
 0x628   : > { %v2393_v15 = vpop.f32.mrb[80].mxu0 }
 0x629   : > { %v2394_v31 = vadd.f32 %v2393_v15, %v2266_v44  ;;  %v2506_v53 = vpop.f32.mrb[80].mxu1  ;;  %v2395_v36 = vpop.f32.mrb[81].mxu0 }
 0x62a   : > { %v2507_v37 = vadd.f32 %v2506_v53, %v2266_v44  ;;  %v2396_v48 = vadd.f32 %v2395_v36, %v2266_v44  ;;  %v2508_v9 = vpop.f32.mrb[81].mxu1 }
 0x62b   : > { %v2553_v46 = vadd.f32 2.0, %v2394_v31  ;;  %v2509_v56 = vadd.f32 %v2508_v9, %v2266_v44 }
 0x62c   : > { %v2555_v57 = vadd.f32 2.0, %v2507_v37  ;;  %v2554_v20 = vadd.f32 2.0, %v2396_v48  ;;  %v2399_v62 = vpop.f32.mrb[82].mxu0 }
 0x62d   : > { %v3820_v0 = vmul.f32 -1.442695, %v2553_v46  ;;  %v2556_v58 = vadd.f32 2.0, %v2509_v56  ;;  %v2400_v26 = vadd.f32 %v2399_v62, %v2271_v22  ;;  %v2512_v59 = vpop.f32.mrb[82].mxu1  ;;  %v2401_v10 = vpop.f32.mrb[83].mxu0 }
 0x62e   : > { %v3822_v47 = vmul.f32 -1.442695, %v2555_v57  ;;  %v3821_v30 = vmul.f32 -1.442695, %v2554_v20  ;;  %v2513_v12 = vadd.f32 %v2512_v59, %v2271_v22  ;;  %v2402_v43 = vadd.f32 %v2401_v10, %v2271_v22  ;;  %v2514_v13 = vpop.f32.mrb[83].mxu1 }
 0x62f   : > { %4289 = vpow2.f32 %v3820_v0  ;;  %v3823_v29 = vmul.f32 -1.442695, %v2556_v58  ;;  %v2557_v51 = vadd.f32 2.0, %v2400_v26  ;;  %v2515_v45 = vadd.f32 %v2514_v13, %v2271_v22 }
 0x630   : > { %4291 = vpow2.f32 %v3822_v47  ;;  %v2559_v41 = vadd.f32 2.0, %v2513_v12  ;;  %v2558_v63 = vadd.f32 2.0, %v2402_v43  ;;  %v2405_v21 = vpop.f32.mrb[84].mxu0 }
 0x631   : > { %4293 = vpow2.f32 %v3821_v30  ;;  %v3824_v55 = vmul.f32 -1.442695, %v2557_v51  ;;  %v2560_v23 = vadd.f32 2.0, %v2515_v45  ;;  %v2406_v52 = vadd.f32 %v2405_v21, %v2276_v18  ;;  %v2518_v1 = vpop.f32.mrb[84].mxu1  ;;  %v2407_v16 = vpop.f32.mrb[85].mxu0 }
 0x632   : > { %4295 = vpow2.f32 %v3823_v29  ;;  %v3826_v28 = vmul.f32 -1.442695, %v2559_v41  ;;  %v3825_v27 = vmul.f32 -1.442695, %v2558_v63  ;;  %v2519_v4 = vadd.f32 %v2518_v1, %v2276_v18  ;;  %v2520_v38 = vpop.f32.mrb[85].mxu1 }
 0x633   : > { %4297 = vpow2.f32 %v3824_v55  ;;  %v3827_v32 = vmul.f32 -1.442695, %v2560_v23  ;;  %v2561_v2 = vadd.f32 2.0, %v2406_v52  ;;  %v2408_v25 = vadd.f32 %v2407_v16, %v2276_v18 }
 0x634   : > { %4299 = vpow2.f32 %v3826_v28  ;;  %v2563_v33 = vadd.f32 2.0, %v2519_v4  ;;  %v2521_v40 = vadd.f32 %v2520_v38, %v2276_v18  ;;  %v2411_v42 = vpop.f32.mrb[86].mxu0 }
 0x635   : > { %4301 = vpow2.f32 %v3825_v27  ;;  %v3828_v44 = vmul.f32 -1.442695, %v2561_v2  ;;  %v2562_v15 = vadd.f32 2.0, %v2408_v25  ;;  %v2412_v31 = vadd.f32 %v2411_v42, %v2281_v5  ;;  %v2524_v53 = vpop.f32.mrb[86].mxu1  ;;  %v2413_v36 = vpop.f32.mrb[87].mxu0 }
 0x636   : > { %4303 = vpow2.f32 %v3827_v32  ;;  %v3830_v37 = vmul.f32 -1.442695, %v2563_v33  ;;  %v2564_v48 = vadd.f32 2.0, %v2521_v40  ;;  %v2526_v9 = vpop.f32.mrb[87].mxu1  ;;  %v2525_v45 = vadd.f32 %v2524_v53, %v2281_v5 }
 0x637   : > { %4305 = vpow2.f32 %v3828_v44  ;;  %v3829_v46 = vmul.f32 -1.442695, %v2562_v15  ;;  %v2565_v56 = vadd.f32 2.0, %v2412_v31  ;;  %v2414_v55 = vadd.f32 %v2413_v36, %v2281_v5 }
 0x638   : > { %4307 = vpow2.f32 %v3830_v37  ;;  %v3831_v22 = vmul.f32 -1.442695, %v2564_v48  ;;  %v2417_v57 = vpop.f32.mrb[88].mxu0  ;;  %v2527_v16 = vadd.f32 %v2526_v9, %v2281_v5  ;;  %v2567_v2 = vadd.f32 2.0, %v2525_v45  ;;  %v2286_v37 = vpop.permute.xlu0 %2285 }
 0x639   : > { %v4290_v20 = vpop.eup %4289  ;;  %4309 = vpow2.f32 %v3829_v46  ;;  %v3832_v62 = vmul.f32 -1.442695, %v2565_v56  ;;  %v5382_v0 = vpop.f32.mrb[88].mxu1  ;;  %v2566_v44 = vadd.f32 2.0, %v2414_v55 }
 0x63a   : > { %v5384_v58 = vpop.f32.mrb[89].mxu0  ;;  %v4292_v26 = vpop.eup %4291  ;;  %v2617_v59 = vadd.f32 1.0, %v4290_v20  ;;  %4311 = vpow2.f32 %v3831_v22  ;;  %v2568_v53 = vadd.f32 2.0, %v2527_v16  ;;  %v3834_v22 = vmul.f32 -1.442695, %v2567_v2 }
 0x63b   : > { %v5386_v10 = vpop.f32.mrb[89].mxu1  ;;  %v4294_v47 = vpop.eup %4293  ;;  %v2619_v30 = vadd.f32 1.0, %v4292_v26  ;;  %4313 = vpow2.f32 %v3832_v62  ;;  %v2418_v20 = vadd.f32 %v2417_v57, %v2286_v37 }
 0x63c   : > { %v4296_v12 = vpop.eup %4295  ;;  %4315 = vrcp.f32 %v2617_v59  ;;  %v2618_v43 = vadd.f32 1.0, %v4294_v47  ;;  %v5388_v13 = vpop.f32.mrb[90].mxu0  ;;  %v3835_v45 = vmul.f32 -1.442695, %v2568_v53 }
 0x63d   : > { %v4298_v29 = vpop.eup %4297  ;;  %4317 = vrcp.f32 %v2619_v30  ;;  %v2620_v51 = vadd.f32 1.0, %v4296_v12  ;;  %v5390_v18 = vpop.f32.mrb[90].mxu1  ;;  %v3833_v30 = vmul.f32 -1.442695, %v2566_v44  ;;  %v2531_v12 = vadd.f32 %v5382_v0, %v2286_v37 }
 0x63e   : > { %v5392_v41 = vpop.f32.mrb[91].mxu0  ;;  %v4300_v63 = vpop.eup %4299  ;;  %4319 = vrcp.f32 %v2618_v43  ;;  %v2621_v21 = vadd.f32 1.0, %v4298_v29 }
 0x63f   : > { %v5394_v23 = vpop.f32.mrb[91].mxu1  ;;  %v4302_v52 = vpop.eup %4301  ;;  %4321 = vrcp.f32 %v2620_v51  ;;  %v2623_v1 = vadd.f32 1.0, %v4300_v63 }
 0x640   : > { %v4304_v28 = vpop.eup %4303  ;;  %4323 = vrcp.f32 %v2621_v21  ;;  %v2622_v27 = vadd.f32 1.0, %v4302_v52  ;;  %v5396_v4 = vpop.f32.mrb[92].mxu0  ;;  %v2420_v21 = vadd.f32 %v5384_v58, %v2286_v37  ;;  %v2533_v52 = vadd.f32 %v5386_v10, %v2286_v37 }
 0x641   : > { %v4306_v38 = vpop.eup %4305  ;;  %4325 = vrcp.f32 %v2623_v1  ;;  %v2624_v32 = vadd.f32 1.0, %v4304_v28  ;;  %v5398_v25 = vpop.f32.mrb[92].mxu1 }
 0x642   : > { %v5400_v33 = vpop.f32.mrb[93].mxu0  ;;  %v4308_v40 = vpop.eup %4307  ;;  %4327 = vrcp.f32 %v2622_v27  ;;  %v2625_v42 = vadd.f32 1.0, %v4306_v38 }
 0x643   : > { %v5402_v15 = vpop.f32.mrb[93].mxu1  ;;  %v4310_v5 = vpop.eup %4309  ;;  %4329 = vrcp.f32 %v2624_v32  ;;  %v2627_v31 = vadd.f32 1.0, %v4308_v40 }
 0x644   : > { %v4312_v36 = vpop.eup %4311  ;;  %4331 = vrcp.f32 %v2625_v42  ;;  %v2626_v48 = vadd.f32 1.0, %v4310_v5  ;;  %v5404_v9 = vpop.f32.mrb[94].mxu0 }
 0x645   : > { %v4314_v46 = vpop.eup %4313  ;;  %4333 = vrcp.f32 %v2627_v31  ;;  %v2628_v56 = vadd.f32 1.0, %v4312_v36  ;;  %v5406_v62 = vpop.f32.mrb[94].mxu1 }
 0x646   : > { %v5408_v26 = vpop.f32.mrb[95].mxu0  ;;  %v4316_v59 = vpop.eup %4315  ;;  %4335 = vrcp.f32 %v2626_v48  ;;  %v2629_v47 = vadd.f32 1.0, %v4314_v46 }
 0x647   : > { %v5411_v43 = vpop.f32.mrb[95].mxu1  ;;  %v4318_v29 = vpop.eup %4317  ;;  %4337 = vrcp.f32 %v2628_v56  ;;  %v2665_v63 = vadd.f32 0.001, %v4316_v59 }
 0x648   : > { %v2291_v51 = vpop.permute.xlu1 %2290  ;;  %v4320_v57 = vpop.eup %4319  ;;  %4339 = vrcp.f32 %v2629_v47  ;;  %v2667_v55 = vadd.f32 0.001, %v4318_v29 }
 0x649   : > { %v2424_v1 = vadd.f32 %v5388_v13, %v2291_v51  ;;  %v4322_v16 = vpop.eup %4321  ;;  %4341 = vpow2.f32 %v3834_v22  ;;  %v2681_v0 = vmul.f32 %v2665_v63, %v5199_v35  ;;  %v2666_v28 = vadd.f32 0.001, %v4320_v57  ;;  %v2296_v5 = vpop.permute.xlu0 %2295 }
 0x64a   : > { %v2537_v27 = vadd.f32 %v5390_v18, %v2291_v51  ;;  %v4324_v38 = vpop.eup %4323  ;;  %4343 = vpow2.f32 %v3833_v30  ;;  %v2683_v32 = vmul.f32 %v2667_v55, %v5202_v49  ;;  %v2668_v2 = vadd.f32 0.001, %v4322_v16 }
 0x64b   : > { %v2426_v58 = vadd.f32 %v5392_v41, %v2291_v51  ;;  %v4326_v40 = vpop.eup %4325  ;;  %4345 = vpow2.f32 %v3835_v45  ;;  %v5420_v42 = vadd.f32 %v2681_v0, %v2418_v20  ;;  %v2682_v10 = vmul.f32 %v2666_v28, %v5206_v39 }
 0x64c   : > { %v2669_v13 = vadd.f32 0.001, %v4324_v38  ;;  %v4328_v44 = vpop.eup %4327  ;;  %v5423_v35 = vadd.f32 %v2683_v32, %v2531_v12  ;;  %v2684_v18 = vmul.f32 %v2668_v2, %v5210_v7  ;;  %v2671_v31 = vadd.f32 0.001, %v4326_v40  ;;  %v2301_v12 = vpop.permute.xlu1 %2300 }
 0x64d   : > { %v2539_v53 = vadd.f32 %v5394_v23, %v2291_v51  ;;  %v4330_v49 = vpop.eup %4329  ;;  %v5427_v36 = vadd.f32 %v2682_v10, %v2420_v21  ;;  %v2670_v37 = vadd.f32 0.001, %v4328_v44  ;;  %v2430_v48 = vadd.f32 %v5396_v4, %v2296_v5 }
 0x64e   : > { %v2685_v41 = vmul.f32 %v2669_v13, %v5214_v54  ;;  %v4332_v46 = vpop.eup %4331  ;;  %v5431_v39 = vadd.f32 %v2684_v18, %v2533_v52  ;;  %v2687_v56 = vmul.f32 %v2671_v31, %v5218_v61  ;;  %v2672_v22 = vadd.f32 0.001, %v4330_v49 }
 0x64f   : > { %v2543_v20 = vadd.f32 %v5398_v25, %v2296_v5  ;;  %v4334_v7 = vpop.eup %4333  ;;  %v2686_v23 = vmul.f32 %v2670_v37, %v5222_v6  ;;  %v2673_v47 = vadd.f32 0.001, %v4332_v46  ;;  %v2432_v30 = vadd.f32 %v5400_v33, %v2296_v5 }
 0x650   : > { %v5435_v59 = vadd.f32 %v2685_v41, %v2424_v1  ;;  %v4336_v54 = vpop.eup %4335  ;;  %v5439_v29 = vadd.f32 %v2687_v56, %v2537_v27  ;;  %v2688_v4 = vmul.f32 %v2672_v22, %v5228_v8  ;;  %v2675_v51 = vadd.f32 0.001, %v4334_v7 }
 0x651   : > { %v2545_v61 = vadd.f32 %v5402_v15, %v2296_v5  ;;  %v4338_v45 = vpop.eup %4337  ;;  %v5443_v63 = vadd.f32 %v2686_v23, %v2426_v58  ;;  %v2689_v25 = vmul.f32 %v2673_v47, %v5231_v14  ;;  %v2674_v21 = vadd.f32 0.001, %v4336_v54  ;;  %v3838_v23 = vld [vmem:[%s5739_s1 + $0xd0] sm:$0xff]  ;;  %v3839_v47 = vld [vmem:[%s5739_s1 + $0xd8] sm:$0xff]  ;;  %v3841_v54 = vld [vmem:[%s5739_s1 + $0xe8] sm:$0xff] }
 0x652   : > { %v2436_v6 = vadd.f32 %v5404_v9, %v2301_v12  ;;  %v4340_v57 = vpop.eup %4339  ;;  %v4069_v33 = vpack.c.bf16 %v5435_v59, %v5420_v42  ;;  %v5449_v55 = vadd.f32 %v2688_v4, %v2539_v53  ;;  %v2691_v52 = vmul.f32 %v2675_v51, %v5236_v19  ;;  %v3843_v4 = vld [vmem:[%s5739_s1 + $0xf8] sm:$0xff] }
 0x653   : > { %v2676_v8 = vadd.f32 0.001, %v4338_v45  ;;  %v4342_v1 = vpop.eup %4341  ;;  %v5452_v16 = vadd.f32 %v2689_v25, %v2430_v48  ;;  %v2690_v15 = vmul.f32 %v2674_v21, %v5243_v34  ;;  %v2677_v0 = vadd.f32 0.001, %v4340_v57  ;;  %v2734_v25 = vpop.permute.xlu0 %2733 }
 0x654   : > { %v4067_v14 = vpack.c.bf16 %v5443_v63, %v5427_v36  ;;  %v4344_v28 = vpop.eup %4343  ;;  %v2631_v9 = vadd.f32 1.0, %v4342_v1  ;;  %v5457_v27 = vadd.f32 %v2691_v52, %v2543_v20  ;;  %v4075_v32 = vpack.c.bf16 %v5449_v55, %v5431_v39  ;;  %v2739_v57 = vpop.permute.xlu1 %2738 }
 0x655   : > { %v2692_v38 = vmul.f32 %v2676_v8, %v5246_v60  ;;  %v4346_v19 = vpop.eup %4345  ;;  %v2630_v2 = vadd.f32 1.0, %v4344_v28  ;;  %v4077_v58 = vpack.c.bf16 %v5439_v29, %v5423_v35  ;;  %v5464_v40 = vadd.f32 %v2690_v15, %v2432_v30  ;;  %v3840_v30 = vld [vmem:[%s5739_s1 + $0xe0] sm:$0xff] }
 0x656   : > { %v2693_v34 = vmul.f32 %v2677_v0, %v5248_v3  ;;  %4068 = vmatprep.subr.bf16.mxu0 %v4067_v14  ;;  %4347 = vrcp.f32 %v2631_v9  ;;  %v2632_v10 = vadd.f32 1.0, %v4346_v19  ;;  %4076 = vmatprep.subr.bf16.mxu1 %v4075_v32  ;;  %v2549_v49 = vadd.f32 %v5406_v62, %v2301_v12 }
 0x657   : > { %v5467_v13 = vadd.f32 %v2692_v38, %v2545_v61  ;;  %4070 = vmatpush1.bf16.msra.mxu0 %v4069_v33  ;;  %4349 = vrcp.f32 %v2630_v2  ;;  %4078 = vmatpush1.bf16.msra.mxu1 %v4077_v58  ;;  %v2438_v37 = vadd.f32 %v5408_v26, %v2301_v12  ;;  %v2551_v56 = vadd.f32 %v5411_v43, %v2301_v12  ;;  %v3837_v43 = vld [vmem:[%s5739_s1 + $0xc8] sm:$0xff]  ;;  %v3842_v12 = vld [vmem:[%s5739_s1 + $0xf0] sm:$0xff] }
 0x658   : > { %v5469_v60 = vadd.f32 %v2693_v34, %v2436_v6  ;;  %4351 = vrcp.f32 %v2632_v10 }
 0x660   : > { %v4348_v44 = vpop.eup %4347 }
 0x661   : > { %v4350_v5 = vpop.eup %4349  ;;  %v2679_v18 = vadd.f32 0.001, %v4348_v44 }
 0x662   : > { %v4352_v31 = vpop.eup %4351  ;;  %v2678_v53 = vadd.f32 0.001, %v4350_v5 }
 0x663   : > { %v2695_v3 = vmul.f32 %v2679_v18, %v5254_v11  ;;  %v2680_v41 = vadd.f32 0.001, %v4352_v31  ;;  %v4073_v11 = vpack.c.bf16 %v5469_v60, %v5452_v16 }
 0x664   : > { %v2694_v48 = vmul.f32 %v2678_v53, %v5258_v50 }
 0x665   : > { %v5475_v46 = vadd.f32 %v2695_v3, %v2549_v49  ;;  %v2696_v22 = vmul.f32 %v2680_v41, %v5260_v17  ;;  %v3836_v17 = vld [vmem:[%s5739_s1 + $0xc0] sm:$0xff]  ;;  %v2744_v41 = vpop.permute.xlu0 %2743 }
 0x666   : > { %v5479_v20 = vadd.f32 %v2694_v48, %v2438_v37 }
 0x667   : > { %v5481_v7 = vadd.f32 %v2696_v22, %v2551_v56  ;;  %v4081_v50 = vpack.c.bf16 %v5475_v46, %v5457_v27 }
 0x668   : > { %v4071_v62 = vpack.c.bf16 %v5479_v20, %v5464_v40 }
 0x669   : > { %v4079_v26 = vpack.c.bf16 %v5481_v7, %v5467_v13 }
 0x66a   : > { %4072 = vmatprep.subr.bf16.mxu0 %v4071_v62 }
 0x66b   : > { %4080 = vmatprep.subr.bf16.mxu1 %v4079_v26  ;;  %4074 = vmatpush1.bf16.msra.mxu0 %v4073_v11  ;;  %v2749_v11 = vpop.permute.xlu1 %2748 }
 0x66c   : > { %4082 = vmatpush1.bf16.msra.mxu1 %v4081_v50 }
 0x66e   : > { %3852 = vmatmul.mubr.msk.f32.vlgmr.msra.gmra.mrb[96].mxu0 %vm347_vm0, %v3836_v17 }
 0x66f   : > { %3860 = vmatmul.mubr.msk.f32.vlgmr.msra.gmra.mrb[96].mxu1 %vm347_vm0, %v3836_v17  ;;  %2865 = vmatprep.mubr.f32.mxu0 %v4498_v24 }
 0x670   : > { %2978 = vmatprep.mubr.f32.mxu1 %v4498_v24 }
 0x672   : > { %3853 = vmatmul.mubr.msk.f32.gmra.mrb[98].mxu0 %vm347_vm0, %v3837_v43 }
 0x673   : > { %3861 = vmatmul.mubr.msk.f32.gmra.mrb[98].mxu1 %vm347_vm0, %v3837_v43  ;;  %2871 = vmatprep.mubr.f32.mxu0 %v4498_v24 }
 0x674   : > { %2984 = vmatprep.mubr.f32.mxu1 %v4498_v24 }
 0x676   : > { %3854 = vmatmul.mubr.msk.f32.gmra.mrb[100].mxu0 %vm347_vm0, %v3838_v23 }
 0x677   : > { %3862 = vmatmul.mubr.msk.f32.gmra.mrb[100].mxu1 %vm347_vm0, %v3838_v23  ;;  %2877 = vmatprep.mubr.f32.mxu0 %v4498_v24 }
 0x678   : > { %2990 = vmatprep.mubr.f32.mxu1 %v4498_v24 }
 0x67a   : > { %3855 = vmatmul.mubr.msk.f32.gmra.mrb[102].mxu0 %vm347_vm0, %v3839_v47 }
 0x67b   : > { %3863 = vmatmul.mubr.msk.f32.gmra.mrb[102].mxu1 %vm347_vm0, %v3839_v47  ;;  %2883 = vmatprep.mubr.f32.mxu0 %v4498_v24 }
 0x67c   : > { %2996 = vmatprep.mubr.f32.mxu1 %v4498_v24 }
 0x67e   : > { %3856 = vmatmul.mubr.msk.f32.gmra.mrb[104].mxu0 %vm347_vm0, %v3840_v30 }
 0x67f   : > { %3864 = vmatmul.mubr.msk.f32.gmra.mrb[104].mxu1 %vm347_vm0, %v3840_v30  ;;  %2889 = vmatprep.mubr.f32.mxu0 %v4498_v24 }
 0x680   : > { %3002 = vmatprep.mubr.f32.mxu1 %v4498_v24 }
 0x682   : > { %3857 = vmatmul.mubr.msk.f32.gmra.mrb[106].mxu0 %vm347_vm0, %v3841_v54 }
 0x683   : > { %3865 = vmatmul.mubr.msk.f32.gmra.mrb[106].mxu1 %vm347_vm0, %v3841_v54  ;;  %2895 = vmatprep.mubr.f32.mxu0 %v4498_v24 }
 0x684   : > { %3008 = vmatprep.mubr.f32.mxu1 %v4498_v24 }
 0x686   : > { %3858 = vmatmul.mubr.msk.f32.gmra.mrb[108].mxu0 %vm347_vm0, %v3842_v12 }
 0x687   : > { %3866 = vmatmul.mubr.msk.f32.gmra.mrb[108].mxu1 %vm347_vm0, %v3842_v12  ;;  %2901 = vmatprep.mubr.f32.mxu0 %v4498_v24 }
 0x688   : > { %3014 = vmatprep.mubr.f32.mxu1 %v4498_v24 }
 0x68a   : > { %3859 = vmatmul.mubr.msk.f32.gmra.mrb[110].mxu0 %vm347_vm0, %v3843_v4 }
 0x68b   : > { %3867 = vmatmul.mubr.msk.f32.gmra.mrb[110].mxu1 %vm347_vm0, %v3843_v4  ;;  %3199 = vmatprep.mubr.f32.mxu0 %v4498_v24 }
 0x68c   : > { %3312 = vmatprep.mubr.f32.mxu1 %v4498_v24 }
 0x741   : > { %v2861_v51 = vpop.f32.mrb[96].mxu0 }
 0x742   : > { %v2974_v61 = vpop.f32.mrb[96].mxu1  ;;  %v2863_v45 = vpop.f32.mrb[97].mxu0  ;;  %v2862_v6 = vadd.f32 %v2861_v51, %v2734_v25 }
 0x743   : > { %v2976_v21 = vpop.f32.mrb[97].mxu1  ;;  %v2975_v33 = vadd.f32 %v2974_v61, %v2734_v25  ;;  %v2864_v52 = vadd.f32 %v2863_v45, %v2734_v25 }
 0x744   : > { %v2977_v1 = vadd.f32 %v2976_v21, %v2734_v25  ;;  %v3021_v32 = vmax.f32 %v2862_v6, 0.0 }
 0x745   : > { %v2867_v8 = vpop.f32.mrb[98].mxu0  ;;  %v3023_v58 = vmax.f32 %v2975_v33, 0.0  ;;  %v3022_v34 = vmax.f32 %v2864_v52, 0.0 }
 0x746   : > { %v2868_v15 = vadd.f32 %v2867_v8, %v2739_v57  ;;  %v2980_v0 = vpop.f32.mrb[98].mxu1  ;;  %v2869_v14 = vpop.f32.mrb[99].mxu0  ;;  %v3024_v18 = vmax.f32 %v2977_v1, 0.0 }
 0x747   : > { %v2981_v28 = vadd.f32 %v2980_v0, %v2739_v57  ;;  %v2870_v9 = vadd.f32 %v2869_v14, %v2739_v57  ;;  %v2982_v38 = vpop.f32.mrb[99].mxu1  ;;  %v2754_v14 = vpop.permute.xlu0 %2753 }
 0x748   : > { %v3025_v19 = vmax.f32 %v2868_v15, 0.0  ;;  %v2983_v2 = vadd.f32 %v2982_v38, %v2739_v57 }
 0x749   : > { %v3027_v10 = vmax.f32 %v2981_v28, 0.0  ;;  %v3026_v44 = vmax.f32 %v2870_v9, 0.0  ;;  %v2873_v5 = vpop.f32.mrb[100].mxu0 }
 0x74a   : > { %v4085_v31 = vpack.c.bf16 %v3025_v19, %v3021_v32  ;;  %v3028_v53 = vmax.f32 %v2983_v2, 0.0  ;;  %v2986_v49 = vpop.f32.mrb[100].mxu1  ;;  %v2875_v3 = vpop.f32.mrb[101].mxu0  ;;  %v2874_v62 = vadd.f32 %v2873_v5, %v2744_v41 }
 0x74b   : > { %v4101_v37 = vpack.c.bf16 %v3027_v10, %v3023_v58  ;;  %v4083_v48 = vpack.c.bf16 %v3026_v44, %v3022_v34  ;;  %v2988_v56 = vpop.f32.mrb[101].mxu1  ;;  %v2987_v26 = vadd.f32 %v2986_v49, %v2744_v41  ;;  %v2876_v50 = vadd.f32 %v2875_v3, %v2744_v41  ;;  %v2759_v2 = vpop.permute.xlu1 %2758 }
 0x74c   : > { %v4099_v22 = vpack.c.bf16 %v3028_v53, %v3024_v18  ;;  %v2989_v43 = vadd.f32 %v2988_v56, %v2744_v41  ;;  %v3029_v51 = vmax.f32 %v2874_v62, 0.0 }
 0x74d   : > { %v2879_v17 = vpop.f32.mrb[102].mxu0  ;;  %4084 = vmatprep.subr.bf16.mxu0 %v4083_v48  ;;  %v3031_v25 = vmax.f32 %v2987_v26, 0.0  ;;  %v3030_v21 = vmax.f32 %v2876_v50, 0.0 }
 0x74e   : > { %v2880_v23 = vadd.f32 %v2879_v17, %v2749_v11  ;;  %v2992_v47 = vpop.f32.mrb[102].mxu1  ;;  %4100 = vmatprep.subr.bf16.mxu1 %v4099_v22  ;;  %v2881_v30 = vpop.f32.mrb[103].mxu0  ;;  %4086 = vmatpush1.bf16.msra.mxu0 %v4085_v31  ;;  %v3032_v52 = vmax.f32 %v2989_v43, 0.0 }
 0x74f   : > { %v2993_v54 = vadd.f32 %v2992_v47, %v2749_v11  ;;  %v2882_v12 = vadd.f32 %v2881_v30, %v2749_v11  ;;  %v2994_v4 = vpop.f32.mrb[103].mxu1  ;;  %4102 = vmatpush1.bf16.msra.mxu1 %v4101_v37  ;;  %v2764_v30 = vpop.permute.xlu0 %2763 }
 0x750   : > { %v3033_v61 = vmax.f32 %v2880_v23, 0.0  ;;  %v2995_v45 = vadd.f32 %v2994_v4, %v2749_v11 }
 0x751   : > { %v3035_v6 = vmax.f32 %v2993_v54, 0.0  ;;  %v3034_v57 = vmax.f32 %v2882_v12, 0.0  ;;  %v2885_v33 = vpop.f32.mrb[104].mxu0 }
 0x752   : > { %v4089_v8 = vpack.c.bf16 %v3033_v61, %v3029_v51  ;;  %v3036_v1 = vmax.f32 %v2995_v45, 0.0  ;;  %v2998_v15 = vpop.f32.mrb[104].mxu1  ;;  %v2887_v0 = vpop.f32.mrb[105].mxu0  ;;  %v2886_v19 = vadd.f32 %v2885_v33, %v2754_v14 }
 0x753   : > { %v4105_v28 = vpack.c.bf16 %v3035_v6, %v3031_v25  ;;  %v4087_v9 = vpack.c.bf16 %v3034_v57, %v3030_v21  ;;  %v3000_v38 = vpop.f32.mrb[105].mxu1  ;;  %v2999_v58 = vadd.f32 %v2998_v15, %v2754_v14  ;;  %v2888_v34 = vadd.f32 %v2887_v0, %v2754_v14  ;;  %v2769_v45 = vpop.permute.xlu1 %2768 }
 0x754   : > { %v4103_v32 = vpack.c.bf16 %v3036_v1, %v3032_v52  ;;  %v3001_v44 = vadd.f32 %v3000_v38, %v2754_v14  ;;  %v3037_v41 = vmax.f32 %v2886_v19, 0.0 }
 0x755   : > { %v2891_v10 = vpop.f32.mrb[106].mxu0  ;;  %4088 = vmatprep.subr.bf16.mxu0 %v4087_v9  ;;  %v3039_v56 = vmax.f32 %v2999_v58, 0.0  ;;  %v3038_v22 = vmax.f32 %v2888_v34, 0.0 }
 0x756   : > { %v2892_v5 = vadd.f32 %v2891_v10, %v2759_v2  ;;  %v3004_v18 = vpop.f32.mrb[106].mxu1  ;;  %4104 = vmatprep.subr.bf16.mxu1 %v4103_v32  ;;  %v2893_v31 = vpop.f32.mrb[107].mxu0  ;;  %4090 = vmatpush1.bf16.msra.mxu0 %v4089_v8  ;;  %v3040_v50 = vmax.f32 %v3001_v44, 0.0 }
 0x757   : > { %v3005_v53 = vadd.f32 %v3004_v18, %v2759_v2  ;;  %v2894_v49 = vadd.f32 %v2893_v31, %v2759_v2  ;;  %v3006_v3 = vpop.f32.mrb[107].mxu1  ;;  %4106 = vmatpush1.bf16.msra.mxu1 %v4105_v28  ;;  %v3868_v31 = vld [vmem:[%s5741_s3 + $0xc0] sm:$0xff] }
 0x758   : > { %v3041_v37 = vmax.f32 %v2892_v5, 0.0  ;;  %v3007_v48 = vadd.f32 %v3006_v3, %v2759_v2  ;;  %v3871_v3 = vld [vmem:[%s5741_s3 + $0xd8] sm:$0xff] }
 0x759   : > { %v3043_v62 = vmax.f32 %v3005_v53, 0.0  ;;  %v3042_v11 = vmax.f32 %v2894_v49, 0.0  ;;  %v2897_v26 = vpop.f32.mrb[108].mxu0  ;;  %v3869_v53 = vld [vmem:[%s5741_s3 + $0xc8] sm:$0xff]  ;;  %v3870_v49 = vld [vmem:[%s5741_s3 + $0xd0] sm:$0xff] }
 0x75a   : > { %v4093_v17 = vpack.c.bf16 %v3041_v37, %v3037_v41  ;;  %v3044_v43 = vmax.f32 %v3007_v48, 0.0  ;;  %v3010_v23 = vpop.f32.mrb[108].mxu1  ;;  %v2899_v47 = vpop.f32.mrb[109].mxu0  ;;  %v2898_v61 = vadd.f32 %v2897_v26, %v2764_v30  ;;  %v3872_v41 = vld [vmem:[%s5741_s3 + $0xe0] sm:$0xff]  ;;  %v3873_v37 = vld [vmem:[%s5741_s3 + $0xe8] sm:$0xff]  ;;  %v3874_v48 = vld [vmem:[%s5741_s3 + $0xf0] sm:$0xff] }
 0x75b   : > { %v4109_v54 = vpack.c.bf16 %v3043_v62, %v3039_v56  ;;  %v4091_v12 = vpack.c.bf16 %v3042_v11, %v3038_v22  ;;  %v3012_v4 = vpop.f32.mrb[109].mxu1  ;;  %v3011_v25 = vadd.f32 %v3010_v23, %v2764_v30  ;;  %v2900_v21 = vadd.f32 %v2899_v47, %v2764_v30  ;;  %v3875_v56 = vld [vmem:[%s5741_s3 + $0xf8] sm:$0xff]  ;;  %v3074_v22 = vpop.permute.xlu0 %3073 }
 0x75c   : > { %v4107_v51 = vpack.c.bf16 %v3044_v43, %v3040_v50  ;;  %v3013_v57 = vadd.f32 %v3012_v4, %v2764_v30  ;;  %v3045_v14 = vmax.f32 %v2898_v61, 0.0 }
 0x75d   : > { %v2903_v6 = vpop.f32.mrb[110].mxu0  ;;  %4092 = vmatprep.subr.bf16.mxu0 %v4091_v12  ;;  %v3047_v38 = vmax.f32 %v3011_v25, 0.0  ;;  %v3046_v32 = vmax.f32 %v2900_v21, 0.0 }
 0x75e   : > { %v2904_v33 = vadd.f32 %v2903_v6, %v2769_v45  ;;  %v3016_v52 = vpop.f32.mrb[110].mxu1  ;;  %4108 = vmatprep.subr.bf16.mxu1 %v4107_v51  ;;  %v2905_v8 = vpop.f32.mrb[111].mxu0  ;;  %4094 = vmatpush1.bf16.msra.mxu0 %v4093_v17  ;;  %v3048_v58 = vmax.f32 %v3013_v57, 0.0 }
 0x75f   : > { %v3017_v1 = vadd.f32 %v3016_v52, %v2769_v45  ;;  %v2906_v15 = vadd.f32 %v2905_v8, %v2769_v45  ;;  %v3018_v0 = vpop.f32.mrb[111].mxu1  ;;  %4110 = vmatpush1.bf16.msra.mxu1 %v4109_v54  ;;  %v3079_v54 = vpop.permute.xlu1 %3078 }
 0x760   : > { %v3049_v28 = vmax.f32 %v2904_v33, 0.0  ;;  %v3019_v9 = vadd.f32 %v3018_v0, %v2769_v45 }
 0x761   : > { %v3051_v19 = vmax.f32 %v3017_v1, 0.0  ;;  %v3050_v2 = vmax.f32 %v2906_v15, 0.0 }
 0x762   : > { %v4097_v34 = vpack.c.bf16 %v3049_v28, %v3045_v14  ;;  %v3052_v10 = vmax.f32 %v3019_v9, 0.0  ;;  %v3084_v14 = vpop.permute.xlu0 %3083 }
 0x763   : > { %v4113_v44 = vpack.c.bf16 %v3051_v19, %v3047_v38  ;;  %v4095_v5 = vpack.c.bf16 %v3050_v2, %v3046_v32 }
 0x764   : > { %v4111_v18 = vpack.c.bf16 %v3052_v10, %v3048_v58 }
 0x765   : > { %4096 = vmatprep.subr.bf16.mxu0 %v4095_v5 }
 0x766   : > { %4112 = vmatprep.subr.bf16.mxu1 %v4111_v18  ;;  %4098 = vmatpush1.bf16.msra.mxu0 %v4097_v34 }
 0x767   : > { %4114 = vmatpush1.bf16.msra.mxu1 %v4113_v44 }
 0x769   : > { %3884 = vmatmul.mubr.msk.f32.vlgmr.msra.gmra.mrb[112].mxu0 %vm686_vm1, %v3868_v31 }
 0x76a   : > { %3892 = vmatmul.mubr.msk.f32.vlgmr.msra.gmra.mrb[112].mxu1 %vm686_vm1, %v3868_v31  ;;  %3205 = vmatprep.mubr.f32.mxu0 %v4498_v24 }
 0x76b   : > { %3318 = vmatprep.mubr.f32.mxu1 %v4498_v24 }
 0x76d   : > { %3885 = vmatmul.mubr.msk.f32.gmra.mrb[114].mxu0 %vm686_vm1, %v3869_v53 }
 0x76e   : > { %3893 = vmatmul.mubr.msk.f32.gmra.mrb[114].mxu1 %vm686_vm1, %v3869_v53  ;;  %3211 = vmatprep.mubr.f32.mxu0 %v4498_v24 }
 0x76f   : > { %3324 = vmatprep.mubr.f32.mxu1 %v4498_v24 }
 0x771   : > { %3886 = vmatmul.mubr.msk.f32.gmra.mrb[116].mxu0 %vm686_vm1, %v3870_v49 }
 0x772   : > { %3894 = vmatmul.mubr.msk.f32.gmra.mrb[116].mxu1 %vm686_vm1, %v3870_v49  ;;  %3217 = vmatprep.mubr.f32.mxu0 %v4498_v24 }
 0x773   : > { %3330 = vmatprep.mubr.f32.mxu1 %v4498_v24 }
 0x775   : > { %3887 = vmatmul.mubr.msk.f32.gmra.mrb[118].mxu0 %vm686_vm1, %v3871_v3 }
 0x776   : > { %3895 = vmatmul.mubr.msk.f32.gmra.mrb[118].mxu1 %vm686_vm1, %v3871_v3  ;;  %3223 = vmatprep.mubr.f32.mxu0 %v4498_v24  ;;  %v3089_v3 = vpop.permute.xlu1 %3088 }
 0x777   : > { %3336 = vmatprep.mubr.f32.mxu1 %v4498_v24 }
 0x779   : > { %3888 = vmatmul.mubr.msk.f32.gmra.mrb[120].mxu0 %vm686_vm1, %v3872_v41 }
 0x77a   : > { %3896 = vmatmul.mubr.msk.f32.gmra.mrb[120].mxu1 %vm686_vm1, %v3872_v41  ;;  %3229 = vmatprep.mubr.f32.mxu0 %v4498_v24 }
 0x77b   : > { %3342 = vmatprep.mubr.f32.mxu1 %v4498_v24 }
 0x77d   : > { %3889 = vmatmul.mubr.msk.f32.gmra.mrb[122].mxu0 %vm686_vm1, %v3873_v37 }
 0x77e   : > { %3897 = vmatmul.mubr.msk.f32.gmra.mrb[122].mxu1 %vm686_vm1, %v3873_v37  ;;  %3235 = vmatprep.mubr.f32.mxu0 %v4498_v24 }
 0x77f   : > { %3348 = vmatprep.mubr.f32.mxu1 %v4498_v24 }
 0x781   : > { %3890 = vmatmul.mubr.msk.f32.gmra.mrb[124].mxu0 %vm686_vm1, %v3874_v48 }
 0x782   : > { %3898 = vmatmul.mubr.msk.f32.gmra.mrb[124].mxu1 %vm686_vm1, %v3874_v48  ;;  %3241 = vmatprep.mubr.f32.mxu0 %v4498_v24 }
 0x783   : > { %3354 = vmatprep.mubr.f32.mxu1 %v4498_v24 }
 0x785   : > { %3891 = vmatmul.mubr.msk.f32.gmra.mrb[126].mxu0 %vm686_vm1, %v3875_v56 }
 0x786   : > { %3899 = vmatmul.mubr.msk.f32.gmra.mrb[126].mxu1 %vm686_vm1, %v3875_v56 }
 0x83c   : > { %v3201_v62 = vpop.f32.mrb[112].mxu0 }
 0x83d   : > { %v3202_v11 = vadd.f32 %v3201_v62, %v3074_v22  ;;  %v3314_v26 = vpop.f32.mrb[112].mxu1  ;;  %v3203_v50 = vpop.f32.mrb[113].mxu0 }
 0x83e   : > { %v3315_v17 = vadd.f32 %v3314_v26, %v3074_v22  ;;  %v3204_v43 = vadd.f32 %v3203_v50, %v3074_v22  ;;  %v3316_v23 = vpop.f32.mrb[113].mxu1 }
 0x83f   : > { %v3361_v47 = vadd.f32 2.0, %v3202_v11  ;;  %v3317_v30 = vadd.f32 %v3316_v23, %v3074_v22 }
 0x840   : > { %v3363_v12 = vadd.f32 2.0, %v3315_v17  ;;  %v3362_v4 = vadd.f32 2.0, %v3204_v43  ;;  %v3207_v51 = vpop.f32.mrb[114].mxu0 }
 0x841   : > { %v3900_v61 = vmul.f32 -1.442695, %v3361_v47  ;;  %v3364_v24 = vadd.f32 2.0, %v3317_v30  ;;  %v3208_v45 = vadd.f32 %v3207_v51, %v3079_v54  ;;  %v3320_v25 = vpop.f32.mrb[114].mxu1  ;;  %v3209_v21 = vpop.f32.mrb[115].mxu0 }
 0x842   : > { %v3902_v6 = vmul.f32 -1.442695, %v3363_v12  ;;  %v3901_v57 = vmul.f32 -1.442695, %v3362_v4  ;;  %v3321_v33 = vadd.f32 %v3320_v25, %v3079_v54  ;;  %v3210_v52 = vadd.f32 %v3209_v21, %v3079_v54  ;;  %v3322_v8 = vpop.f32.mrb[115].mxu1 }
 0x843   : > { %4353 = vpow2.f32 %v3900_v61  ;;  %v3903_v1 = vmul.f32 -1.442695, %v3364_v24  ;;  %v3365_v15 = vadd.f32 2.0, %v3208_v45  ;;  %v3323_v0 = vadd.f32 %v3322_v8, %v3079_v54 }
 0x844   : > { %4355 = vpow2.f32 %v3902_v6  ;;  %v3367_v28 = vadd.f32 2.0, %v3321_v33  ;;  %v3366_v9 = vadd.f32 2.0, %v3210_v52  ;;  %v3213_v38 = vpop.f32.mrb[116].mxu0 }
 0x845   : > { %4357 = vpow2.f32 %v3901_v57  ;;  %v3904_v32 = vmul.f32 -1.442695, %v3365_v15  ;;  %v3368_v19 = vadd.f32 2.0, %v3323_v0  ;;  %v3214_v2 = vadd.f32 %v3213_v38, %v3084_v14  ;;  %v3326_v58 = vpop.f32.mrb[116].mxu1  ;;  %v3215_v34 = vpop.f32.mrb[117].mxu0 }
 0x846   : > { %4359 = vpow2.f32 %v3903_v1  ;;  %v3906_v10 = vmul.f32 -1.442695, %v3367_v28  ;;  %v3905_v44 = vmul.f32 -1.442695, %v3366_v9  ;;  %v3327_v5 = vadd.f32 %v3326_v58, %v3084_v14  ;;  %v3328_v18 = vpop.f32.mrb[117].mxu1 }
 0x847   : > { %4361 = vpow2.f32 %v3904_v32  ;;  %v3907_v31 = vmul.f32 -1.442695, %v3368_v19  ;;  %v3369_v53 = vadd.f32 2.0, %v3214_v2  ;;  %v3216_v49 = vadd.f32 %v3215_v34, %v3084_v14 }
 0x848   : > { %4363 = vpow2.f32 %v3906_v10  ;;  %v3371_v41 = vadd.f32 2.0, %v3327_v5  ;;  %v3329_v37 = vadd.f32 %v3328_v18, %v3084_v14  ;;  %v3219_v48 = vpop.f32.mrb[118].mxu0 }
 0x849   : > { %4365 = vpow2.f32 %v3905_v44  ;;  %v3908_v56 = vmul.f32 -1.442695, %v3369_v53  ;;  %v3370_v22 = vadd.f32 2.0, %v3216_v49  ;;  %v3220_v62 = vadd.f32 %v3219_v48, %v3089_v3  ;;  %v3332_v11 = vpop.f32.mrb[118].mxu1  ;;  %v3221_v26 = vpop.f32.mrb[119].mxu0 }
 0x84a   : > { %4367 = vpow2.f32 %v3907_v31  ;;  %v3910_v50 = vmul.f32 -1.442695, %v3371_v41  ;;  %v3372_v17 = vadd.f32 2.0, %v3329_v37  ;;  %v3334_v43 = vpop.f32.mrb[119].mxu1  ;;  %v3333_v15 = vadd.f32 %v3332_v11, %v3089_v3 }
 0x84b   : > { %4369 = vpow2.f32 %v3908_v56  ;;  %v3909_v23 = vmul.f32 -1.442695, %v3370_v22  ;;  %v3373_v47 = vadd.f32 2.0, %v3220_v62  ;;  %v3222_v38 = vadd.f32 %v3221_v26, %v3089_v3 }
 0x84c   : > { %4371 = vpow2.f32 %v3910_v50  ;;  %v3911_v30 = vmul.f32 -1.442695, %v3372_v17  ;;  %v5601_v54 = vpop.f32.mrb[120].mxu0  ;;  %v3335_v58 = vadd.f32 %v3334_v43, %v3089_v3  ;;  %v3375_v31 = vadd.f32 2.0, %v3333_v15 }
 0x84d   : > { %v4354_v12 = vpop.eup %4353  ;;  %4373 = vpow2.f32 %v3909_v23  ;;  %v3912_v4 = vmul.f32 -1.442695, %v3373_v47  ;;  %v5603_v51 = vpop.f32.mrb[120].mxu1  ;;  %v3374_v48 = vadd.f32 2.0, %v3222_v38 }
 0x84e   : > { %v5605_v61 = vpop.f32.mrb[121].mxu0  ;;  %v4356_v24 = vpop.eup %4355  ;;  %v3425_v45 = vadd.f32 1.0, %v4354_v12  ;;  %4375 = vpow2.f32 %v3911_v30  ;;  %v3376_v62 = vadd.f32 2.0, %v3335_v58  ;;  %v3914_v23 = vmul.f32 -1.442695, %v3375_v31 }
 0x84f   : > { %v5607_v25 = vpop.f32.mrb[121].mxu1  ;;  %v4358_v21 = vpop.eup %4357  ;;  %v3427_v6 = vadd.f32 1.0, %v4356_v24  ;;  %4377 = vpow2.f32 %v3912_v4  ;;  %v3913_v24 = vmul.f32 -1.442695, %v3374_v48 }
 0x850   : > { %v4360_v57 = vpop.eup %4359  ;;  %4379 = vrcp.f32 %v3425_v45  ;;  %v3426_v33 = vadd.f32 1.0, %v4358_v21  ;;  %v5609_v52 = vpop.f32.mrb[122].mxu0 }
 0x851   : > { %v4362_v8 = vpop.eup %4361  ;;  %4381 = vrcp.f32 %v3427_v6  ;;  %v3428_v1 = vadd.f32 1.0, %v4360_v57  ;;  %v5611_v0 = vpop.f32.mrb[122].mxu1  ;;  %v3915_v57 = vmul.f32 -1.442695, %v3376_v62 }
 0x852   : > { %v5613_v14 = vpop.f32.mrb[123].mxu0  ;;  %v4364_v28 = vpop.eup %4363  ;;  %4383 = vrcp.f32 %v3426_v33  ;;  %v3429_v9 = vadd.f32 1.0, %v4362_v8 }
 0x853   : > { %v5615_v32 = vpop.f32.mrb[123].mxu1  ;;  %v4366_v19 = vpop.eup %4365  ;;  %4385 = vrcp.f32 %v3428_v1  ;;  %v3431_v2 = vadd.f32 1.0, %v4364_v28 }
 0x854   : > { %v4368_v34 = vpop.eup %4367  ;;  %4387 = vrcp.f32 %v3429_v9  ;;  %v3430_v10 = vadd.f32 1.0, %v4366_v19  ;;  %v5617_v44 = vpop.f32.mrb[124].mxu0 }
 0x855   : > { %v4370_v5 = vpop.eup %4369  ;;  %4389 = vrcp.f32 %v3431_v2  ;;  %v3432_v18 = vadd.f32 1.0, %v4368_v34  ;;  %v5619_v53 = vpop.f32.mrb[124].mxu1 }
 0x856   : > { %v5621_v49 = vpop.f32.mrb[125].mxu0  ;;  %v4372_v41 = vpop.eup %4371  ;;  %4391 = vrcp.f32 %v3430_v10  ;;  %v3433_v37 = vadd.f32 1.0, %v4370_v5 }
 0x857   : > { %v5623_v56 = vpop.f32.mrb[125].mxu1  ;;  %v4374_v3 = vpop.eup %4373  ;;  %4393 = vrcp.f32 %v3432_v18  ;;  %v3435_v22 = vadd.f32 1.0, %v4372_v41 }
 0x858   : > { %v4376_v11 = vpop.eup %4375  ;;  %4395 = vrcp.f32 %v3433_v37  ;;  %v3434_v26 = vadd.f32 1.0, %v4374_v3  ;;  %v5625_v50 = vpop.f32.mrb[126].mxu0 }
 0x859   : > { %v4378_v17 = vpop.eup %4377  ;;  %4397 = vrcp.f32 %v3435_v22  ;;  %v3436_v43 = vadd.f32 1.0, %v4376_v11  ;;  %v5627_v47 = vpop.f32.mrb[126].mxu1 }
 0x85a   : > { %v5629_v30 = vpop.f32.mrb[127].mxu0  ;;  %v4380_v12 = vpop.eup %4379  ;;  %4399 = vrcp.f32 %v3434_v26  ;;  %v3437_v4 = vadd.f32 1.0, %v4378_v17 }
 0x85b   : > { %v5631_v45 = vpop.f32.mrb[127].mxu1  ;;  %v4382_v21 = vpop.eup %4381  ;;  %4401 = vrcp.f32 %v3436_v43  ;;  %v3473_v33 = vadd.f32 0.001, %v4380_v12 }
 0x85c   : > { %v3094_v6 = vpop.permute.xlu0 %3093  ;;  %v4384_v8 = vpop.eup %4383  ;;  %4403 = vrcp.f32 %v3437_v4  ;;  %v3475_v15 = vadd.f32 0.001, %v4382_v21 }
 0x85d   : > { %v3226_v1 = vadd.f32 %v5601_v54, %v3094_v6  ;;  %v4386_v28 = vpop.eup %4385  ;;  %4405 = vpow2.f32 %v3914_v23  ;;  %v3489_v9 = vmul.f32 %v3473_v33, %v5420_v42  ;;  %v3339_v38 = vadd.f32 %v5603_v51, %v3094_v6  ;;  %v3099_v37 = vpop.permute.xlu1 %3098 }
 0x85e   : > { %v3474_v19 = vadd.f32 0.001, %v4384_v8  ;;  %v4388_v2 = vpop.eup %4387  ;;  %4407 = vpow2.f32 %v3913_v24  ;;  %v3491_v58 = vmul.f32 %v3475_v15, %v5423_v35  ;;  %v3228_v34 = vadd.f32 %v5605_v61, %v3094_v6 }
 0x85f   : > { %v3476_v10 = vadd.f32 0.001, %v4386_v28  ;;  %v4390_v5 = vpop.eup %4389  ;;  %4409 = vpow2.f32 %v3915_v57  ;;  %v3505_v18 = vadd.f32 %v3489_v9, %v3226_v1  ;;  %v3477_v31 = vadd.f32 0.001, %v4388_v2 }
 0x860   : > { %v3490_v54 = vmul.f32 %v3474_v19, %v5427_v36  ;;  %v4392_v41 = vpop.eup %4391  ;;  %v3507_v42 = vadd.f32 %v3491_v58, %v3339_v38  ;;  %v3341_v51 = vadd.f32 %v5607_v25, %v3094_v6  ;;  %v3479_v3 = vadd.f32 0.001, %v4390_v5  ;;  %v3104_v24 = vpop.permute.xlu0 %3103 }
 0x861   : > { %v3492_v48 = vmul.f32 %v3476_v10, %v5431_v39  ;;  %v4394_v22 = vpop.eup %4393  ;;  %3521 = vst [vmem:[%s5642_s14] sm:$0xff] %v3505_v18  ;;  %v3232_v61 = vadd.f32 %v5609_v52, %v3099_v37  ;;  %v3493_v36 = vmul.f32 %v3477_v31, %v5435_v59  ;;  %v3478_v62 = vadd.f32 0.001, %v4392_v41  ;;  %v3109_v58 = vpop.permute.xlu1 %3108 }
 0x862   : > { %v3506_v35 = vadd.f32 %v3490_v54, %v3228_v34  ;;  %v4396_v11 = vpop.eup %4395  ;;  %3523 = vst [vmem:[%s5642_s14 + $0x10] sm:$0xff] %v3507_v42  ;;  %v3345_v39 = vadd.f32 %v5611_v0, %v3099_v37  ;;  %v3495_v26 = vmul.f32 %v3479_v3, %v5439_v29  ;;  %v3480_v17 = vadd.f32 0.001, %v4394_v22 }
 0x863   : > { %v3508_v25 = vadd.f32 %v3492_v48, %v3341_v51  ;;  %v4398_v43 = vpop.eup %4397  ;;  %v3509_v23 = vadd.f32 %v3493_v36, %v3232_v61  ;;  %v3234_v12 = vadd.f32 %v5613_v14, %v3099_v37  ;;  %v3494_v52 = vmul.f32 %v3478_v62, %v5443_v63 }
 0x864   : > { %3522 = vst [vmem:[%s5642_s14 + $0x8] sm:$0xff] %v3506_v35  ;;  %v3481_v59 = vadd.f32 0.001, %v4396_v11  ;;  %v4400_v4 = vpop.eup %4399  ;;  %v3511_v21 = vadd.f32 %v3495_v26, %v3345_v39  ;;  %v3347_v6 = vadd.f32 %v5615_v32, %v3099_v37  ;;  %v3496_v29 = vmul.f32 %v3480_v17, %v5449_v55 }
 0x865   : > { %3524 = vst [vmem:[%s5642_s14 + $0x18] sm:$0xff] %v3508_v25  ;;  %v3483_v0 = vadd.f32 0.001, %v4398_v43  ;;  %v4402_v57 = vpop.eup %4401  ;;  %3525 = vst [vmem:[%s5642_s14 + $0x20] sm:$0xff] %v3509_v23  ;;  %v3510_v33 = vadd.f32 %v3494_v52, %v3234_v12  ;;  %v3238_v8 = vadd.f32 %v5617_v44, %v3104_v24  ;;  %v3482_v63 = vadd.f32 0.001, %v4400_v4 }
 0x866   : > { %v3497_v14 = vmul.f32 %v3481_v59, %v5452_v16  ;;  %v4404_v1 = vpop.eup %4403  ;;  %3527 = vst [vmem:[%s5642_s14 + $0x30] sm:$0xff] %v3511_v21  ;;  %v3512_v15 = vadd.f32 %v3496_v29, %v3347_v6  ;;  %v3351_v28 = vadd.f32 %v5619_v53, %v3104_v24  ;;  %v3484_v9 = vadd.f32 0.001, %v4402_v57 }
 0x867   : > { %v3499_v32 = vmul.f32 %v3483_v0, %v5457_v27  ;;  %v4406_v55 = vpop.eup %4405  ;;  %3526 = vst [vmem:[%s5642_s14 + $0x28] sm:$0xff] %v3510_v33  ;;  %v3240_v19 = vadd.f32 %v5621_v49, %v3104_v24  ;;  %v3498_v44 = vmul.f32 %v3482_v63, %v5464_v40  ;;  %v3485_v2 = vadd.f32 0.001, %v4404_v1 }
 0x868   : > { %v3513_v38 = vadd.f32 %v3497_v14, %v3238_v8  ;;  %v4408_v16 = vpop.eup %4407  ;;  %v3439_v34 = vadd.f32 1.0, %v4406_v55  ;;  %3528 = vst [vmem:[%s5642_s14 + $0x38] sm:$0xff] %v3512_v15  ;;  %v3353_v53 = vadd.f32 %v5623_v56, %v3104_v24  ;;  %v3500_v27 = vmul.f32 %v3484_v9, %v5467_v13 }
 0x869   : > { %v3515_v10 = vadd.f32 %v3499_v32, %v3351_v28  ;;  %v4410_v5 = vpop.eup %4409  ;;  %v3438_v18 = vadd.f32 1.0, %v4408_v16  ;;  %v3514_v49 = vadd.f32 %v3498_v44, %v3240_v19  ;;  %v3244_v40 = vadd.f32 %v5625_v50, %v3109_v58 }
 0x86a   : > { %3529 = vst [vmem:[%s5642_s14 + $0x40] sm:$0xff] %v3513_v38  ;;  %v3501_v54 = vmul.f32 %v3485_v2, %v5469_v60  ;;  %4411 = vrcp.f32 %v3439_v34  ;;  %v3440_v31 = vadd.f32 1.0, %v4410_v5  ;;  %v3516_v41 = vadd.f32 %v3500_v27, %v3353_v53 }
 0x86b   : > { %3531 = vst [vmem:[%s5642_s14 + $0x50] sm:$0xff] %v3515_v10  ;;  %4413 = vrcp.f32 %v3438_v18  ;;  %3530 = vst [vmem:[%s5642_s14 + $0x48] sm:$0xff] %v3514_v49  ;;  %v3357_v60 = vadd.f32 %v5627_v47, %v3109_v58  ;;  %v3246_v22 = vadd.f32 %v5629_v30, %v3109_v58  ;;  %v3359_v36 = vadd.f32 %v5631_v45, %v3109_v58 }
 0x86c   : > { %v3517_v56 = vadd.f32 %v3501_v54, %v3244_v40  ;;  %4415 = vrcp.f32 %v3440_v31  ;;  %3532 = vst [vmem:[%s5642_s14 + $0x58] sm:$0xff] %v3516_v41 }
 0x86e   : > { %3533 = vst [vmem:[%s5642_s14 + $0x60] sm:$0xff] %v3517_v56 }
 0x874   : > { %v4412_v13 = vpop.eup %4411 }
 0x875   : > { %v4414_v37 = vpop.eup %4413  ;;  %v3487_v42 = vadd.f32 0.001, %v4412_v13 }
 0x876   : > { %v4416_v51 = vpop.eup %4415  ;;  %v3486_v50 = vadd.f32 0.001, %v4414_v37 }
 0x877   : > { %v3503_v48 = vmul.f32 %v3487_v42, %v5475_v46  ;;  %v3488_v3 = vadd.f32 0.001, %v4416_v51 }
 0x878   : > { %v3502_v35 = vmul.f32 %v3486_v50, %v5479_v20 }
 0x879   : > { %v3519_v61 = vadd.f32 %v3503_v48, %v3357_v60  ;;  %v3504_v62 = vmul.f32 %v3488_v3, %v5481_v7 }
 0x87a   : > { %v3518_v47 = vadd.f32 %v3502_v35, %v3246_v22 }
 0x87b   : > { %3535 = vst [vmem:[%s5642_s14 + $0x70] sm:$0xff] %v3519_v61  ;;  %v3520_v46 = vadd.f32 %v3504_v62, %v3359_v36 }
 0x87c   : > { %3534 = vst [vmem:[%s5642_s14 + $0x68] sm:$0xff] %v3518_v47 }
 0x87d   : > { %3536 = vst [vmem:[%s5642_s14 + $0x78] sm:$0xff] %v3520_v46 }
 0x87e   : > { %4446 = shalt.err (!%p4443_p5)
}
 0x87f   : > { %s4447_s16 = scalar_lea.hbm %s5687_s23, 2048  ;;  %s4451_s11 = scalar_lea.hbm %s5743_s5, 4096 }
 0x880   : > { %p4448_p7 = scmp.ne.s32.totalorder %s5687_s23, %s4447_s16  ;;  %p4452_p12 = scmp.lt.u32.totalorder %s5687_s23, %s5743_s5 }
 0x881   : > { %p4453_p13 = scmp.lt.u32.totalorder %s4451_s11, %s4447_s16  ;;  %p4455_p1 = scmp.lt.u32.totalorder %s4447_s16, %s5687_s23 }
 0x882   : > { %p4449_p10 = pnand %p4448_p7, %p4571_p6 }
 0x883   : > { %p4454_p0 = por %p4453_p13, %p4452_p12 }
 0x884   : > { %p4450_p11 = pneg %p4449_p10 }
 0x885   : > { %p4456_p2 = por %p4455_p1, %p4454_p0 }
 0x887   : > { %p4457_p3 = pnand %p4456_p2, %p4450_p11 }
 0x889   : > { %4460 = shalt.err (!%p4457_p3)
}
 0x88a   : > { %s4500_s14 = smov 512   ;;  %s4501_s17 = smov 1024  }
 0x88b   : > { %s4502_s6 = smov 32  }
 0x88c   : > { %4115 = dma.vmem_to_hbm [thread:$0]  (%p4571_p6), %s5689_s15, 2048, %s5687_s23, %s5696_s25, %s4500_s14, %s4501_s17, %s4502_s6  }
 0x88d PF: > { %s3566_s22 = sand.u32 1, %s4483_s18   ;;  %p4118_p4 = pnand %p3621_p9, %p4575_p8 }
 0x88e   : > { %s3567_s26 = scalar_lea.sflag [#allocation4], %s3566_s22 }
 0x88f   : > { %4478 = dma.done.wait (!%p4118_p4), %s3567_s26, 2048  }
 0x890   : > { %4480 = vsyncadd (!%p4118_p4), %s3567_s26, 4294965248  ;;  %p15_p5 = scmp.ge.s32.totalorder %s4556_s24, 4   ;;  %s5746_s18 = smov %s4487_s19 }
 0x891   : > { %s5747_s19 = smov %s4491_s20  ;;  %s5748_s20 = smov %s4569_s27 }
 0x892   : > { %s5749_s21 = smov %s4556_s24  ;;  %17 = sbr.rel (!%p15_p5) target bundleno = 3 (0x3), region = 115 }
 0x899   :  { %3572 = vsyncpa [#allocation4], 1 }
 0x89a   :  { %3574 = vsyncpa [#allocation4 + $0x1], 1 }

</bundles_post_ra>
